<compile_context>
chip_gen: v6e
topology: v6e:2x2x1
jax: 0.10.0
libtpu: 0.0.40
codegen_flags: <defaults>
</compile_context>

<pallas_src>
import math

import jax
import jax.numpy as jnp
from jax import lax
from jax.experimental import pallas as pl
from jax.experimental.pallas import tpu as pltpu

# ----------------------------- model hyperparameters (small) -----------------------------
B, S, WC = 2, 8, 12                     # batch, sentence length (words), word length (chars)
CHAR_VOCAB, CHAR_EMB, CHAR_OUT = 40, 16, 16
WORD_VOCAB, WORD_EMB = 50, 32
WORD_CONV_LAYERS, WORD_OUT = 2, 32
FULL_EMB = WORD_EMB + CHAR_OUT          # word_cnn input channels (48)
FEATURE = FULL_EMB + WORD_OUT           # word_cnn output / decoder feature size (80)
NUM_CLASSES = 8
DEC_HIDDEN = 32
NW = B * S                              # number of words in the batch
# TODO(synk): the reference hard-codes word_to_sent LSTM input/hidden = 1115; it is
# parameterized here as FEATURE so the small test shapes stay self-consistent.


# ----------------------------- fused forward kernel --------------------------------------
def _fused_kernel(tags_ref,                         # SMEM (B,) int32 (scalar prefetch)
                  cim_ref,                          # (WC*NW, 3*CHAR_EMB) char im2col
                  wemb_ref,                         # (NW, WORD_EMB)
                  wc_ref, bc_ref,                   # (3*CHAR_EMB, CHAR_OUT), (1, CHAR_OUT)
                  w1_ref, wb1_ref,                  # (5*FULL_EMB, WORD_OUT), (1, WORD_OUT)
                  w2_ref, wb2_ref,                  # (5*WORD_OUT, WORD_OUT), (1, WORD_OUT)
                  wih_ref, whh_ref, blstm_ref,      # (F, 4F), (F, 4F), (1, 4F)
                  dwx_ref, dwt_ref, dwhh_ref, db_ref,  # (F,4H), (C,4H), (H,4H), (1,4H)
                  wl_ref, bl_ref,                   # (H, C), (1, C)
                  loss_ref,                         # (1, 1) out
                  xproj_ref, xdec_ref):             # VMEM scratch: (NW, 4F), (B, 4H)
    f32 = jnp.float32
    bf16 = jnp.bfloat16

    def mm(a, b):
        # bf16 MXU operands, f32 accumulate.
        return jnp.dot(a.astype(bf16), b.astype(bf16), preferred_element_type=f32)

    # ---------------- stage 1: char CNN (k=3, pad=1) + maxpool + relu --------------------
    # rows of cim are ordered t*NW + n (char-position-major) so maxpool over the word
    # length is a static max over WC aligned row-groups of size NW.
    y = mm(cim_ref[...], wc_ref[...]) + bc_ref[...]          # (WC*NW, CHAR_OUT)
    cf = y[0:NW, :]
    for t in range(1, WC):
        cf = jnp.maximum(cf, y[t * NW:(t + 1) * NW, :])
    char_feat = jnp.maximum(cf, 0.0)                         # (NW, CHAR_OUT)

    # ---------------- stage 2: word CNN (2x conv k=5 pad=2 + relu) -----------------------
    x0 = jnp.concatenate([wemb_ref[...], char_feat], axis=1)  # (NW, FULL_EMB)

    def conv_layer(x_in, w_r, b_r, cin):
        # x_in: (NW, cin), rows ordered b*S + s ; returns (NW, WORD_OUT)
        zpad = jnp.zeros((2, cin), f32)
        rows = []
        for b in range(B):
            xb = x_in[b * S:(b + 1) * S, :]                  # (S, cin), aligned slice
            xp = jnp.concatenate([zpad, xb, zpad], axis=0)   # (S+4, cin)
            rows.append(jnp.concatenate([xp[k:k + S, :] for k in range(5)], axis=1))
        im = jnp.concatenate(rows, axis=0)                   # (NW, 5*cin) im2col
        return jnp.maximum(mm(im, w_r[...]) + b_r[...], 0.0)

    h1 = conv_layer(x0, w1_ref, wb1_ref, FULL_EMB)           # (NW, WORD_OUT)
    h2 = conv_layer(h1, w2_ref, wb2_ref, WORD_OUT)           # (NW, WORD_OUT)

    x_feat = jnp.concatenate([h2, x0], axis=1)               # (NW, FEATURE), batch-major

    # ---------------- stage 3: word_to_sent LSTM (final hidden only) ---------------------
    F = FEATURE
    # hoisted input projection (+ combined bias), one well-shaped matmul
    xproj_ref[...] = mm(x_feat, wih_ref[...]) + blstm_ref[...]   # (NW, 4F)

    def lstm_step(t, carry):
        h, c = carry                                         # (B, F) each, f32
        x_t = jnp.concatenate(
            [xproj_ref[pl.ds(b * S + t, 1), :] for b in range(B)], axis=0)  # (B, 4F)
        g = x_t + mm(h, whh_ref[...])
        i_g = jax.nn.sigmoid(g[:, 0:F])
        f_g = jax.nn.sigmoid(g[:, F:2 * F])
        g_g = jnp.tanh(g[:, 2 * F:3 * F])
        o_g = jax.nn.sigmoid(g[:, 3 * F:4 * F])
        c_n = f_g * c + i_g * g_g
        h_n = o_g * jnp.tanh(c_n)
        return h_n, c_n

    h0 = jnp.zeros((B, F), f32)
    c0 = jnp.zeros((B, F), f32)
    h_n, _ = lax.fori_loop(0, S, lstm_step, (h0, c0), unroll=True)   # (B, F)

    # ---------------- stage 4: greedy LSTM decoder + summed CE loss ----------------------
    H = DEC_HIDDEN
    C = NUM_CLASSES
    # hoisted decoder input projection (+ combined bias)
    xdec_ref[...] = mm(h_n, dwx_ref[...]) + db_ref[...]      # (B, 4H)
    cls_row = lax.broadcasted_iota(jnp.int32, (1, C), 1)
    cls_col = lax.broadcasted_iota(jnp.int32, (C, 1), 0)

    def dec_step(i, carry):
        h, c, pred, loss = carry                             # (1,H),(1,H),(1,1)i32,(1,1)
        x_i = xdec_ref[pl.ds(i, 1), :]                       # (1, 4H)
        # W_tag[pred] via masked row-select (replaces one-hot @ W_tag MXU push)
        wt_row = jnp.sum(jnp.where(cls_col == pred, dwt_ref[...], 0.0),
                         axis=0, keepdims=True)              # (1, 4H)
        g = x_i + wt_row + mm(h, dwhh_ref[...])
        i_g = jax.nn.sigmoid(g[:, 0:H])
        f_g = jax.nn.sigmoid(g[:, H:2 * H])
        g_g = jnp.tanh(g[:, 2 * H:3 * H])
        o_g = jax.nn.sigmoid(g[:, 3 * H:4 * H])
        c_n = f_g * c + i_g * g_g
        h_n1 = o_g * jnp.tanh(c_n)
        logits = mm(h_n1, wl_ref[...]) + bl_ref[...]         # (1, C)
        mx = jnp.max(logits, axis=1, keepdims=True)
        pred_n = jnp.min(jnp.where(logits == mx, cls_row, C),
                         axis=1, keepdims=True)              # argmax
        # CrossEntropyLoss(ignore_index=0, reduction='sum') on one target
        lse = mx + jnp.log(jnp.sum(jnp.exp(logits - mx), axis=1, keepdims=True))
        tgt = tags_ref[i]
        tgt_logit = jnp.sum(jnp.where(cls_row == tgt, logits, 0.0),
                            axis=1, keepdims=True)
        ce = lse - tgt_logit
        loss_n = loss + jnp.where(tgt == 0, 0.0, ce)
        return h_n1, c_n, pred_n, loss_n

    h0d = jnp.zeros((1, H), f32)
    c0d = jnp.zeros((1, H), f32)
    p0 = jnp.zeros((1, 1), jnp.int32)
    l0 = jnp.zeros((1, 1), f32)
    _, _, _, loss = lax.fori_loop(0, B, dec_step, (h0d, c0d, p0, l0), unroll=True)
    loss_ref[...] = loss


# ----------------------------- parameters (deterministic) ---------------------------------
def _uniform(key, shape, bound):
    return jax.random.uniform(key, shape, jnp.float32, -bound, bound)


def make_params(key):
    ks = jax.random.split(key, 16)
    p = {}
    # char embedding (Ma & Hovy init, padding row zeroed)
    cb = math.sqrt(3.0 / CHAR_EMB)
    p['char_table'] = _uniform(ks[0], (CHAR_VOCAB, CHAR_EMB), cb).at[0].set(0.0)
    # char conv: torch (Cout, Cin, K=3) -> im2col layout (K*Cin, Cout)
    fb = 1.0 / math.sqrt(CHAR_EMB * 3)
    w = _uniform(ks[1], (CHAR_OUT, CHAR_EMB, 3), fb)
    p['char_w'] = jnp.transpose(w, (2, 1, 0)).reshape(3 * CHAR_EMB, CHAR_OUT)
    p['char_b'] = _uniform(ks[2], (CHAR_OUT,), fb).reshape(1, CHAR_OUT)
    # "pretrained" frozen word embedding
    p['word_table'] = 0.1 * jax.random.normal(ks[3], (WORD_VOCAB, WORD_EMB), jnp.float32)
    # word convs (K=5, pad=2) -> im2col layout (5*Cin, Cout)
    kk = 4
    cin = FULL_EMB
    for li in range(WORD_CONV_LAYERS):
        fb = 1.0 / math.sqrt(cin * 5)
        w = _uniform(ks[kk], (WORD_OUT, cin, 5), fb); kk += 1
        b = _uniform(ks[kk], (WORD_OUT,), fb).reshape(1, WORD_OUT); kk += 1
        p[f'wconv{li+1}_w'] = jnp.transpose(w, (2, 1, 0)).reshape(5 * cin, WORD_OUT)
        p[f'wconv{li+1}_b'] = b
        cin = WORD_OUT
    # word_to_sent LSTM (PyTorch default init; decoder.init_weight does not touch it)
    hb = 1.0 / math.sqrt(FEATURE)
    wih = _uniform(ks[kk], (4 * FEATURE, FEATURE), hb); kk += 1
    whh = _uniform(ks[kk], (4 * FEATURE, FEATURE), hb); kk += 1
    bih = _uniform(ks[kk], (4 * FEATURE,), hb); kk += 1
    bhh = _uniform(ks[kk], (4 * FEATURE,), hb); kk += 1
    p['w2s_wih_t'] = wih.T
    p['w2s_whh_t'] = whh.T
    p['w2s_b'] = (bih + bhh).reshape(1, 4 * FEATURE)
    # decoder LSTM: input = FEATURE + NUM_CLASSES, hidden = DEC_HIDDEN, Ma & Hovy init
    din = FEATURE + NUM_CLASSES
    b1 = math.sqrt(6.0 / (4 * DEC_HIDDEN + din))
    dec_wih = _uniform(ks[kk], (4 * DEC_HIDDEN, din), b1); kk += 1
    b2 = math.sqrt(6.0 / (4 * DEC_HIDDEN + DEC_HIDDEN))
    dec_whh = _uniform(ks[kk], (4 * DEC_HIDDEN, DEC_HIDDEN), b2); kk += 1
    gate_b = jnp.zeros((4 * DEC_HIDDEN,), jnp.float32)
    gate_b = gate_b.at[DEC_HIDDEN:2 * DEC_HIDDEN].set(1.0)   # forget bias = 1 per bias param
    p['dec_wx'] = dec_wih[:, :FEATURE].T                     # (FEATURE, 4H)
    p['dec_wt'] = dec_wih[:, FEATURE:].T                     # (NUM_CLASSES, 4H)
    p['dec_whh_t'] = dec_whh.T                               # (H, 4H)
    # reference sets forget bias = 1 on BOTH bias_ih and bias_hh -> effective 2.0 when summed
    p['dec_b'] = (gate_b + gate_b).reshape(1, 4 * DEC_HIDDEN)
    # output linear
    lb = math.sqrt(6.0 / (NUM_CLASSES + DEC_HIDDEN))
    p['lin_wt'] = _uniform(ks[kk], (NUM_CLASSES, DEC_HIDDEN), lb).T; kk += 1
    p['lin_b'] = jnp.zeros((1, NUM_CLASSES), jnp.float32)
    return p


# ----------------------------- wrapper (embedding gathers + fused call) -------------------
def cnn_cnn_lstm_forward(params, sentence, word, tag, mask):
    del mask  # unused by the reference forward as well
    Bn, Sn, Wn = word.shape
    nw = Bn * Sn
    # TODO(synk): embedding-table gathers stay in plain JAX/XLA; Pallas TPU has no cheap
    # in-kernel vocab gather for these tiny lookups.
    # char embedding lookup + im2col (k=3, pad=1), rows ordered char-position-major (t*NW+n)
    ce = params['char_table'][word]                                   # (B, S, WC, E)
    ce = jnp.pad(ce, ((0, 0), (0, 0), (1, 1), (0, 0)))                # (B, S, WC+2, E)
    cim = jnp.concatenate([ce[:, :, k:k + Wn, :] for k in range(3)], axis=-1)  # (B,S,WC,3E)
    cim = jnp.transpose(cim, (2, 0, 1, 3)).reshape(Wn * nw, 3 * CHAR_EMB)
    # word embedding lookup (flattened batch-major)
    we = params['word_table'][sentence].reshape(nw, WORD_EMB)
    tags_flat = tag.reshape(-1).astype(jnp.int32)                     # (B,)

    def fullspec(arr):
        return pl.BlockSpec(arr.shape, lambda i, tags: (0, 0))

    operands = (cim, we,
                params['char_w'], params['char_b'],
                params['wconv1_w'], params['wconv1_b'],
                params['wconv2_w'], params['wconv2_b'],
                params['w2s_wih_t'], params['w2s_whh_t'], params['w2s_b'],
                params['dec_wx'], params['dec_wt'], params['dec_whh_t'], params['dec_b'],
                params['lin_wt'], params['lin_b'])

    grid_spec = pltpu.PrefetchScalarGridSpec(
        num_scalar_prefetch=1,
        grid=(1,),
        in_specs=[fullspec(a) for a in operands],
        out_specs=pl.BlockSpec((1, 1), lambda i, tags: (0, 0)),
        scratch_shapes=[pltpu.VMEM((nw, 4 * FEATURE), jnp.float32),
                        pltpu.VMEM((Bn, 4 * DEC_HIDDEN), jnp.float32)],
    )
    loss = pl.pallas_call(
        _fused_kernel,
        grid_spec=grid_spec,
        out_shape=jax.ShapeDtypeStruct((1, 1), jnp.float32),
        compiler_params=pltpu.CompilerParams(dimension_semantics=("arbitrary",)),
    )(tags_flat, *operands)
    return loss[0, 0]


if __name__ == "__main__":
    key = jax.random.PRNGKey(0)
    k_params, k_sent, k_word, k_tag = jax.random.split(key, 4)
    params = make_params(k_params)

    sentence = jax.random.randint(k_sent, (B, S), 1, WORD_VOCAB, dtype=jnp.int32)
    word = jax.random.randint(k_word, (B, S, WC), 0, CHAR_VOCAB, dtype=jnp.int32)
    tag = jax.random.randint(k_tag, (B, 1), 0, NUM_CLASSES, dtype=jnp.int32)
    mask = jnp.ones((B, S), jnp.float32)

    loss = jax.jit(cnn_cnn_lstm_forward)(params, sentence, word, tag, mask)
    loss = jax.block_until_ready(loss)
    assert jnp.isfinite(loss)
    print("KERNEL_OK")
</pallas_src>

<mosaic_0001>
module attributes {stable_mosaic.version = 11 : i64} {
  func.func @_fused_kernel(%arg0: i32, %arg1: memref<2xi32, #tpu.memory_space<smem>>, %arg2: memref<192x48xf32, #tpu.memory_space<vmem>>, %arg3: memref<16x32xf32, #tpu.memory_space<vmem>>, %arg4: memref<48x16xf32, #tpu.memory_space<vmem>>, %arg5: memref<1x16xf32, #tpu.memory_space<vmem>>, %arg6: memref<240x32xf32, #tpu.memory_space<vmem>>, %arg7: memref<1x32xf32, #tpu.memory_space<vmem>>, %arg8: memref<160x32xf32, #tpu.memory_space<vmem>>, %arg9: memref<1x32xf32, #tpu.memory_space<vmem>>, %arg10: memref<80x320xf32, #tpu.memory_space<vmem>>, %arg11: memref<80x320xf32, #tpu.memory_space<vmem>>, %arg12: memref<1x320xf32, #tpu.memory_space<vmem>>, %arg13: memref<80x128xf32, #tpu.memory_space<vmem>>, %arg14: memref<8x128xf32, #tpu.memory_space<vmem>>, %arg15: memref<32x128xf32, #tpu.memory_space<vmem>>, %arg16: memref<1x128xf32, #tpu.memory_space<vmem>>, %arg17: memref<32x8xf32, #tpu.memory_space<vmem>>, %arg18: memref<1x8xf32, #tpu.memory_space<vmem>>, %arg19: memref<1x1xf32, #tpu.memory_space<vmem>>, %arg20: memref<16x320xf32, #tpu.memory_space<vmem>>, %arg21: memref<2x128xf32, #tpu.memory_space<vmem>>) attributes {dimension_semantics = [#tpu.dimension_semantics<arbitrary>], iteration_bounds = array<i64: 1>, scalar_prefetch = 1 : i64, scratch_operands = 2 : i64, tpu.core_type = #tpu.core_type<tc>, window_params = [{pipeline_mode = #tpu.pipeline_mode<synchronous>, transform_indices = @transform_0, window_bounds = array<i64: 192, 48>}, {pipeline_mode = #tpu.pipeline_mode<synchronous>, transform_indices = @transform_1, window_bounds = array<i64: 16, 32>}, {pipeline_mode = #tpu.pipeline_mode<synchronous>, transform_indices = @transform_2, window_bounds = array<i64: 48, 16>}, {pipeline_mode = #tpu.pipeline_mode<synchronous>, transform_indices = @transform_3, window_bounds = array<i64: 1, 16>}, {pipeline_mode = #tpu.pipeline_mode<synchronous>, transform_indices = @transform_4, window_bounds = array<i64: 240, 32>}, {pipeline_mode = #tpu.pipeline_mode<synchronous>, transform_indices = @transform_5, window_bounds = array<i64: 1, 32>}, {pipeline_mode = #tpu.pipeline_mode<synchronous>, transform_indices = @transform_6, window_bounds = array<i64: 160, 32>}, {pipeline_mode = #tpu.pipeline_mode<synchronous>, transform_indices = @transform_7, window_bounds = array<i64: 1, 32>}, {pipeline_mode = #tpu.pipeline_mode<synchronous>, transform_indices = @transform_8, window_bounds = array<i64: 80, 320>}, {pipeline_mode = #tpu.pipeline_mode<synchronous>, transform_indices = @transform_9, window_bounds = array<i64: 80, 320>}, {pipeline_mode = #tpu.pipeline_mode<synchronous>, transform_indices = @transform_10, window_bounds = array<i64: 1, 320>}, {pipeline_mode = #tpu.pipeline_mode<synchronous>, transform_indices = @transform_11, window_bounds = array<i64: 80, 128>}, {pipeline_mode = #tpu.pipeline_mode<synchronous>, transform_indices = @transform_12, window_bounds = array<i64: 8, 128>}, {pipeline_mode = #tpu.pipeline_mode<synchronous>, transform_indices = @transform_13, window_bounds = array<i64: 32, 128>}, {pipeline_mode = #tpu.pipeline_mode<synchronous>, transform_indices = @transform_14, window_bounds = array<i64: 1, 128>}, {pipeline_mode = #tpu.pipeline_mode<synchronous>, transform_indices = @transform_15, window_bounds = array<i64: 32, 8>}, {pipeline_mode = #tpu.pipeline_mode<synchronous>, transform_indices = @transform_16, window_bounds = array<i64: 1, 8>}, {pipeline_mode = #tpu.pipeline_mode<synchronous>, transform_indices = @transform_17, window_bounds = array<i64: 1, 1>}]} {
    %c0 = arith.constant 0 : index
    %c0_0 = arith.constant 0 : index
    %0 = vector.load %arg2[%c0, %c0_0] : memref<192x48xf32, #tpu.memory_space<vmem>>, vector<192x48xf32>
    %c0_1 = arith.constant 0 : index
    %c0_2 = arith.constant 0 : index
    %1 = vector.load %arg4[%c0_1, %c0_2] : memref<48x16xf32, #tpu.memory_space<vmem>>, vector<48x16xf32>
    %2 = arith.truncf %0 : vector<192x48xf32> to vector<192x48xbf16>
    %3 = arith.truncf %1 : vector<48x16xf32> to vector<48x16xbf16>
    %cst = arith.constant dense<0.000000e+00> : vector<192x16xf32>
    %4 = tpu.matmul %2, %3, %cst {dimension_numbers = #tpu.dot_dimension_numbers<[1], [0], [0], [1], [0, 0, 1, 1], [], []>} : vector<192x48xbf16>, vector<48x16xbf16>, vector<192x16xf32> -> vector<192x16xf32>
    %c0_3 = arith.constant 0 : index
    %c0_4 = arith.constant 0 : index
    %5 = vector.load %arg5[%c0_3, %c0_4] : memref<1x16xf32, #tpu.memory_space<vmem>>, vector<1x16xf32>
    %6 = vector.broadcast %5 : vector<1x16xf32> to vector<192x16xf32>
    %7 = arith.addf %4, %6 : vector<192x16xf32>
    %8 = vector.extract_strided_slice %7 {offsets = [0, 0], sizes = [16, 16], strides = [1, 1]} : vector<192x16xf32> to vector<16x16xf32>
    %9 = vector.extract_strided_slice %7 {offsets = [16, 0], sizes = [16, 16], strides = [1, 1]} : vector<192x16xf32> to vector<16x16xf32>
    %10 = arith.maximumf %8, %9 : vector<16x16xf32>
    %11 = vector.extract_strided_slice %7 {offsets = [32, 0], sizes = [16, 16], strides = [1, 1]} : vector<192x16xf32> to vector<16x16xf32>
    %12 = arith.maximumf %10, %11 : vector<16x16xf32>
    %13 = vector.extract_strided_slice %7 {offsets = [48, 0], sizes = [16, 16], strides = [1, 1]} : vector<192x16xf32> to vector<16x16xf32>
    %14 = arith.maximumf %12, %13 : vector<16x16xf32>
    %15 = vector.extract_strided_slice %7 {offsets = [64, 0], sizes = [16, 16], strides = [1, 1]} : vector<192x16xf32> to vector<16x16xf32>
    %16 = arith.maximumf %14, %15 : vector<16x16xf32>
    %17 = vector.extract_strided_slice %7 {offsets = [80, 0], sizes = [16, 16], strides = [1, 1]} : vector<192x16xf32> to vector<16x16xf32>
    %18 = arith.maximumf %16, %17 : vector<16x16xf32>
    %19 = vector.extract_strided_slice %7 {offsets = [96, 0], sizes = [16, 16], strides = [1, 1]} : vector<192x16xf32> to vector<16x16xf32>
    %20 = arith.maximumf %18, %19 : vector<16x16xf32>
    %21 = vector.extract_strided_slice %7 {offsets = [112, 0], sizes = [16, 16], strides = [1, 1]} : vector<192x16xf32> to vector<16x16xf32>
    %22 = arith.maximumf %20, %21 : vector<16x16xf32>
    %23 = vector.extract_strided_slice %7 {offsets = [128, 0], sizes = [16, 16], strides = [1, 1]} : vector<192x16xf32> to vector<16x16xf32>
    %24 = arith.maximumf %22, %23 : vector<16x16xf32>
    %25 = vector.extract_strided_slice %7 {offsets = [144, 0], sizes = [16, 16], strides = [1, 1]} : vector<192x16xf32> to vector<16x16xf32>
    %26 = arith.maximumf %24, %25 : vector<16x16xf32>
    %27 = vector.extract_strided_slice %7 {offsets = [160, 0], sizes = [16, 16], strides = [1, 1]} : vector<192x16xf32> to vector<16x16xf32>
    %28 = arith.maximumf %26, %27 : vector<16x16xf32>
    %29 = vector.extract_strided_slice %7 {offsets = [176, 0], sizes = [16, 16], strides = [1, 1]} : vector<192x16xf32> to vector<16x16xf32>
    %30 = arith.maximumf %28, %29 : vector<16x16xf32>
    %cst_5 = arith.constant 0.000000e+00 : f32
    %31 = vector.broadcast %cst_5 : f32 to vector<16x16xf32>
    %32 = arith.maximumf %30, %31 : vector<16x16xf32>
    %c0_6 = arith.constant 0 : index
    %c0_7 = arith.constant 0 : index
    %33 = vector.load %arg3[%c0_6, %c0_7] : memref<16x32xf32, #tpu.memory_space<vmem>>, vector<16x32xf32>
    %34 = tpu.concatenate %33, %32 in 1 : vector<16x32xf32>, vector<16x16xf32> -> vector<16x48xf32>
    %cst_8 = arith.constant 0.000000e+00 : f32
    %35 = vector.broadcast %cst_8 : f32 to vector<2x48xf32>
    %36 = vector.extract_strided_slice %34 {offsets = [0, 0], sizes = [8, 48], strides = [1, 1]} : vector<16x48xf32> to vector<8x48xf32>
    %37 = tpu.concatenate %35, %36, %35 in 0 : vector<2x48xf32>, vector<8x48xf32>, vector<2x48xf32> -> vector<12x48xf32>
    %38 = vector.extract_strided_slice %37 {offsets = [0, 0], sizes = [8, 48], strides = [1, 1]} : vector<12x48xf32> to vector<8x48xf32>
    %39 = vector.extract_strided_slice %37 {offsets = [1, 0], sizes = [8, 48], strides = [1, 1]} : vector<12x48xf32> to vector<8x48xf32>
    %40 = vector.extract_strided_slice %37 {offsets = [2, 0], sizes = [8, 48], strides = [1, 1]} : vector<12x48xf32> to vector<8x48xf32>
    %41 = vector.extract_strided_slice %37 {offsets = [3, 0], sizes = [8, 48], strides = [1, 1]} : vector<12x48xf32> to vector<8x48xf32>
    %42 = vector.extract_strided_slice %37 {offsets = [4, 0], sizes = [8, 48], strides = [1, 1]} : vector<12x48xf32> to vector<8x48xf32>
    %43 = tpu.concatenate %38, %39, %40, %41, %42 in 1 : vector<8x48xf32>, vector<8x48xf32>, vector<8x48xf32>, vector<8x48xf32>, vector<8x48xf32> -> vector<8x240xf32>
    %44 = vector.extract_strided_slice %34 {offsets = [8, 0], sizes = [8, 48], strides = [1, 1]} : vector<16x48xf32> to vector<8x48xf32>
    %45 = tpu.concatenate %35, %44, %35 in 0 : vector<2x48xf32>, vector<8x48xf32>, vector<2x48xf32> -> vector<12x48xf32>
    %46 = vector.extract_strided_slice %45 {offsets = [0, 0], sizes = [8, 48], strides = [1, 1]} : vector<12x48xf32> to vector<8x48xf32>
    %47 = vector.extract_strided_slice %45 {offsets = [1, 0], sizes = [8, 48], strides = [1, 1]} : vector<12x48xf32> to vector<8x48xf32>
    %48 = vector.extract_strided_slice %45 {offsets = [2, 0], sizes = [8, 48], strides = [1, 1]} : vector<12x48xf32> to vector<8x48xf32>
    %49 = vector.extract_strided_slice %45 {offsets = [3, 0], sizes = [8, 48], strides = [1, 1]} : vector<12x48xf32> to vector<8x48xf32>
    %50 = vector.extract_strided_slice %45 {offsets = [4, 0], sizes = [8, 48], strides = [1, 1]} : vector<12x48xf32> to vector<8x48xf32>
    %51 = tpu.concatenate %46, %47, %48, %49, %50 in 1 : vector<8x48xf32>, vector<8x48xf32>, vector<8x48xf32>, vector<8x48xf32>, vector<8x48xf32> -> vector<8x240xf32>
    %52 = tpu.concatenate %43, %51 in 0 : vector<8x240xf32>, vector<8x240xf32> -> vector<16x240xf32>
    %c0_9 = arith.constant 0 : index
    %c0_10 = arith.constant 0 : index
    %53 = vector.load %arg6[%c0_9, %c0_10] : memref<240x32xf32, #tpu.memory_space<vmem>>, vector<240x32xf32>
    %54 = arith.truncf %52 : vector<16x240xf32> to vector<16x240xbf16>
    %55 = arith.truncf %53 : vector<240x32xf32> to vector<240x32xbf16>
    %cst_11 = arith.constant dense<0.000000e+00> : vector<16x32xf32>
    %56 = tpu.matmul %54, %55, %cst_11 {dimension_numbers = #tpu.dot_dimension_numbers<[1], [0], [0], [1], [0, 0, 1, 1], [], []>} : vector<16x240xbf16>, vector<240x32xbf16>, vector<16x32xf32> -> vector<16x32xf32>
    %c0_12 = arith.constant 0 : index
    %c0_13 = arith.constant 0 : index
    %57 = vector.load %arg7[%c0_12, %c0_13] : memref<1x32xf32, #tpu.memory_space<vmem>>, vector<1x32xf32>
    %58 = vector.broadcast %57 : vector<1x32xf32> to vector<16x32xf32>
    %59 = arith.addf %56, %58 : vector<16x32xf32>
    %cst_14 = arith.constant 0.000000e+00 : f32
    %60 = vector.broadcast %cst_14 : f32 to vector<16x32xf32>
    %61 = arith.maximumf %59, %60 : vector<16x32xf32>
    %cst_15 = arith.constant 0.000000e+00 : f32
    %62 = vector.broadcast %cst_15 : f32 to vector<2x32xf32>
    %63 = vector.extract_strided_slice %61 {offsets = [0, 0], sizes = [8, 32], strides = [1, 1]} : vector<16x32xf32> to vector<8x32xf32>
    %64 = tpu.concatenate %62, %63, %62 in 0 : vector<2x32xf32>, vector<8x32xf32>, vector<2x32xf32> -> vector<12x32xf32>
    %65 = vector.extract_strided_slice %64 {offsets = [0, 0], sizes = [8, 32], strides = [1, 1]} : vector<12x32xf32> to vector<8x32xf32>
    %66 = vector.extract_strided_slice %64 {offsets = [1, 0], sizes = [8, 32], strides = [1, 1]} : vector<12x32xf32> to vector<8x32xf32>
    %67 = vector.extract_strided_slice %64 {offsets = [2, 0], sizes = [8, 32], strides = [1, 1]} : vector<12x32xf32> to vector<8x32xf32>
    %68 = vector.extract_strided_slice %64 {offsets = [3, 0], sizes = [8, 32], strides = [1, 1]} : vector<12x32xf32> to vector<8x32xf32>
    %69 = vector.extract_strided_slice %64 {offsets = [4, 0], sizes = [8, 32], strides = [1, 1]} : vector<12x32xf32> to vector<8x32xf32>
    %70 = tpu.concatenate %65, %66, %67, %68, %69 in 1 : vector<8x32xf32>, vector<8x32xf32>, vector<8x32xf32>, vector<8x32xf32>, vector<8x32xf32> -> vector<8x160xf32>
    %71 = vector.extract_strided_slice %61 {offsets = [8, 0], sizes = [8, 32], strides = [1, 1]} : vector<16x32xf32> to vector<8x32xf32>
    %72 = tpu.concatenate %62, %71, %62 in 0 : vector<2x32xf32>, vector<8x32xf32>, vector<2x32xf32> -> vector<12x32xf32>
    %73 = vector.extract_strided_slice %72 {offsets = [0, 0], sizes = [8, 32], strides = [1, 1]} : vector<12x32xf32> to vector<8x32xf32>
    %74 = vector.extract_strided_slice %72 {offsets = [1, 0], sizes = [8, 32], strides = [1, 1]} : vector<12x32xf32> to vector<8x32xf32>
    %75 = vector.extract_strided_slice %72 {offsets = [2, 0], sizes = [8, 32], strides = [1, 1]} : vector<12x32xf32> to vector<8x32xf32>
    %76 = vector.extract_strided_slice %72 {offsets = [3, 0], sizes = [8, 32], strides = [1, 1]} : vector<12x32xf32> to vector<8x32xf32>
    %77 = vector.extract_strided_slice %72 {offsets = [4, 0], sizes = [8, 32], strides = [1, 1]} : vector<12x32xf32> to vector<8x32xf32>
    %78 = tpu.concatenate %73, %74, %75, %76, %77 in 1 : vector<8x32xf32>, vector<8x32xf32>, vector<8x32xf32>, vector<8x32xf32>, vector<8x32xf32> -> vector<8x160xf32>
    %79 = tpu.concatenate %70, %78 in 0 : vector<8x160xf32>, vector<8x160xf32> -> vector<16x160xf32>
    %c0_16 = arith.constant 0 : index
    %c0_17 = arith.constant 0 : index
    %80 = vector.load %arg8[%c0_16, %c0_17] : memref<160x32xf32, #tpu.memory_space<vmem>>, vector<160x32xf32>
    %81 = arith.truncf %79 : vector<16x160xf32> to vector<16x160xbf16>
    %82 = arith.truncf %80 : vector<160x32xf32> to vector<160x32xbf16>
    %cst_18 = arith.constant dense<0.000000e+00> : vector<16x32xf32>
    %83 = tpu.matmul %81, %82, %cst_18 {dimension_numbers = #tpu.dot_dimension_numbers<[1], [0], [0], [1], [0, 0, 1, 1], [], []>} : vector<16x160xbf16>, vector<160x32xbf16>, vector<16x32xf32> -> vector<16x32xf32>
    %c0_19 = arith.constant 0 : index
    %c0_20 = arith.constant 0 : index
    %84 = vector.load %arg9[%c0_19, %c0_20] : memref<1x32xf32, #tpu.memory_space<vmem>>, vector<1x32xf32>
    %85 = vector.broadcast %84 : vector<1x32xf32> to vector<16x32xf32>
    %86 = arith.addf %83, %85 : vector<16x32xf32>
    %cst_21 = arith.constant 0.000000e+00 : f32
    %87 = vector.broadcast %cst_21 : f32 to vector<16x32xf32>
    %88 = arith.maximumf %86, %87 : vector<16x32xf32>
    %89 = tpu.concatenate %88, %34 in 1 : vector<16x32xf32>, vector<16x48xf32> -> vector<16x80xf32>
    %c0_22 = arith.constant 0 : index
    %c0_23 = arith.constant 0 : index
    %90 = vector.load %arg10[%c0_22, %c0_23] : memref<80x320xf32, #tpu.memory_space<vmem>>, vector<80x320xf32>
    %91 = arith.truncf %89 : vector<16x80xf32> to vector<16x80xbf16>
    %92 = arith.truncf %90 : vector<80x320xf32> to vector<80x320xbf16>
    %cst_24 = arith.constant dense<0.000000e+00> : vector<16x320xf32>
    %93 = tpu.matmul %91, %92, %cst_24 {dimension_numbers = #tpu.dot_dimension_numbers<[1], [0], [0], [1], [0, 0, 1, 1], [], []>} : vector<16x80xbf16>, vector<80x320xbf16>, vector<16x320xf32> -> vector<16x320xf32>
    %c0_25 = arith.constant 0 : index
    %c0_26 = arith.constant 0 : index
    %94 = vector.load %arg12[%c0_25, %c0_26] : memref<1x320xf32, #tpu.memory_space<vmem>>, vector<1x320xf32>
    %95 = vector.broadcast %94 : vector<1x320xf32> to vector<16x320xf32>
    %96 = arith.addf %93, %95 : vector<16x320xf32>
    %c0_27 = arith.constant 0 : index
    %c0_28 = arith.constant 0 : index
    %97 = vector.load %arg20[%c0_27, %c0_28] : memref<16x320xf32, #tpu.memory_space<vmem>>, vector<16x320xf32>
    tpu.vector_store %arg20[%c0_27, %c0_28], %96 {strides = array<i32>} : memref<16x320xf32, #tpu.memory_space<vmem>>, vector<16x320xf32>,
    %cst_29 = arith.constant 0.000000e+00 : f32
    %98 = vector.broadcast %cst_29 : f32 to vector<2x80xf32>
    %cst_30 = arith.constant 0.000000e+00 : f32
    %99 = vector.broadcast %cst_30 : f32 to vector<2x80xf32>
    %c0_i32 = arith.constant 0 : i32
    %c0_i32_31 = arith.constant 0 : i32
    %100 = arith.addi %c0_i32_31, %c0_i32 : i32
    %101 = arith.index_cast %100 : i32 to index
    %c0_32 = arith.constant 0 : index
    %102 = vector.load %arg20[%101, %c0_32] : memref<16x320xf32, #tpu.memory_space<vmem>>, vector<1x320xf32>
    %c8_i32 = arith.constant 8 : i32
    %103 = arith.addi %c8_i32, %c0_i32 : i32
    %104 = arith.index_cast %103 : i32 to index
    %c0_33 = arith.constant 0 : index
    %105 = vector.load %arg20[%104, %c0_33] : memref<16x320xf32, #tpu.memory_space<vmem>>, vector<1x320xf32>
    %106 = tpu.concatenate %102, %105 in 0 : vector<1x320xf32>, vector<1x320xf32> -> vector<2x320xf32>
    %c0_34 = arith.constant 0 : index
    %c0_35 = arith.constant 0 : index
    %107 = vector.load %arg11[%c0_34, %c0_35] : memref<80x320xf32, #tpu.memory_space<vmem>>, vector<80x320xf32>
    %108 = arith.truncf %98 : vector<2x80xf32> to vector<2x80xbf16>
    %109 = arith.truncf %107 : vector<80x320xf32> to vector<80x320xbf16>
    %cst_36 = arith.constant dense<0.000000e+00> : vector<2x320xf32>
    %110 = tpu.matmul %108, %109, %cst_36 {dimension_numbers = #tpu.dot_dimension_numbers<[1], [0], [0], [1], [0, 0, 1, 1], [], []>} : vector<2x80xbf16>, vector<80x320xbf16>, vector<2x320xf32> -> vector<2x320xf32>
    %111 = arith.addf %106, %110 : vector<2x320xf32>
    %112 = vector.extract_strided_slice %111 {offsets = [0, 0], sizes = [2, 80], strides = [1, 1]} : vector<2x320xf32> to vector<2x80xf32>
    %113 = arith.negf %112 : vector<2x80xf32>
    %114 = math.exp %113 : vector<2x80xf32>
    %cst_37 = arith.constant 1.000000e+00 : f32
    %115 = vector.broadcast %cst_37 : f32 to vector<2x80xf32>
    %116 = arith.addf %115, %114 : vector<2x80xf32>
    %117 = arith.divf %115, %116 : vector<2x80xf32>
    %118 = vector.extract_strided_slice %111 {offsets = [0, 80], sizes = [2, 80], strides = [1, 1]} : vector<2x320xf32> to vector<2x80xf32>
    %119 = arith.negf %118 : vector<2x80xf32>
    %120 = math.exp %119 : vector<2x80xf32>
    %cst_38 = arith.constant 1.000000e+00 : f32
    %121 = vector.broadcast %cst_38 : f32 to vector<2x80xf32>
    %122 = arith.addf %121, %120 : vector<2x80xf32>
    %123 = arith.divf %121, %122 : vector<2x80xf32>
    %124 = vector.extract_strided_slice %111 {offsets = [0, 160], sizes = [2, 80], strides = [1, 1]} : vector<2x320xf32> to vector<2x80xf32>
    %125 = math.tanh %124 : vector<2x80xf32>
    %126 = vector.extract_strided_slice %111 {offsets = [0, 240], sizes = [2, 80], strides = [1, 1]} : vector<2x320xf32> to vector<2x80xf32>
    %127 = arith.negf %126 : vector<2x80xf32>
    %128 = math.exp %127 : vector<2x80xf32>
    %cst_39 = arith.constant 1.000000e+00 : f32
    %129 = vector.broadcast %cst_39 : f32 to vector<2x80xf32>
    %130 = arith.addf %129, %128 : vector<2x80xf32>
    %131 = arith.divf %129, %130 : vector<2x80xf32>
    %132 = arith.mulf %123, %99 : vector<2x80xf32>
    %133 = arith.mulf %117, %125 : vector<2x80xf32>
    %134 = arith.addf %132, %133 : vector<2x80xf32>
    %135 = math.tanh %134 : vector<2x80xf32>
    %136 = arith.mulf %131, %135 : vector<2x80xf32>
    %c1_i32 = arith.constant 1 : i32
    %c0_i32_40 = arith.constant 0 : i32
    %137 = arith.addi %c0_i32_40, %c1_i32 : i32
    %138 = arith.index_cast %137 : i32 to index
    %c0_41 = arith.constant 0 : index
    %139 = vector.load %arg20[%138, %c0_41] : memref<16x320xf32, #tpu.memory_space<vmem>>, vector<1x320xf32>
    %c8_i32_42 = arith.constant 8 : i32
    %140 = arith.addi %c8_i32_42, %c1_i32 : i32
    %141 = arith.index_cast %140 : i32 to index
    %c0_43 = arith.constant 0 : index
    %142 = vector.load %arg20[%141, %c0_43] : memref<16x320xf32, #tpu.memory_space<vmem>>, vector<1x320xf32>
    %143 = tpu.concatenate %139, %142 in 0 : vector<1x320xf32>, vector<1x320xf32> -> vector<2x320xf32>
    %c0_44 = arith.constant 0 : index
    %c0_45 = arith.constant 0 : index
    %144 = vector.load %arg11[%c0_44, %c0_45] : memref<80x320xf32, #tpu.memory_space<vmem>>, vector<80x320xf32>
    %145 = arith.truncf %136 : vector<2x80xf32> to vector<2x80xbf16>
    %146 = arith.truncf %144 : vector<80x320xf32> to vector<80x320xbf16>
    %cst_46 = arith.constant dense<0.000000e+00> : vector<2x320xf32>
    %147 = tpu.matmul %145, %146, %cst_46 {dimension_numbers = #tpu.dot_dimension_numbers<[1], [0], [0], [1], [0, 0, 1, 1], [], []>} : vector<2x80xbf16>, vector<80x320xbf16>, vector<2x320xf32> -> vector<2x320xf32>
    %148 = arith.addf %143, %147 : vector<2x320xf32>
    %149 = vector.extract_strided_slice %148 {offsets = [0, 0], sizes = [2, 80], strides = [1, 1]} : vector<2x320xf32> to vector<2x80xf32>
    %150 = arith.negf %149 : vector<2x80xf32>
    %151 = math.exp %150 : vector<2x80xf32>
    %cst_47 = arith.constant 1.000000e+00 : f32
    %152 = vector.broadcast %cst_47 : f32 to vector<2x80xf32>
    %153 = arith.addf %152, %151 : vector<2x80xf32>
    %154 = arith.divf %152, %153 : vector<2x80xf32>
    %155 = vector.extract_strided_slice %148 {offsets = [0, 80], sizes = [2, 80], strides = [1, 1]} : vector<2x320xf32> to vector<2x80xf32>
    %156 = arith.negf %155 : vector<2x80xf32>
    %157 = math.exp %156 : vector<2x80xf32>
    %cst_48 = arith.constant 1.000000e+00 : f32
    %158 = vector.broadcast %cst_48 : f32 to vector<2x80xf32>
    %159 = arith.addf %158, %157 : vector<2x80xf32>
    %160 = arith.divf %158, %159 : vector<2x80xf32>
    %161 = vector.extract_strided_slice %148 {offsets = [0, 160], sizes = [2, 80], strides = [1, 1]} : vector<2x320xf32> to vector<2x80xf32>
    %162 = math.tanh %161 : vector<2x80xf32>
    %163 = vector.extract_strided_slice %148 {offsets = [0, 240], sizes = [2, 80], strides = [1, 1]} : vector<2x320xf32> to vector<2x80xf32>
    %164 = arith.negf %163 : vector<2x80xf32>
    %165 = math.exp %164 : vector<2x80xf32>
    %cst_49 = arith.constant 1.000000e+00 : f32
    %166 = vector.broadcast %cst_49 : f32 to vector<2x80xf32>
    %167 = arith.addf %166, %165 : vector<2x80xf32>
    %168 = arith.divf %166, %167 : vector<2x80xf32>
    %169 = arith.mulf %160, %134 : vector<2x80xf32>
    %170 = arith.mulf %154, %162 : vector<2x80xf32>
    %171 = arith.addf %169, %170 : vector<2x80xf32>
    %172 = math.tanh %171 : vector<2x80xf32>
    %173 = arith.mulf %168, %172 : vector<2x80xf32>
    %c2_i32 = arith.constant 2 : i32
    %c0_i32_50 = arith.constant 0 : i32
    %174 = arith.addi %c0_i32_50, %c2_i32 : i32
    %175 = arith.index_cast %174 : i32 to index
    %c0_51 = arith.constant 0 : index
    %176 = vector.load %arg20[%175, %c0_51] : memref<16x320xf32, #tpu.memory_space<vmem>>, vector<1x320xf32>
    %c8_i32_52 = arith.constant 8 : i32
    %177 = arith.addi %c8_i32_52, %c2_i32 : i32
    %178 = arith.index_cast %177 : i32 to index
    %c0_53 = arith.constant 0 : index
    %179 = vector.load %arg20[%178, %c0_53] : memref<16x320xf32, #tpu.memory_space<vmem>>, vector<1x320xf32>
    %180 = tpu.concatenate %176, %179 in 0 : vector<1x320xf32>, vector<1x320xf32> -> vector<2x320xf32>
    %c0_54 = arith.constant 0 : index
    %c0_55 = arith.constant 0 : index
    %181 = vector.load %arg11[%c0_54, %c0_55] : memref<80x320xf32, #tpu.memory_space<vmem>>, vector<80x320xf32>
    %182 = arith.truncf %173 : vector<2x80xf32> to vector<2x80xbf16>
    %183 = arith.truncf %181 : vector<80x320xf32> to vector<80x320xbf16>
    %cst_56 = arith.constant dense<0.000000e+00> : vector<2x320xf32>
    %184 = tpu.matmul %182, %183, %cst_56 {dimension_numbers = #tpu.dot_dimension_numbers<[1], [0], [0], [1], [0, 0, 1, 1], [], []>} : vector<2x80xbf16>, vector<80x320xbf16>, vector<2x320xf32> -> vector<2x320xf32>
    %185 = arith.addf %180, %184 : vector<2x320xf32>
    %186 = vector.extract_strided_slice %185 {offsets = [0, 0], sizes = [2, 80], strides = [1, 1]} : vector<2x320xf32> to vector<2x80xf32>
    %187 = arith.negf %186 : vector<2x80xf32>
    %188 = math.exp %187 : vector<2x80xf32>
    %cst_57 = arith.constant 1.000000e+00 : f32
    %189 = vector.broadcast %cst_57 : f32 to vector<2x80xf32>
    %190 = arith.addf %189, %188 : vector<2x80xf32>
    %191 = arith.divf %189, %190 : vector<2x80xf32>
    %192 = vector.extract_strided_slice %185 {offsets = [0, 80], sizes = [2, 80], strides = [1, 1]} : vector<2x320xf32> to vector<2x80xf32>
    %193 = arith.negf %192 : vector<2x80xf32>
    %194 = math.exp %193 : vector<2x80xf32>
    %cst_58 = arith.constant 1.000000e+00 : f32
    %195 = vector.broadcast %cst_58 : f32 to vector<2x80xf32>
    %196 = arith.addf %195, %194 : vector<2x80xf32>
    %197 = arith.divf %195, %196 : vector<2x80xf32>
    %198 = vector.extract_strided_slice %185 {offsets = [0, 160], sizes = [2, 80], strides = [1, 1]} : vector<2x320xf32> to vector<2x80xf32>
    %199 = math.tanh %198 : vector<2x80xf32>
    %200 = vector.extract_strided_slice %185 {offsets = [0, 240], sizes = [2, 80], strides = [1, 1]} : vector<2x320xf32> to vector<2x80xf32>
    %201 = arith.negf %200 : vector<2x80xf32>
    %202 = math.exp %201 : vector<2x80xf32>
    %cst_59 = arith.constant 1.000000e+00 : f32
    %203 = vector.broadcast %cst_59 : f32 to vector<2x80xf32>
    %204 = arith.addf %203, %202 : vector<2x80xf32>
    %205 = arith.divf %203, %204 : vector<2x80xf32>
    %206 = arith.mulf %197, %171 : vector<2x80xf32>
    %207 = arith.mulf %191, %199 : vector<2x80xf32>
    %208 = arith.addf %206, %207 : vector<2x80xf32>
    %209 = math.tanh %208 : vector<2x80xf32>
    %210 = arith.mulf %205, %209 : vector<2x80xf32>
    %c3_i32 = arith.constant 3 : i32
    %c0_i32_60 = arith.constant 0 : i32
    %211 = arith.addi %c0_i32_60, %c3_i32 : i32
    %212 = arith.index_cast %211 : i32 to index
    %c0_61 = arith.constant 0 : index
    %213 = vector.load %arg20[%212, %c0_61] : memref<16x320xf32, #tpu.memory_space<vmem>>, vector<1x320xf32>
    %c8_i32_62 = arith.constant 8 : i32
    %214 = arith.addi %c8_i32_62, %c3_i32 : i32
    %215 = arith.index_cast %214 : i32 to index
    %c0_63 = arith.constant 0 : index
    %216 = vector.load %arg20[%215, %c0_63] : memref<16x320xf32, #tpu.memory_space<vmem>>, vector<1x320xf32>
    %217 = tpu.concatenate %213, %216 in 0 : vector<1x320xf32>, vector<1x320xf32> -> vector<2x320xf32>
    %c0_64 = arith.constant 0 : index
    %c0_65 = arith.constant 0 : index
    %218 = vector.load %arg11[%c0_64, %c0_65] : memref<80x320xf32, #tpu.memory_space<vmem>>, vector<80x320xf32>
    %219 = arith.truncf %210 : vector<2x80xf32> to vector<2x80xbf16>
    %220 = arith.truncf %218 : vector<80x320xf32> to vector<80x320xbf16>
    %cst_66 = arith.constant dense<0.000000e+00> : vector<2x320xf32>
    %221 = tpu.matmul %219, %220, %cst_66 {dimension_numbers = #tpu.dot_dimension_numbers<[1], [0], [0], [1], [0, 0, 1, 1], [], []>} : vector<2x80xbf16>, vector<80x320xbf16>, vector<2x320xf32> -> vector<2x320xf32>
    %222 = arith.addf %217, %221 : vector<2x320xf32>
    %223 = vector.extract_strided_slice %222 {offsets = [0, 0], sizes = [2, 80], strides = [1, 1]} : vector<2x320xf32> to vector<2x80xf32>
    %224 = arith.negf %223 : vector<2x80xf32>
    %225 = math.exp %224 : vector<2x80xf32>
    %cst_67 = arith.constant 1.000000e+00 : f32
    %226 = vector.broadcast %cst_67 : f32 to vector<2x80xf32>
    %227 = arith.addf %226, %225 : vector<2x80xf32>
    %228 = arith.divf %226, %227 : vector<2x80xf32>
    %229 = vector.extract_strided_slice %222 {offsets = [0, 80], sizes = [2, 80], strides = [1, 1]} : vector<2x320xf32> to vector<2x80xf32>
    %230 = arith.negf %229 : vector<2x80xf32>
    %231 = math.exp %230 : vector<2x80xf32>
    %cst_68 = arith.constant 1.000000e+00 : f32
    %232 = vector.broadcast %cst_68 : f32 to vector<2x80xf32>
    %233 = arith.addf %232, %231 : vector<2x80xf32>
    %234 = arith.divf %232, %233 : vector<2x80xf32>
    %235 = vector.extract_strided_slice %222 {offsets = [0, 160], sizes = [2, 80], strides = [1, 1]} : vector<2x320xf32> to vector<2x80xf32>
    %236 = math.tanh %235 : vector<2x80xf32>
    %237 = vector.extract_strided_slice %222 {offsets = [0, 240], sizes = [2, 80], strides = [1, 1]} : vector<2x320xf32> to vector<2x80xf32>
    %238 = arith.negf %237 : vector<2x80xf32>
    %239 = math.exp %238 : vector<2x80xf32>
    %cst_69 = arith.constant 1.000000e+00 : f32
    %240 = vector.broadcast %cst_69 : f32 to vector<2x80xf32>
    %241 = arith.addf %240, %239 : vector<2x80xf32>
    %242 = arith.divf %240, %241 : vector<2x80xf32>
    %243 = arith.mulf %234, %208 : vector<2x80xf32>
    %244 = arith.mulf %228, %236 : vector<2x80xf32>
    %245 = arith.addf %243, %244 : vector<2x80xf32>
    %246 = math.tanh %245 : vector<2x80xf32>
    %247 = arith.mulf %242, %246 : vector<2x80xf32>
    %c4_i32 = arith.constant 4 : i32
    %c0_i32_70 = arith.constant 0 : i32
    %248 = arith.addi %c0_i32_70, %c4_i32 : i32
    %249 = arith.index_cast %248 : i32 to index
    %c0_71 = arith.constant 0 : index
    %250 = vector.load %arg20[%249, %c0_71] : memref<16x320xf32, #tpu.memory_space<vmem>>, vector<1x320xf32>
    %c8_i32_72 = arith.constant 8 : i32
    %251 = arith.addi %c8_i32_72, %c4_i32 : i32
    %252 = arith.index_cast %251 : i32 to index
    %c0_73 = arith.constant 0 : index
    %253 = vector.load %arg20[%252, %c0_73] : memref<16x320xf32, #tpu.memory_space<vmem>>, vector<1x320xf32>
    %254 = tpu.concatenate %250, %253 in 0 : vector<1x320xf32>, vector<1x320xf32> -> vector<2x320xf32>
    %c0_74 = arith.constant 0 : index
    %c0_75 = arith.constant 0 : index
    %255 = vector.load %arg11[%c0_74, %c0_75] : memref<80x320xf32, #tpu.memory_space<vmem>>, vector<80x320xf32>
    %256 = arith.truncf %247 : vector<2x80xf32> to vector<2x80xbf16>
    %257 = arith.truncf %255 : vector<80x320xf32> to vector<80x320xbf16>
    %cst_76 = arith.constant dense<0.000000e+00> : vector<2x320xf32>
    %258 = tpu.matmul %256, %257, %cst_76 {dimension_numbers = #tpu.dot_dimension_numbers<[1], [0], [0], [1], [0, 0, 1, 1], [], []>} : vector<2x80xbf16>, vector<80x320xbf16>, vector<2x320xf32> -> vector<2x320xf32>
    %259 = arith.addf %254, %258 : vector<2x320xf32>
    %260 = vector.extract_strided_slice %259 {offsets = [0, 0], sizes = [2, 80], strides = [1, 1]} : vector<2x320xf32> to vector<2x80xf32>
    %261 = arith.negf %260 : vector<2x80xf32>
    %262 = math.exp %261 : vector<2x80xf32>
    %cst_77 = arith.constant 1.000000e+00 : f32
    %263 = vector.broadcast %cst_77 : f32 to vector<2x80xf32>
    %264 = arith.addf %263, %262 : vector<2x80xf32>
    %265 = arith.divf %263, %264 : vector<2x80xf32>
    %266 = vector.extract_strided_slice %259 {offsets = [0, 80], sizes = [2, 80], strides = [1, 1]} : vector<2x320xf32> to vector<2x80xf32>
    %267 = arith.negf %266 : vector<2x80xf32>
    %268 = math.exp %267 : vector<2x80xf32>
    %cst_78 = arith.constant 1.000000e+00 : f32
    %269 = vector.broadcast %cst_78 : f32 to vector<2x80xf32>
    %270 = arith.addf %269, %268 : vector<2x80xf32>
    %271 = arith.divf %269, %270 : vector<2x80xf32>
    %272 = vector.extract_strided_slice %259 {offsets = [0, 160], sizes = [2, 80], strides = [1, 1]} : vector<2x320xf32> to vector<2x80xf32>
    %273 = math.tanh %272 : vector<2x80xf32>
    %274 = vector.extract_strided_slice %259 {offsets = [0, 240], sizes = [2, 80], strides = [1, 1]} : vector<2x320xf32> to vector<2x80xf32>
    %275 = arith.negf %274 : vector<2x80xf32>
    %276 = math.exp %275 : vector<2x80xf32>
    %cst_79 = arith.constant 1.000000e+00 : f32
    %277 = vector.broadcast %cst_79 : f32 to vector<2x80xf32>
    %278 = arith.addf %277, %276 : vector<2x80xf32>
    %279 = arith.divf %277, %278 : vector<2x80xf32>
    %280 = arith.mulf %271, %245 : vector<2x80xf32>
    %281 = arith.mulf %265, %273 : vector<2x80xf32>
    %282 = arith.addf %280, %281 : vector<2x80xf32>
    %283 = math.tanh %282 : vector<2x80xf32>
    %284 = arith.mulf %279, %283 : vector<2x80xf32>
    %c5_i32 = arith.constant 5 : i32
    %c0_i32_80 = arith.constant 0 : i32
    %285 = arith.addi %c0_i32_80, %c5_i32 : i32
    %286 = arith.index_cast %285 : i32 to index
    %c0_81 = arith.constant 0 : index
    %287 = vector.load %arg20[%286, %c0_81] : memref<16x320xf32, #tpu.memory_space<vmem>>, vector<1x320xf32>
    %c8_i32_82 = arith.constant 8 : i32
    %288 = arith.addi %c8_i32_82, %c5_i32 : i32
    %289 = arith.index_cast %288 : i32 to index
    %c0_83 = arith.constant 0 : index
    %290 = vector.load %arg20[%289, %c0_83] : memref<16x320xf32, #tpu.memory_space<vmem>>, vector<1x320xf32>
    %291 = tpu.concatenate %287, %290 in 0 : vector<1x320xf32>, vector<1x320xf32> -> vector<2x320xf32>
    %c0_84 = arith.constant 0 : index
    %c0_85 = arith.constant 0 : index
    %292 = vector.load %arg11[%c0_84, %c0_85] : memref<80x320xf32, #tpu.memory_space<vmem>>, vector<80x320xf32>
    %293 = arith.truncf %284 : vector<2x80xf32> to vector<2x80xbf16>
    %294 = arith.truncf %292 : vector<80x320xf32> to vector<80x320xbf16>
    %cst_86 = arith.constant dense<0.000000e+00> : vector<2x320xf32>
    %295 = tpu.matmul %293, %294, %cst_86 {dimension_numbers = #tpu.dot_dimension_numbers<[1], [0], [0], [1], [0, 0, 1, 1], [], []>} : vector<2x80xbf16>, vector<80x320xbf16>, vector<2x320xf32> -> vector<2x320xf32>
    %296 = arith.addf %291, %295 : vector<2x320xf32>
    %297 = vector.extract_strided_slice %296 {offsets = [0, 0], sizes = [2, 80], strides = [1, 1]} : vector<2x320xf32> to vector<2x80xf32>
    %298 = arith.negf %297 : vector<2x80xf32>
    %299 = math.exp %298 : vector<2x80xf32>
    %cst_87 = arith.constant 1.000000e+00 : f32
    %300 = vector.broadcast %cst_87 : f32 to vector<2x80xf32>
    %301 = arith.addf %300, %299 : vector<2x80xf32>
    %302 = arith.divf %300, %301 : vector<2x80xf32>
    %303 = vector.extract_strided_slice %296 {offsets = [0, 80], sizes = [2, 80], strides = [1, 1]} : vector<2x320xf32> to vector<2x80xf32>
    %304 = arith.negf %303 : vector<2x80xf32>
    %305 = math.exp %304 : vector<2x80xf32>
    %cst_88 = arith.constant 1.000000e+00 : f32
    %306 = vector.broadcast %cst_88 : f32 to vector<2x80xf32>
    %307 = arith.addf %306, %305 : vector<2x80xf32>
    %308 = arith.divf %306, %307 : vector<2x80xf32>
    %309 = vector.extract_strided_slice %296 {offsets = [0, 160], sizes = [2, 80], strides = [1, 1]} : vector<2x320xf32> to vector<2x80xf32>
    %310 = math.tanh %309 : vector<2x80xf32>
    %311 = vector.extract_strided_slice %296 {offsets = [0, 240], sizes = [2, 80], strides = [1, 1]} : vector<2x320xf32> to vector<2x80xf32>
    %312 = arith.negf %311 : vector<2x80xf32>
    %313 = math.exp %312 : vector<2x80xf32>
    %cst_89 = arith.constant 1.000000e+00 : f32
    %314 = vector.broadcast %cst_89 : f32 to vector<2x80xf32>
    %315 = arith.addf %314, %313 : vector<2x80xf32>
    %316 = arith.divf %314, %315 : vector<2x80xf32>
    %317 = arith.mulf %308, %282 : vector<2x80xf32>
    %318 = arith.mulf %302, %310 : vector<2x80xf32>
    %319 = arith.addf %317, %318 : vector<2x80xf32>
    %320 = math.tanh %319 : vector<2x80xf32>
    %321 = arith.mulf %316, %320 : vector<2x80xf32>
    %c6_i32 = arith.constant 6 : i32
    %c0_i32_90 = arith.constant 0 : i32
    %322 = arith.addi %c0_i32_90, %c6_i32 : i32
    %323 = arith.index_cast %322 : i32 to index
    %c0_91 = arith.constant 0 : index
    %324 = vector.load %arg20[%323, %c0_91] : memref<16x320xf32, #tpu.memory_space<vmem>>, vector<1x320xf32>
    %c8_i32_92 = arith.constant 8 : i32
    %325 = arith.addi %c8_i32_92, %c6_i32 : i32
    %326 = arith.index_cast %325 : i32 to index
    %c0_93 = arith.constant 0 : index
    %327 = vector.load %arg20[%326, %c0_93] : memref<16x320xf32, #tpu.memory_space<vmem>>, vector<1x320xf32>
    %328 = tpu.concatenate %324, %327 in 0 : vector<1x320xf32>, vector<1x320xf32> -> vector<2x320xf32>
    %c0_94 = arith.constant 0 : index
    %c0_95 = arith.constant 0 : index
    %329 = vector.load %arg11[%c0_94, %c0_95] : memref<80x320xf32, #tpu.memory_space<vmem>>, vector<80x320xf32>
    %330 = arith.truncf %321 : vector<2x80xf32> to vector<2x80xbf16>
    %331 = arith.truncf %329 : vector<80x320xf32> to vector<80x320xbf16>
    %cst_96 = arith.constant dense<0.000000e+00> : vector<2x320xf32>
    %332 = tpu.matmul %330, %331, %cst_96 {dimension_numbers = #tpu.dot_dimension_numbers<[1], [0], [0], [1], [0, 0, 1, 1], [], []>} : vector<2x80xbf16>, vector<80x320xbf16>, vector<2x320xf32> -> vector<2x320xf32>
    %333 = arith.addf %328, %332 : vector<2x320xf32>
    %334 = vector.extract_strided_slice %333 {offsets = [0, 0], sizes = [2, 80], strides = [1, 1]} : vector<2x320xf32> to vector<2x80xf32>
    %335 = arith.negf %334 : vector<2x80xf32>
    %336 = math.exp %335 : vector<2x80xf32>
    %cst_97 = arith.constant 1.000000e+00 : f32
    %337 = vector.broadcast %cst_97 : f32 to vector<2x80xf32>
    %338 = arith.addf %337, %336 : vector<2x80xf32>
    %339 = arith.divf %337, %338 : vector<2x80xf32>
    %340 = vector.extract_strided_slice %333 {offsets = [0, 80], sizes = [2, 80], strides = [1, 1]} : vector<2x320xf32> to vector<2x80xf32>
    %341 = arith.negf %340 : vector<2x80xf32>
    %342 = math.exp %341 : vector<2x80xf32>
    %cst_98 = arith.constant 1.000000e+00 : f32
    %343 = vector.broadcast %cst_98 : f32 to vector<2x80xf32>
    %344 = arith.addf %343, %342 : vector<2x80xf32>
    %345 = arith.divf %343, %344 : vector<2x80xf32>
    %346 = vector.extract_strided_slice %333 {offsets = [0, 160], sizes = [2, 80], strides = [1, 1]} : vector<2x320xf32> to vector<2x80xf32>
    %347 = math.tanh %346 : vector<2x80xf32>
    %348 = vector.extract_strided_slice %333 {offsets = [0, 240], sizes = [2, 80], strides = [1, 1]} : vector<2x320xf32> to vector<2x80xf32>
    %349 = arith.negf %348 : vector<2x80xf32>
    %350 = math.exp %349 : vector<2x80xf32>
    %cst_99 = arith.constant 1.000000e+00 : f32
    %351 = vector.broadcast %cst_99 : f32 to vector<2x80xf32>
    %352 = arith.addf %351, %350 : vector<2x80xf32>
    %353 = arith.divf %351, %352 : vector<2x80xf32>
    %354 = arith.mulf %345, %319 : vector<2x80xf32>
    %355 = arith.mulf %339, %347 : vector<2x80xf32>
    %356 = arith.addf %354, %355 : vector<2x80xf32>
    %357 = math.tanh %356 : vector<2x80xf32>
    %358 = arith.mulf %353, %357 : vector<2x80xf32>
    %c7_i32 = arith.constant 7 : i32
    %c0_i32_100 = arith.constant 0 : i32
    %359 = arith.addi %c0_i32_100, %c7_i32 : i32
    %360 = arith.index_cast %359 : i32 to index
    %c0_101 = arith.constant 0 : index
    %361 = vector.load %arg20[%360, %c0_101] : memref<16x320xf32, #tpu.memory_space<vmem>>, vector<1x320xf32>
    %c8_i32_102 = arith.constant 8 : i32
    %362 = arith.addi %c8_i32_102, %c7_i32 : i32
    %363 = arith.index_cast %362 : i32 to index
    %c0_103 = arith.constant 0 : index
    %364 = vector.load %arg20[%363, %c0_103] : memref<16x320xf32, #tpu.memory_space<vmem>>, vector<1x320xf32>
    %365 = tpu.concatenate %361, %364 in 0 : vector<1x320xf32>, vector<1x320xf32> -> vector<2x320xf32>
    %c0_104 = arith.constant 0 : index
    %c0_105 = arith.constant 0 : index
    %366 = vector.load %arg11[%c0_104, %c0_105] : memref<80x320xf32, #tpu.memory_space<vmem>>, vector<80x320xf32>
    %367 = arith.truncf %358 : vector<2x80xf32> to vector<2x80xbf16>
    %368 = arith.truncf %366 : vector<80x320xf32> to vector<80x320xbf16>
    %cst_106 = arith.constant dense<0.000000e+00> : vector<2x320xf32>
    %369 = tpu.matmul %367, %368, %cst_106 {dimension_numbers = #tpu.dot_dimension_numbers<[1], [0], [0], [1], [0, 0, 1, 1], [], []>} : vector<2x80xbf16>, vector<80x320xbf16>, vector<2x320xf32> -> vector<2x320xf32>
    %370 = arith.addf %365, %369 : vector<2x320xf32>
    %371 = vector.extract_strided_slice %370 {offsets = [0, 0], sizes = [2, 80], strides = [1, 1]} : vector<2x320xf32> to vector<2x80xf32>
    %372 = arith.negf %371 : vector<2x80xf32>
    %373 = math.exp %372 : vector<2x80xf32>
    %cst_107 = arith.constant 1.000000e+00 : f32
    %374 = vector.broadcast %cst_107 : f32 to vector<2x80xf32>
    %375 = arith.addf %374, %373 : vector<2x80xf32>
    %376 = arith.divf %374, %375 : vector<2x80xf32>
    %377 = vector.extract_strided_slice %370 {offsets = [0, 80], sizes = [2, 80], strides = [1, 1]} : vector<2x320xf32> to vector<2x80xf32>
    %378 = arith.negf %377 : vector<2x80xf32>
    %379 = math.exp %378 : vector<2x80xf32>
    %cst_108 = arith.constant 1.000000e+00 : f32
    %380 = vector.broadcast %cst_108 : f32 to vector<2x80xf32>
    %381 = arith.addf %380, %379 : vector<2x80xf32>
    %382 = arith.divf %380, %381 : vector<2x80xf32>
    %383 = vector.extract_strided_slice %370 {offsets = [0, 160], sizes = [2, 80], strides = [1, 1]} : vector<2x320xf32> to vector<2x80xf32>
    %384 = math.tanh %383 : vector<2x80xf32>
    %385 = vector.extract_strided_slice %370 {offsets = [0, 240], sizes = [2, 80], strides = [1, 1]} : vector<2x320xf32> to vector<2x80xf32>
    %386 = arith.negf %385 : vector<2x80xf32>
    %387 = math.exp %386 : vector<2x80xf32>
    %cst_109 = arith.constant 1.000000e+00 : f32
    %388 = vector.broadcast %cst_109 : f32 to vector<2x80xf32>
    %389 = arith.addf %388, %387 : vector<2x80xf32>
    %390 = arith.divf %388, %389 : vector<2x80xf32>
    %391 = arith.mulf %382, %356 : vector<2x80xf32>
    %392 = arith.mulf %376, %384 : vector<2x80xf32>
    %393 = arith.addf %391, %392 : vector<2x80xf32>
    %394 = math.tanh %393 : vector<2x80xf32>
    %395 = arith.mulf %390, %394 : vector<2x80xf32>
    %c8_i32_110 = arith.constant 8 : i32
    %c0_111 = arith.constant 0 : index
    %c0_112 = arith.constant 0 : index
    %396 = vector.load %arg13[%c0_111, %c0_112] : memref<80x128xf32, #tpu.memory_space<vmem>>, vector<80x128xf32>
    %397 = arith.truncf %395 : vector<2x80xf32> to vector<2x80xbf16>
    %398 = arith.truncf %396 : vector<80x128xf32> to vector<80x128xbf16>
    %cst_113 = arith.constant dense<0.000000e+00> : vector<2x128xf32>
    %399 = tpu.matmul %397, %398, %cst_113 {dimension_numbers = #tpu.dot_dimension_numbers<[1], [0], [0], [1], [0, 0, 1, 1], [], []>} : vector<2x80xbf16>, vector<80x128xbf16>, vector<2x128xf32> -> vector<2x128xf32>
    %c0_114 = arith.constant 0 : index
    %c0_115 = arith.constant 0 : index
    %400 = vector.load %arg16[%c0_114, %c0_115] : memref<1x128xf32, #tpu.memory_space<vmem>>, vector<1x128xf32>
    %401 = vector.broadcast %400 : vector<1x128xf32> to vector<2x128xf32>
    %402 = arith.addf %399, %401 : vector<2x128xf32>
    %c0_116 = arith.constant 0 : index
    %c0_117 = arith.constant 0 : index
    %403 = vector.load %arg21[%c0_116, %c0_117] : memref<2x128xf32, #tpu.memory_space<vmem>>, vector<2x128xf32>
    tpu.vector_store %arg21[%c0_116, %c0_117], %402 {strides = array<i32>} : memref<2x128xf32, #tpu.memory_space<vmem>>, vector<2x128xf32>,
    %404 = tpu.iota {dimensions = array<i32: 1>} : vector<1x8xi32>
    %405 = tpu.iota {dimensions = array<i32: 0>} : vector<8x1xi32>
    %cst_118 = arith.constant 0.000000e+00 : f32
    %406 = vector.broadcast %cst_118 : f32 to vector<1x32xf32>
    %cst_119 = arith.constant 0.000000e+00 : f32
    %407 = vector.broadcast %cst_119 : f32 to vector<1x32xf32>
    %c0_i32_120 = arith.constant 0 : i32
    %408 = vector.broadcast %c0_i32_120 : i32 to vector<1x1xi32>
    %cst_121 = arith.constant 0.000000e+00 : f32
    %409 = vector.broadcast %cst_121 : f32 to vector<1x1xf32>
    %c0_i32_122 = arith.constant 0 : i32
    %410 = arith.index_cast %c0_i32_122 : i32 to index
    %c0_123 = arith.constant 0 : index
    %411 = vector.load %arg21[%410, %c0_123] : memref<2x128xf32, #tpu.memory_space<vmem>>, vector<1x128xf32>
    %412 = vector.broadcast %408 : vector<1x1xi32> to vector<8x1xi32>
    %413 = arith.cmpi eq, %405, %412 : vector<8x1xi32>
    %c0_124 = arith.constant 0 : index
    %c0_125 = arith.constant 0 : index
    %414 = vector.load %arg14[%c0_124, %c0_125] : memref<8x128xf32, #tpu.memory_space<vmem>>, vector<8x128xf32>
    %cst_126 = arith.constant 0.000000e+00 : f32
    %415 = vector.shape_cast %413 : vector<8x1xi1> to vector<8x1xi1>
    %416 = vector.broadcast %415 : vector<8x1xi1> to vector<8x128xi1>
    %417 = vector.broadcast %cst_126 : f32 to vector<8x128xf32>
    %418 = arith.select %416, %414, %417 : vector<8x128xi1>, vector<8x128xf32>
    %cst_127 = arith.constant dense<0.000000e+00> : vector<128xf32>
    %419 = vector.multi_reduction <add>, %418, %cst_127 [0] : vector<8x128xf32> to vector<128xf32>
    %420 = vector.shape_cast %419 : vector<128xf32> to vector<1x128xf32>
    %421 = arith.addf %411, %420 : vector<1x128xf32>
    %c0_128 = arith.constant 0 : index
    %c0_129 = arith.constant 0 : index
    %422 = vector.load %arg15[%c0_128, %c0_129] : memref<32x128xf32, #tpu.memory_space<vmem>>, vector<32x128xf32>
    %423 = arith.truncf %406 : vector<1x32xf32> to vector<1x32xbf16>
    %424 = arith.truncf %422 : vector<32x128xf32> to vector<32x128xbf16>
    %cst_130 = arith.constant dense<0.000000e+00> : vector<1x128xf32>
    %425 = tpu.matmul %423, %424, %cst_130 {dimension_numbers = #tpu.dot_dimension_numbers<[1], [0], [0], [1], [0, 0, 1, 1], [], []>} : vector<1x32xbf16>, vector<32x128xbf16>, vector<1x128xf32> -> vector<1x128xf32>
    %426 = arith.addf %421, %425 : vector<1x128xf32>
    %427 = vector.extract_strided_slice %426 {offsets = [0, 0], sizes = [1, 32], strides = [1, 1]} : vector<1x128xf32> to vector<1x32xf32>
    %428 = arith.negf %427 : vector<1x32xf32>
    %429 = math.exp %428 : vector<1x32xf32>
    %cst_131 = arith.constant 1.000000e+00 : f32
    %430 = vector.broadcast %cst_131 : f32 to vector<1x32xf32>
    %431 = arith.addf %430, %429 : vector<1x32xf32>
    %432 = arith.divf %430, %431 : vector<1x32xf32>
    %433 = vector.extract_strided_slice %426 {offsets = [0, 32], sizes = [1, 32], strides = [1, 1]} : vector<1x128xf32> to vector<1x32xf32>
    %434 = arith.negf %433 : vector<1x32xf32>
    %435 = math.exp %434 : vector<1x32xf32>
    %cst_132 = arith.constant 1.000000e+00 : f32
    %436 = vector.broadcast %cst_132 : f32 to vector<1x32xf32>
    %437 = arith.addf %436, %435 : vector<1x32xf32>
    %438 = arith.divf %436, %437 : vector<1x32xf32>
    %439 = vector.extract_strided_slice %426 {offsets = [0, 64], sizes = [1, 32], strides = [1, 1]} : vector<1x128xf32> to vector<1x32xf32>
    %440 = math.tanh %439 : vector<1x32xf32>
    %441 = vector.extract_strided_slice %426 {offsets = [0, 96], sizes = [1, 32], strides = [1, 1]} : vector<1x128xf32> to vector<1x32xf32>
    %442 = arith.negf %441 : vector<1x32xf32>
    %443 = math.exp %442 : vector<1x32xf32>
    %cst_133 = arith.constant 1.000000e+00 : f32
    %444 = vector.broadcast %cst_133 : f32 to vector<1x32xf32>
    %445 = arith.addf %444, %443 : vector<1x32xf32>
    %446 = arith.divf %444, %445 : vector<1x32xf32>
    %447 = arith.mulf %438, %407 : vector<1x32xf32>
    %448 = arith.mulf %432, %440 : vector<1x32xf32>
    %449 = arith.addf %447, %448 : vector<1x32xf32>
    %450 = math.tanh %449 : vector<1x32xf32>
    %451 = arith.mulf %446, %450 : vector<1x32xf32>
    %c0_134 = arith.constant 0 : index
    %c0_135 = arith.constant 0 : index
    %452 = vector.load %arg17[%c0_134, %c0_135] : memref<32x8xf32, #tpu.memory_space<vmem>>, vector<32x8xf32>
    %453 = arith.truncf %451 : vector<1x32xf32> to vector<1x32xbf16>
    %454 = arith.truncf %452 : vector<32x8xf32> to vector<32x8xbf16>
    %cst_136 = arith.constant dense<0.000000e+00> : vector<1x8xf32>
    %455 = tpu.matmul %453, %454, %cst_136 {dimension_numbers = #tpu.dot_dimension_numbers<[1], [0], [0], [1], [0, 0, 1, 1], [], []>} : vector<1x32xbf16>, vector<32x8xbf16>, vector<1x8xf32> -> vector<1x8xf32>
    %c0_137 = arith.constant 0 : index
    %c0_138 = arith.constant 0 : index
    %456 = vector.load %arg18[%c0_137, %c0_138] : memref<1x8xf32, #tpu.memory_space<vmem>>, vector<1x8xf32>
    %457 = arith.addf %455, %456 : vector<1x8xf32>
    %cst_139 = arith.constant dense<0xFF800000> : vector<1xf32>
    %458 = vector.multi_reduction <maximumf>, %457, %cst_139 [1] : vector<1x8xf32> to vector<1xf32>
    %459 = vector.shape_cast %458 : vector<1xf32> to vector<1x1xf32>
    %460 = vector.broadcast %459 : vector<1x1xf32> to vector<1x8xf32>
    %461 = arith.cmpf oeq, %457, %460 : vector<1x8xf32>
    %c8_i32_140 = arith.constant 8 : i32
    %462 = vector.broadcast %c8_i32_140 : i32 to vector<1x8xi32>
    %463 = arith.select %461, %404, %462 : vector<1x8xi1>, vector<1x8xi32>
    %cst_141 = arith.constant dense<2147483647> : vector<1xi32>
    %464 = vector.multi_reduction <minsi>, %463, %cst_141 [1] : vector<1x8xi32> to vector<1xi32>
    %465 = vector.shape_cast %464 : vector<1xi32> to vector<1x1xi32>
    %466 = vector.broadcast %459 : vector<1x1xf32> to vector<1x8xf32>
    %467 = arith.subf %457, %466 : vector<1x8xf32>
    %468 = math.exp %467 : vector<1x8xf32>
    %cst_142 = arith.constant dense<0.000000e+00> : vector<1xf32>
    %469 = vector.multi_reduction <add>, %468, %cst_142 [1] : vector<1x8xf32> to vector<1xf32>
    %470 = vector.shape_cast %469 : vector<1xf32> to vector<1x1xf32>
    %471 = math.log %470 : vector<1x1xf32>
    %472 = arith.addf %459, %471 : vector<1x1xf32>
    %473 = arith.index_cast %c0_i32_122 : i32 to index
    %474 = memref.load %arg1[%473] : memref<2xi32, #tpu.memory_space<smem>>
    %475 = vector.broadcast %474 : i32 to vector<1x8xi32>
    %476 = arith.cmpi eq, %404, %475 : vector<1x8xi32>
    %cst_143 = arith.constant 0.000000e+00 : f32
    %477 = vector.broadcast %cst_143 : f32 to vector<1x8xf32>
    %478 = arith.select %476, %457, %477 : vector<1x8xi1>, vector<1x8xf32>
    %cst_144 = arith.constant dense<0.000000e+00> : vector<1xf32>
    %479 = vector.multi_reduction <add>, %478, %cst_144 [1] : vector<1x8xf32> to vector<1xf32>
    %480 = vector.shape_cast %479 : vector<1xf32> to vector<1x1xf32>
    %481 = arith.subf %472, %480 : vector<1x1xf32>
    %c0_i32_145 = arith.constant 0 : i32
    %482 = arith.cmpi eq, %474, %c0_i32_145 : i32
    %cst_146 = arith.constant 0.000000e+00 : f32
    %483 = vector.broadcast %cst_146 : f32 to vector<1x1xf32>
    %484 = arith.select %482, %483, %481 : vector<1x1xf32>
    %485 = arith.addf %409, %484 : vector<1x1xf32>
    %c1_i32_147 = arith.constant 1 : i32
    %486 = arith.index_cast %c1_i32_147 : i32 to index
    %c0_148 = arith.constant 0 : index
    %487 = vector.load %arg21[%486, %c0_148] : memref<2x128xf32, #tpu.memory_space<vmem>>, vector<1x128xf32>
    %488 = vector.broadcast %465 : vector<1x1xi32> to vector<8x1xi32>
    %489 = arith.cmpi eq, %405, %488 : vector<8x1xi32>
    %c0_149 = arith.constant 0 : index
    %c0_150 = arith.constant 0 : index
    %490 = vector.load %arg14[%c0_149, %c0_150] : memref<8x128xf32, #tpu.memory_space<vmem>>, vector<8x128xf32>
    %cst_151 = arith.constant 0.000000e+00 : f32
    %491 = vector.shape_cast %489 : vector<8x1xi1> to vector<8x1xi1>
    %492 = vector.broadcast %491 : vector<8x1xi1> to vector<8x128xi1>
    %493 = vector.broadcast %cst_151 : f32 to vector<8x128xf32>
    %494 = arith.select %492, %490, %493 : vector<8x128xi1>, vector<8x128xf32>
    %cst_152 = arith.constant dense<0.000000e+00> : vector<128xf32>
    %495 = vector.multi_reduction <add>, %494, %cst_152 [0] : vector<8x128xf32> to vector<128xf32>
    %496 = vector.shape_cast %495 : vector<128xf32> to vector<1x128xf32>
    %497 = arith.addf %487, %496 : vector<1x128xf32>
    %c0_153 = arith.constant 0 : index
    %c0_154 = arith.constant 0 : index
    %498 = vector.load %arg15[%c0_153, %c0_154] : memref<32x128xf32, #tpu.memory_space<vmem>>, vector<32x128xf32>
    %499 = arith.truncf %451 : vector<1x32xf32> to vector<1x32xbf16>
    %500 = arith.truncf %498 : vector<32x128xf32> to vector<32x128xbf16>
    %cst_155 = arith.constant dense<0.000000e+00> : vector<1x128xf32>
    %501 = tpu.matmul %499, %500, %cst_155 {dimension_numbers = #tpu.dot_dimension_numbers<[1], [0], [0], [1], [0, 0, 1, 1], [], []>} : vector<1x32xbf16>, vector<32x128xbf16>, vector<1x128xf32> -> vector<1x128xf32>
    %502 = arith.addf %497, %501 : vector<1x128xf32>
    %503 = vector.extract_strided_slice %502 {offsets = [0, 0], sizes = [1, 32], strides = [1, 1]} : vector<1x128xf32> to vector<1x32xf32>
    %504 = arith.negf %503 : vector<1x32xf32>
    %505 = math.exp %504 : vector<1x32xf32>
    %cst_156 = arith.constant 1.000000e+00 : f32
    %506 = vector.broadcast %cst_156 : f32 to vector<1x32xf32>
    %507 = arith.addf %506, %505 : vector<1x32xf32>
    %508 = arith.divf %506, %507 : vector<1x32xf32>
    %509 = vector.extract_strided_slice %502 {offsets = [0, 32], sizes = [1, 32], strides = [1, 1]} : vector<1x128xf32> to vector<1x32xf32>
    %510 = arith.negf %509 : vector<1x32xf32>
    %511 = math.exp %510 : vector<1x32xf32>
    %cst_157 = arith.constant 1.000000e+00 : f32
    %512 = vector.broadcast %cst_157 : f32 to vector<1x32xf32>
    %513 = arith.addf %512, %511 : vector<1x32xf32>
    %514 = arith.divf %512, %513 : vector<1x32xf32>
    %515 = vector.extract_strided_slice %502 {offsets = [0, 64], sizes = [1, 32], strides = [1, 1]} : vector<1x128xf32> to vector<1x32xf32>
    %516 = math.tanh %515 : vector<1x32xf32>
    %517 = vector.extract_strided_slice %502 {offsets = [0, 96], sizes = [1, 32], strides = [1, 1]} : vector<1x128xf32> to vector<1x32xf32>
    %518 = arith.negf %517 : vector<1x32xf32>
    %519 = math.exp %518 : vector<1x32xf32>
    %cst_158 = arith.constant 1.000000e+00 : f32
    %520 = vector.broadcast %cst_158 : f32 to vector<1x32xf32>
    %521 = arith.addf %520, %519 : vector<1x32xf32>
    %522 = arith.divf %520, %521 : vector<1x32xf32>
    %523 = arith.mulf %514, %449 : vector<1x32xf32>
    %524 = arith.mulf %508, %516 : vector<1x32xf32>
    %525 = arith.addf %523, %524 : vector<1x32xf32>
    %526 = math.tanh %525 : vector<1x32xf32>
    %527 = arith.mulf %522, %526 : vector<1x32xf32>
    %c0_159 = arith.constant 0 : index
    %c0_160 = arith.constant 0 : index
    %528 = vector.load %arg17[%c0_159, %c0_160] : memref<32x8xf32, #tpu.memory_space<vmem>>, vector<32x8xf32>
    %529 = arith.truncf %527 : vector<1x32xf32> to vector<1x32xbf16>
    %530 = arith.truncf %528 : vector<32x8xf32> to vector<32x8xbf16>
    %cst_161 = arith.constant dense<0.000000e+00> : vector<1x8xf32>
    %531 = tpu.matmul %529, %530, %cst_161 {dimension_numbers = #tpu.dot_dimension_numbers<[1], [0], [0], [1], [0, 0, 1, 1], [], []>} : vector<1x32xbf16>, vector<32x8xbf16>, vector<1x8xf32> -> vector<1x8xf32>
    %c0_162 = arith.constant 0 : index
    %c0_163 = arith.constant 0 : index
    %532 = vector.load %arg18[%c0_162, %c0_163] : memref<1x8xf32, #tpu.memory_space<vmem>>, vector<1x8xf32>
    %533 = arith.addf %531, %532 : vector<1x8xf32>
    %cst_164 = arith.constant dense<0xFF800000> : vector<1xf32>
    %534 = vector.multi_reduction <maximumf>, %533, %cst_164 [1] : vector<1x8xf32> to vector<1xf32>
    %535 = vector.shape_cast %534 : vector<1xf32> to vector<1x1xf32>
    %536 = vector.broadcast %535 : vector<1x1xf32> to vector<1x8xf32>
    %537 = arith.cmpf oeq, %533, %536 : vector<1x8xf32>
    %c8_i32_165 = arith.constant 8 : i32
    %538 = vector.broadcast %c8_i32_165 : i32 to vector<1x8xi32>
    %539 = arith.select %537, %404, %538 : vector<1x8xi1>, vector<1x8xi32>
    %cst_166 = arith.constant dense<2147483647> : vector<1xi32>
    %540 = vector.multi_reduction <minsi>, %539, %cst_166 [1] : vector<1x8xi32> to vector<1xi32>
    %541 = vector.shape_cast %540 : vector<1xi32> to vector<1x1xi32>
    %542 = vector.broadcast %535 : vector<1x1xf32> to vector<1x8xf32>
    %543 = arith.subf %533, %542 : vector<1x8xf32>
    %544 = math.exp %543 : vector<1x8xf32>
    %cst_167 = arith.constant dense<0.000000e+00> : vector<1xf32>
    %545 = vector.multi_reduction <add>, %544, %cst_167 [1] : vector<1x8xf32> to vector<1xf32>
    %546 = vector.shape_cast %545 : vector<1xf32> to vector<1x1xf32>
    %547 = math.log %546 : vector<1x1xf32>
    %548 = arith.addf %535, %547 : vector<1x1xf32>
    %549 = arith.index_cast %c1_i32_147 : i32 to index
    %550 = memref.load %arg1[%549] : memref<2xi32, #tpu.memory_space<smem>>
    %551 = vector.broadcast %550 : i32 to vector<1x8xi32>
    %552 = arith.cmpi eq, %404, %551 : vector<1x8xi32>
    %cst_168 = arith.constant 0.000000e+00 : f32
    %553 = vector.broadcast %cst_168 : f32 to vector<1x8xf32>
    %554 = arith.select %552, %533, %553 : vector<1x8xi1>, vector<1x8xf32>
    %cst_169 = arith.constant dense<0.000000e+00> : vector<1xf32>
    %555 = vector.multi_reduction <add>, %554, %cst_169 [1] : vector<1x8xf32> to vector<1xf32>
    %556 = vector.shape_cast %555 : vector<1xf32> to vector<1x1xf32>
    %557 = arith.subf %548, %556 : vector<1x1xf32>
    %c0_i32_170 = arith.constant 0 : i32
    %558 = arith.cmpi eq, %550, %c0_i32_170 : i32
    %cst_171 = arith.constant 0.000000e+00 : f32
    %559 = vector.broadcast %cst_171 : f32 to vector<1x1xf32>
    %560 = arith.select %558, %559, %557 : vector<1x1xf32>
    %561 = arith.addf %485, %560 : vector<1x1xf32>
    %c2_i32_172 = arith.constant 2 : i32
    %c0_173 = arith.constant 0 : index
    %c0_174 = arith.constant 0 : index
    %562 = vector.load %arg19[%c0_173, %c0_174] : memref<1x1xf32, #tpu.memory_space<vmem>>, vector<1x1xf32>
    tpu.vector_store %arg19[%c0_173, %c0_174], %561 {strides = array<i32>} : memref<1x1xf32, #tpu.memory_space<vmem>>, vector<1x1xf32>,
    return
  }
  func.func @transform_0(%arg0: i32, %arg1: memref<2xi32, #tpu.memory_space<smem>>) -> (i32, i32) {
    %c0_i32 = arith.constant 0 : i32
    %c0_i32_0 = arith.constant 0 : i32
    %c0_i32_1 = arith.constant 0 : i32
    return %c0_i32, %c0_i32_0 : i32, i32
  }
  func.func @transform_1(%arg0: i32, %arg1: memref<2xi32, #tpu.memory_space<smem>>) -> (i32, i32) {
    %c0_i32 = arith.constant 0 : i32
    %c0_i32_0 = arith.constant 0 : i32
    %c0_i32_1 = arith.constant 0 : i32
    return %c0_i32, %c0_i32_0 : i32, i32
  }
  func.func @transform_2(%arg0: i32, %arg1: memref<2xi32, #tpu.memory_space<smem>>) -> (i32, i32) {
    %c0_i32 = arith.constant 0 : i32
    %c0_i32_0 = arith.constant 0 : i32
    %c0_i32_1 = arith.constant 0 : i32
    return %c0_i32, %c0_i32_0 : i32, i32
  }
  func.func @transform_3(%arg0: i32, %arg1: memref<2xi32, #tpu.memory_space<smem>>) -> (i32, i32) {
    %c0_i32 = arith.constant 0 : i32
    %c0_i32_0 = arith.constant 0 : i32
    %c0_i32_1 = arith.constant 0 : i32
    return %c0_i32, %c0_i32_0 : i32, i32
  }
  func.func @transform_4(%arg0: i32, %arg1: memref<2xi32, #tpu.memory_space<smem>>) -> (i32, i32) {
    %c0_i32 = arith.constant 0 : i32
    %c0_i32_0 = arith.constant 0 : i32
    %c0_i32_1 = arith.constant 0 : i32
    return %c0_i32, %c0_i32_0 : i32, i32
  }
  func.func @transform_5(%arg0: i32, %arg1: memref<2xi32, #tpu.memory_space<smem>>) -> (i32, i32) {
    %c0_i32 = arith.constant 0 : i32
    %c0_i32_0 = arith.constant 0 : i32
    %c0_i32_1 = arith.constant 0 : i32
    return %c0_i32, %c0_i32_0 : i32, i32
  }
  func.func @transform_6(%arg0: i32, %arg1: memref<2xi32, #tpu.memory_space<smem>>) -> (i32, i32) {
    %c0_i32 = arith.constant 0 : i32
    %c0_i32_0 = arith.constant 0 : i32
    %c0_i32_1 = arith.constant 0 : i32
    return %c0_i32, %c0_i32_0 : i32, i32
  }
  func.func @transform_7(%arg0: i32, %arg1: memref<2xi32, #tpu.memory_space<smem>>) -> (i32, i32) {
    %c0_i32 = arith.constant 0 : i32
    %c0_i32_0 = arith.constant 0 : i32
    %c0_i32_1 = arith.constant 0 : i32
    return %c0_i32, %c0_i32_0 : i32, i32
  }
  func.func @transform_8(%arg0: i32, %arg1: memref<2xi32, #tpu.memory_space<smem>>) -> (i32, i32) {
    %c0_i32 = arith.constant 0 : i32
    %c0_i32_0 = arith.constant 0 : i32
    %c0_i32_1 = arith.constant 0 : i32
    return %c0_i32, %c0_i32_0 : i32, i32
  }
  func.func @transform_9(%arg0: i32, %arg1: memref<2xi32, #tpu.memory_space<smem>>) -> (i32, i32) {
    %c0_i32 = arith.constant 0 : i32
    %c0_i32_0 = arith.constant 0 : i32
    %c0_i32_1 = arith.constant 0 : i32
    return %c0_i32, %c0_i32_0 : i32, i32
  }
  func.func @transform_10(%arg0: i32, %arg1: memref<2xi32, #tpu.memory_space<smem>>) -> (i32, i32) {
    %c0_i32 = arith.constant 0 : i32
    %c0_i32_0 = arith.constant 0 : i32
    %c0_i32_1 = arith.constant 0 : i32
    return %c0_i32, %c0_i32_0 : i32, i32
  }
  func.func @transform_11(%arg0: i32, %arg1: memref<2xi32, #tpu.memory_space<smem>>) -> (i32, i32) {
    %c0_i32 = arith.constant 0 : i32
    %c0_i32_0 = arith.constant 0 : i32
    %c0_i32_1 = arith.constant 0 : i32
    return %c0_i32, %c0_i32_0 : i32, i32
  }
  func.func @transform_12(%arg0: i32, %arg1: memref<2xi32, #tpu.memory_space<smem>>) -> (i32, i32) {
    %c0_i32 = arith.constant 0 : i32
    %c0_i32_0 = arith.constant 0 : i32
    %c0_i32_1 = arith.constant 0 : i32
    return %c0_i32, %c0_i32_0 : i32, i32
  }
  func.func @transform_13(%arg0: i32, %arg1: memref<2xi32, #tpu.memory_space<smem>>) -> (i32, i32) {
    %c0_i32 = arith.constant 0 : i32
    %c0_i32_0 = arith.constant 0 : i32
    %c0_i32_1 = arith.constant 0 : i32
    return %c0_i32, %c0_i32_0 : i32, i32
  }
  func.func @transform_14(%arg0: i32, %arg1: memref<2xi32, #tpu.memory_space<smem>>) -> (i32, i32) {
    %c0_i32 = arith.constant 0 : i32
    %c0_i32_0 = arith.constant 0 : i32
    %c0_i32_1 = arith.constant 0 : i32
    return %c0_i32, %c0_i32_0 : i32, i32
  }
  func.func @transform_15(%arg0: i32, %arg1: memref<2xi32, #tpu.memory_space<smem>>) -> (i32, i32) {
    %c0_i32 = arith.constant 0 : i32
    %c0_i32_0 = arith.constant 0 : i32
    %c0_i32_1 = arith.constant 0 : i32
    return %c0_i32, %c0_i32_0 : i32, i32
  }
  func.func @transform_16(%arg0: i32, %arg1: memref<2xi32, #tpu.memory_space<smem>>) -> (i32, i32) {
    %c0_i32 = arith.constant 0 : i32
    %c0_i32_0 = arith.constant 0 : i32
    %c0_i32_1 = arith.constant 0 : i32
    return %c0_i32, %c0_i32_0 : i32, i32
  }
  func.func @transform_17(%arg0: i32, %arg1: memref<2xi32, #tpu.memory_space<smem>>) -> (i32, i32) {
    %c0_i32 = arith.constant 0 : i32
    %c0_i32_0 = arith.constant 0 : i32
    %c0_i32_1 = arith.constant 0 : i32
    return %c0_i32, %c0_i32_0 : i32, i32
  }
}

</mosaic_0001>

<bundles_post_ra>
// kernel: cnn_cnn_lstm_forward.1
= control target key start
LH: loop header
LB: loop body
LE: loop exit
PB: predicated region body
PF: predicated region fallthrough
CT: control target
= control target key end

     0   :  { %s4701_s0 = inlined_call_operand.vmem [shape: s32[2], index: 0, kind: input, shape index: {}]   ;;  %s4702_s1 = inlined_call_operand.vmem [shape: f32[192,48], index: 1, kind: input, shape index: {}]   ;;  %s4703_s2 = inlined_call_operand.vmem [shape: f32[16,32], index: 2, kind: input, shape index: {}]   ;;  %s4704_s3 = inlined_call_operand.vmem [shape: f32[48,16], index: 3, kind: input, shape index: {}]   ;;  %s4705_s4 = inlined_call_operand.vmem [shape: f32[1,16], index: 4, kind: input, shape index: {}]   ;;  %s4706_s5 = inlined_call_operand.vmem [shape: f32[240,32], index: 5, kind: input, shape index: {}]   ;;  %s4707_s6 = inlined_call_operand.vmem [shape: f32[1,32], index: 6, kind: input, shape index: {}]   ;;  %s4708_s7 = inlined_call_operand.vmem [shape: f32[160,32], index: 7, kind: input, shape index: {}]   ;;  %s4709_s8 = inlined_call_operand.vmem [shape: f32[1,32], index: 8, kind: input, shape index: {}]   ;;  %s4710_s9 = inlined_call_operand.vmem [shape: f32[80,320], index: 9, kind: input, shape index: {}]   ;;  %s4711_s10 = inlined_call_operand.vmem [shape: f32[80,320], index: 10, kind: input, shape index: {}]   ;;  %s4712_s11 = inlined_call_operand.vmem [shape: f32[1,320], index: 11, kind: input, shape index: {}]   ;;  %s4713_s12 = inlined_call_operand.vmem [shape: f32[80,128], index: 12, kind: input, shape index: {}]   ;;  %s4714_s13 = inlined_call_operand.vmem [shape: f32[8,128], index: 13, kind: input, shape index: {}]   ;;  %s4715_s14 = inlined_call_operand.vmem [shape: f32[32,128], index: 14, kind: input, shape index: {}]   ;;  %s4716_s15 = inlined_call_operand.vmem [shape: f32[1,128], index: 15, kind: input, shape index: {}]   ;;  %s4717_s16 = inlined_call_operand.vmem [shape: f32[32,8], index: 16, kind: input, shape index: {}]   ;;  %s4718_s17 = inlined_call_operand.vmem [shape: f32[1,8], index: 17, kind: input, shape index: {}]   ;;  %s4719_s18 = inlined_call_operand.hbm [shape: f32[1,1], index: 18, kind: output, shape index: {}]  }
   0x1   :  { %4723 = sst [smem:[#allocation10_spill]] %s4701_s0 }
   0x2   :  { %4724 = sst [smem:[#allocation11_spill]] %s4702_s1 }
   0x3   :  { %4725 = sst [smem:[#allocation12_spill]] %s4703_s2 }
   0x4   :  { %4726 = sst [smem:[#allocation13_spill]] %s4713_s12 }
   0x5   :  { %s4727_s29 = sld [smem:[#allocation10_spill]] }
   0xb   :  { %s23_s12 = sshll.u32 %s4727_s29, 4  ;;  %s24_s12 = int_to_ptr.vmem [resolvable:$true] %s23_s12 }
   0xc   :  { %s3305_s30 = scalar_lea.vmem %s24_s12, 16  ;;  %p3310_p1 = scmp.lt.s32.totalorder %s24_s12, %s24_s12 }
   0xd   :  { %p3306_p0 = scmp.ne.s32.totalorder %s24_s12, %s3305_s30  ;;  %p3311_p2 = scmp.lt.s32.totalorder %s3305_s30, %s3305_s30 }
   0xf   :  { %p3312_p3 = por %p3311_p2, %p3310_p1 }
  0x11   :  { %p3313_p4 = pnand %p3312_p3, %p3306_p0 }
  0x13   :  { %3316 = shalt.err (!%p3313_p4)  }
  0x14   :  { %s3341_s0 = smov [#allocation5]  }
  0x15   :  { %26 = dma.vmem_to_smem %s24_s12, 16, %s3341_s0, [#allocation4] }
  0x16   :  { %3337 = dma.done.wait [#allocation4], 16 }
  0x17   :  { %3338 = vsyncadd [#allocation4], 4294967280 }
  0x18   :  { %28 = sfence }
  0x19   :  { %v93_v0 = vld [vmem:[%s4704_s3 + $0x20] sm:$0xff]  ;;  %v94_v1 = vld [vmem:[%s4704_s3 + $0x28] sm:$0xff]  ;;  %v91_v2 = vld [vmem:[%s4704_s3 + $0x10] sm:$0xff]  ;;  %s4728_s30 = sld [smem:[#allocation11_spill]]  ;;  %vm117_vm0 = vcmask 392192  }
  0x1a   :  { %v109_v3 = vpack.c.bf16 %v94_v1, %v93_v0  ;;  %v92_v4 = vld [vmem:[%s4704_s3 + $0x18] sm:$0xff]  ;;  %v89_v5 = vld [vmem:[%s4704_s3] sm:$0xff]  ;;  %v90_v7 = vld [vmem:[%s4704_s3 + $0x8] sm:$0xff] }
  0x1b   :  { %v108_v6 = vpack.c.bf16 %v92_v4, %v91_v2  ;;  %v107_v11 = vpack.c.bf16 %v90_v7, %v89_v5 }
  0x1c   :  { %2875 = vmatprep.subr.bf16.mxu0 %v109_v3 }
  0x1d   :  { %2876 = vmatpush3.bf16.msra.mxu0 %v109_v3 }
  0x1e   :  { %2877 = vmatprep.subr.bf16.mxu0 %v108_v6 }
  0x1f   :  { %v65_v8 = vld [vmem:[%s4728_s30] sm:$0xff]  ;;  %v66_v9 = vld [vmem:[%s4728_s30 + $0x8] sm:$0xff]  ;;  %v67_v12 = vld [vmem:[%s4728_s30 + $0x10] sm:$0xff] }
  0x20   :  { %v95_v10 = vpack.c.bf16 %v66_v9, %v65_v8  ;;  %v68_v13 = vld [vmem:[%s4728_s30 + $0x18] sm:$0xff]  ;;  %v69_v14 = vld [vmem:[%s4728_s30 + $0x20] sm:$0xff]  ;;  %v70_v15 = vld [vmem:[%s4728_s30 + $0x28] sm:$0xff] }
  0x21   :  { %2878 = vmatpush3.bf16.msra.mxu0 %v108_v6 }
  0x22   :  { %2881 = vmatprep.mubr.msk.bf16.mxu0 %vm117_vm0, %v95_v10  ;;  %2879 = vmatprep.subr.bf16.mxu0 %v107_v11 }
  0x23   :  { %29 = vsyncpa [#allocation7], 0  ;;  %v96_v16 = vpack.c.bf16 %v68_v13, %v67_v12  ;;  %v97_v17 = vpack.c.bf16 %v70_v15, %v69_v14  ;;  %v71_v18 = vld [vmem:[%s4728_s30 + $0x30] sm:$0xff]  ;;  %v72_v19 = vld [vmem:[%s4728_s30 + $0x38] sm:$0xff]  ;;  %s4729_s1 = sld [smem:[#allocation12_spill]]  ;;  %vm317_vm1 = vcmask 261120  }
  0x24   :  { %v73_v20 = vld [vmem:[%s4728_s30 + $0x40] sm:$0xff]  ;;  %v74_v21 = vld [vmem:[%s4728_s30 + $0x48] sm:$0xff]  ;;  %v98_v22 = vpack.c.bf16 %v72_v19, %v71_v18  ;;  %v75_v24 = vld [vmem:[%s4728_s30 + $0x50] sm:$0xff]  ;;  %vm323_vm2 = vcmask 1041408   ;;  %vm342_vm3 = vcmask 1044480   ;;  %vm335_vm4 = vcmask 1045504  }
  0x25   :  { %2880 = vmatpush3.bf16.msra.mxu0 %v107_v11  ;;  %v99_v23 = vpack.c.bf16 %v74_v21, %v73_v20  ;;  %v76_v25 = vld [vmem:[%s4728_s30 + $0x58] sm:$0xff]  ;;  %v77_v26 = vld [vmem:[%s4728_s30 + $0x60] sm:$0xff]  ;;  %v78_v27 = vld [vmem:[%s4728_s30 + $0x68] sm:$0xff]  ;;  %vm349_vm5 = vcmask 1043456   ;;  %vm328_vm6 = vcmask 1046528   ;;  %s3344_s27 = smov 16  }
  0x26   :  { %v100_v28 = vpack.c.bf16 %v76_v25, %v75_v24  ;;  %v101_v29 = vpack.c.bf16 %v78_v27, %v77_v26  ;;  %v79_v30 = vld [vmem:[%s4728_s30 + $0x70] sm:$0xff]  ;;  %v80_v31 = vld [vmem:[%s4728_s30 + $0x78] sm:$0xff]  ;;  %v81_v32 = vld [vmem:[%s4728_s30 + $0x80] sm:$0xff]  ;;  %s3346_s28 = smov 64   ;;  %s3347_s29 = smov 48   ;;  %vm359_vm7 = vcmask 130048  }
  0x27   :  { %v82_v33 = vld [vmem:[%s4728_s30 + $0x88] sm:$0xff]  ;;  %v102_v34 = vpack.c.bf16 %v80_v31, %v79_v30  ;;  %v83_v36 = vld [vmem:[%s4728_s30 + $0x90] sm:$0xff]  ;;  %v84_v37 = vld [vmem:[%s4728_s30 + $0x98] sm:$0xff]  ;;  %vm361_vm8 = vcmask 523264   ;;  %vm357_vm9 = vcmask 785408   ;;  %vm452_vm10 = vcmask 916480  }
  0x28   :  { %2882 = vmatmul.mubr.msk.bf16.vlgmr.msra.gmra.mxu0 %vm117_vm0, %v96_v16  ;;  %v103_v35 = vpack.c.bf16 %v82_v33, %v81_v32  ;;  %v85_v38 = vld [vmem:[%s4728_s30 + $0xa0] sm:$0xff]  ;;  %v86_v39 = vld [vmem:[%s4728_s30 + $0xa8] sm:$0xff]  ;;  %v104_v40 = vpack.c.bf16 %v84_v37, %v83_v36  ;;  %v87_v42 = vld [vmem:[%s4728_s30 + $0xb0] sm:$0xff]  ;;  %vm3349_vm11 = vmmov 0   ;;  %vm719_vm12 = vcmask 654336   ;;  %s4730_s23 = sld [smem:[#allocation13_spill]] }
  0x29   :  { %2885 = vmatprep.mubr.msk.bf16.mxu0 %vm117_vm0, %v97_v17  ;;  %v105_v41 = vpack.c.bf16 %v86_v39, %v85_v38  ;;  %v88_v43 = vld [vmem:[%s4728_s30 + $0xb8] sm:$0xff]  ;;  %v2723_v52 = vld [vmem:[%s4705_s4] ss:$0 sm:$0xff]  ;;  %s3342_s4 = smov 32   ;;  %vm848_vm13 = vcmask 1040384   ;;  %vm2509_vm15 = vcmask 57344  }
  0x2a   :  { %v106_v44 = vpack.c.bf16 %v88_v43, %v87_v42 }
  0x30   :  { %2886 = vmatmul.mubr.msk.bf16.gmra.mxu0 %vm117_vm0, %v98_v22 }
  0x31   :  { %2889 = vmatprep.mubr.msk.bf16.mxu0 %vm117_vm0, %v99_v23 }
  0x38   :  { %2890 = vmatmul.mubr.msk.bf16.gmra.mxu0 %vm117_vm0, %v100_v28 }
  0x39   :  { %2893 = vmatprep.mubr.msk.bf16.mxu0 %vm117_vm0, %v101_v29 }
  0x40   :  { %2894 = vmatmul.mubr.msk.bf16.gmra.mxu0 %vm117_vm0, %v102_v34 }
  0x41   :  { %2897 = vmatprep.mubr.msk.bf16.mxu0 %vm117_vm0, %v103_v35 }
  0x48   :  { %2898 = vmatmul.mubr.msk.bf16.gmra.mxu0 %vm117_vm0, %v104_v40 }
  0x49   :  { %2901 = vmatprep.mubr.msk.bf16.mxu0 %vm117_vm0, %v105_v41 }
  0x50   :  { %2902 = vmatmul.mubr.msk.bf16.gmra.mxu0 %vm117_vm0, %v106_v44 }
  0xe8   :  { %v2883_v45 = vpop.f32.mrf.mxu0 }
  0xe9   :  { %v197_v56 = vadd.f32 %v2883_v45, %v2723_v52 }
  0xea   :  { %v188_v46 = vpop.f32.mrf.mxu0 }
  0xeb   :  { %v189_v54 = vadd.f32 %v2723_v52, %v188_v46 }
  0xec   :  { %v2884_v47 = vpop.f32.mrf.mxu0 }
  0xed   :  { %v283_v59 = vmax.f32 %v189_v54, %v197_v56  ;;  %v200_v62 = vadd.f32 %v2884_v47, %v2723_v52  ;;  %v412_v56 = vld [vmem:[%s4706_s5 + $0x70] sm:$0xff] }
  0xee   :  { %v191_v48 = vpop.f32.mrf.mxu0 }
  0xef   :  { %v192_v60 = vadd.f32 %v2723_v52, %v191_v48 }
  0xf0   :  { %v2887_v49 = vpop.f32.mrf.mxu0 }
  0xf1   :  { %v284_v2 = vmax.f32 %v192_v60, %v200_v62  ;;  %v213_v3 = vadd.f32 %v2887_v49, %v2723_v52  ;;  %v411_v60 = vld [vmem:[%s4706_s5 + $0x68] sm:$0xff]  ;;  %v408_v62 = vld [vmem:[%s4706_s5 + $0x50] sm:$0xff] }
  0xf2   :  { %v204_v50 = vpop.f32.mrf.mxu0 }
  0xf3   :  { %v205_v57 = vadd.f32 %v2723_v52, %v204_v50 }
  0xf4   :  { %v2888_v51 = vpop.f32.mrf.mxu0 }
  0xf5   :  { %v285_v63 = vmax.f32 %v283_v59, %v205_v57  ;;  %v216_v9 = vadd.f32 %v2888_v51, %v2723_v52  ;;  %v413_v57 = vld [vmem:[%s4706_s5 + $0x78] sm:$0xff] }
  0xf6   :  { %v207_v53 = vpop.f32.mrf.mxu0  ;;  %v437_v59 = vpack.c.bf16 %v413_v57, %v412_v56 }
  0xf7   :  { %v208_v0 = vadd.f32 %v2723_v52, %v207_v53  ;;  %v287_v7 = vmax.f32 %v285_v63, %v213_v3  ;;  %v409_v63 = vld [vmem:[%s4706_s5 + $0x58] sm:$0xff] }
  0xf8   :  { %v2891_v55 = vpop.f32.mrf.mxu0 }
  0xf9   :  { %v286_v6 = vmax.f32 %v284_v2, %v208_v0  ;;  %v229_v13 = vadd.f32 %v2891_v55, %v2723_v52  ;;  %v435_v0 = vpack.c.bf16 %v409_v63, %v408_v62  ;;  %v407_v2 = vld [vmem:[%s4706_s5 + $0x48] sm:$0xff] }
  0xfa   :  { %v220_v58 = vpop.f32.mrf.mxu0  ;;  %v415_v62 = vld [vmem:[%s4706_s5 + $0x88] sm:$0xff] }
  0xfb   :  { %v221_v4 = vadd.f32 %v2723_v52, %v220_v58  ;;  %v288_v14 = vmax.f32 %v286_v6, %v216_v9  ;;  %v3343_v58 = vmov 0  }
  0xfc   :  { %v2892_v61 = vpop.f32.mrf.mxu0  ;;  %456 = vmatprep.subr.bf16.mxu1 %v3343_v58  ;;  %605 = vmatprep.subr.bf16.mxu0 %v3343_v58 }
  0xfd   :  { %v289_v10 = vmax.f32 %v287_v7, %v221_v4  ;;  %v232_v20 = vadd.f32 %v2892_v61, %v2723_v52  ;;  %457 = vmatpush1.bf16.msra.mxu1 %v437_v59  ;;  %v404_v4 = vld [vmem:[%s4706_s5 + $0x30] sm:$0xff]  ;;  %v402_v7 = vld [vmem:[%s4706_s5 + $0x20] sm:$0xff] }
  0xfe   :  { %v223_v1 = vpop.f32.mrf.mxu0  ;;  %458 = vmatprep.subr.bf16.mxu1 %v3343_v58 }
  0xff   :  { %v224_v11 = vadd.f32 %v2723_v52, %v223_v1  ;;  %v291_v18 = vmax.f32 %v289_v10, %v229_v13  ;;  %v406_v1 = vld [vmem:[%s4706_s5 + $0x40] sm:$0xff]  ;;  %v400_v10 = vld [vmem:[%s4706_s5 + $0x10] sm:$0xff] }
 0x100   :  { %v2895_v5 = vpop.f32.mrf.mxu0  ;;  %v434_v3 = vpack.c.bf16 %v407_v2, %v406_v1  ;;  %v398_v13 = vld [vmem:[%s4706_s5] sm:$0xff] }
 0x101   :  { %v290_v17 = vmax.f32 %v288_v14, %v224_v11  ;;  %v245_v24 = vadd.f32 %v2895_v5, %v2723_v52  ;;  %v405_v5 = vld [vmem:[%s4706_s5 + $0x38] sm:$0xff]  ;;  %v399_v14 = vld [vmem:[%s4706_s5 + $0x8] sm:$0xff] }
 0x102   :  { %v236_v8 = vpop.f32.mrf.mxu0  ;;  %v433_v6 = vpack.c.bf16 %v405_v5, %v404_v4  ;;  %v401_v11 = vld [vmem:[%s4706_s5 + $0x18] sm:$0xff] }
 0x103   :  { %v237_v15 = vadd.f32 %v2723_v52, %v236_v8  ;;  %v292_v25 = vmax.f32 %v290_v17, %v232_v20  ;;  %v403_v8 = vld [vmem:[%s4706_s5 + $0x28] sm:$0xff]  ;;  %v425_v20 = vld [vmem:[%s4706_s5 + $0xd8] sm:$0xff] }
 0x104   :  { %v2896_v12 = vpop.f32.mrf.mxu0  ;;  %v432_v9 = vpack.c.bf16 %v403_v8, %v402_v7  ;;  %v427_v17 = vld [vmem:[%s4706_s5 + $0xe8] sm:$0xff] }
 0x105   :  { %v293_v21 = vmax.f32 %v291_v18, %v237_v15  ;;  %v248_v31 = vadd.f32 %v2896_v12, %v2723_v52  ;;  %v431_v12 = vpack.c.bf16 %v401_v11, %v400_v10  ;;  %v430_v15 = vpack.c.bf16 %v399_v14, %v398_v13 }
 0x106   :  { %v239_v16 = vpop.f32.mrf.mxu0 }
 0x107   :  { %v240_v22 = vadd.f32 %v2723_v52, %v239_v16  ;;  %v295_v29 = vmax.f32 %v293_v21, %v245_v24  ;;  %v426_v16 = vld [vmem:[%s4706_s5 + $0xe0] sm:$0xff] }
 0x108   :  { %v2899_v19 = vpop.f32.mrf.mxu0  ;;  %v444_v18 = vpack.c.bf16 %v427_v17, %v426_v16 }
 0x109   :  { %v294_v28 = vmax.f32 %v292_v25, %v240_v22  ;;  %v261_v35 = vadd.f32 %v2899_v19, %v2723_v52  ;;  %v424_v19 = vld [vmem:[%s4706_s5 + $0xd0] sm:$0xff]  ;;  %v422_v22 = vld [vmem:[%s4706_s5 + $0xc0] sm:$0xff] }
 0x10a   :  { %v252_v23 = vpop.f32.mrf.mxu0  ;;  %v443_v21 = vpack.c.bf16 %v425_v20, %v424_v19  ;;  %v420_v25 = vld [vmem:[%s4706_s5 + $0xb0] sm:$0xff] }
 0x10b   :  { %v253_v26 = vadd.f32 %v2723_v52, %v252_v23  ;;  %v296_v36 = vmax.f32 %v294_v28, %v248_v31  ;;  %v423_v23 = vld [vmem:[%s4706_s5 + $0xc8] sm:$0xff]  ;;  %v418_v28 = vld [vmem:[%s4706_s5 + $0xa0] sm:$0xff] }
 0x10c   :  { %v2900_v27 = vpop.f32.mrf.mxu0  ;;  %v442_v24 = vpack.c.bf16 %v423_v23, %v422_v22  ;;  %v307_v31 = vld [vmem:[%s4729_s1] sm:$0xff] }
 0x10d   :  { %v297_v32 = vmax.f32 %v295_v29, %v253_v26  ;;  %v264_v42 = vadd.f32 %v2900_v27, %v2723_v52  ;;  %v421_v26 = vld [vmem:[%s4706_s5 + $0xb8] sm:$0xff]  ;;  %v419_v29 = vld [vmem:[%s4706_s5 + $0xa8] sm:$0xff] }
 0x10e   :  { %v255_v30 = vpop.f32.mrf.mxu0  ;;  %v441_v27 = vpack.c.bf16 %v421_v26, %v420_v25 }
 0x10f   :  { %v256_v33 = vadd.f32 %v2723_v52, %v255_v30  ;;  %v299_v40 = vmax.f32 %v297_v32, %v261_v35  ;;  %v440_v30 = vpack.c.bf16 %v419_v29, %v418_v28  ;;  %v308_v32 = vld [vmem:[%s4729_s1 + $0x8] sm:$0xff]  ;;  %v417_v35 = vld [vmem:[%s4706_s5 + $0x98] sm:$0xff] }
 0x110   :  { %v2903_v34 = vpop.f32.mrf.mxu0 }
 0x111   :  { %v298_v38 = vmax.f32 %v296_v36, %v256_v33  ;;  %v277_v45 = vadd.f32 %v2903_v34, %v2723_v52  ;;  %v416_v34 = vld [vmem:[%s4706_s5 + $0x90] sm:$0xff] }
 0x112   :  { %v268_v37 = vpop.f32.mrf.mxu0 }
 0x113   :  { %v269_v39 = vadd.f32 %v2723_v52, %v268_v37  ;;  %v300_v47 = vmax.f32 %v298_v38, %v264_v42  ;;  %v439_v38 = vpack.c.bf16 %v417_v35, %v416_v34 }
 0x114   :  { %v2904_v41 = vpop.f32.mrf.mxu0 }
 0x115   :  { %v301_v43 = vmax.f32 %v299_v40, %v269_v39  ;;  %v280_v48 = vadd.f32 %v2904_v41, %v2723_v52 }
 0x116   :  { %v271_v44 = vpop.f32.mrf.mxu0 }
 0x117   :  { %v272_v46 = vadd.f32 %v2723_v52, %v271_v44  ;;  %v303_v50 = vmax.f32 %v301_v43, %v277_v45  ;;  %v410_v52 = vld [vmem:[%s4706_s5 + $0x60] sm:$0xff] }
 0x118   :  { %v436_v61 = vpack.c.bf16 %v411_v60, %v410_v52 }
 0x119   :  { %v302_v49 = vmax.f32 %v300_v47, %v272_v46  ;;  %v305_v53 = vmax.f32 %v303_v50, 0.0 }
 0x11a   :  { %459 = vmatpush1.bf16.msra.mxu1 %v436_v61  ;;  %v414_v61 = vld [vmem:[%s4706_s5 + $0x80] sm:$0xff]  ;;  %s3345_s5 = smov 96  }
 0x11b   :  { %v304_v51 = vmax.f32 %v302_v49, %v280_v48  ;;  %460 = vmatprep.subr.bf16.mxu1 %v3343_v58  ;;  %v438_v10 = vpack.c.bf16 %v415_v62, %v414_v61  ;;  %v566_v61 = vld [vmem:[%s4708_s7 + $0x18] sm:$0xff] }
 0x11d   :  { %v306_v54 = vmax.f32 %v304_v51, 0.0 }
 0x11e   :  { %461 = vmatpush1.bf16.msra.mxu1 %v435_v0 }
 0x11f   :  { %v3088_v55 = vpack.i.bf16 %v306_v54, %v305_v53  ;;  %462 = vmatprep.subr.bf16.mxu1 %v3343_v58 }
 0x121   :  { %3089 = vrot.lane.b32.xlu0 %v3088_v55, %s3342_s4 }
 0x122   :  { %463 = vmatpush1.bf16.msra.mxu1 %v434_v3 }
 0x123   :  { %464 = vmatprep.subr.bf16.mxu1 %v3343_v58 }
 0x126   :  { %465 = vmatpush1.bf16.msra.mxu1 %v433_v6 }
 0x127   :  { %466 = vmatprep.subr.bf16.mxu1 %v3343_v58 }
 0x12a   :  { %467 = vmatpush1.bf16.msra.mxu1 %v432_v9 }
 0x12b   :  { %468 = vmatprep.subr.bf16.mxu1 %v3343_v58 }
 0x12e   :  { %469 = vmatpush1.bf16.msra.mxu1 %v431_v12 }
 0x12f   :  { %470 = vmatprep.subr.bf16.mxu1 %v3343_v58 }
 0x132   :  { %471 = vmatpush1.bf16.msra.mxu1 %v430_v15 }
 0x133   :  { %474 = vmatprep.subr.bf16.mxu1 %v3343_v58 }
 0x136   :  { %475 = vmatpush2.bf16.msra.mxu1 %v444_v18 }
 0x137   :  { %476 = vmatprep.subr.bf16.mxu1 %v3343_v58 }
 0x13a   :  { %477 = vmatpush2.bf16.msra.mxu1 %v443_v21 }
 0x13b   :  { %478 = vmatprep.subr.bf16.mxu1 %v3343_v58 }
 0x13e   :  { %479 = vmatpush2.bf16.msra.mxu1 %v442_v24 }
 0x13f   :  { %480 = vmatprep.subr.bf16.mxu1 %v3343_v58 }
 0x142   :  { %481 = vmatpush2.bf16.msra.mxu1 %v441_v27 }
 0x143   :  { %482 = vmatprep.subr.bf16.mxu1 %v3343_v58 }
 0x146   :  { %483 = vmatpush2.bf16.msra.mxu1 %v440_v30 }
 0x147   :  { %484 = vmatprep.subr.bf16.mxu1 %v3343_v58 }
 0x14a   :  { %485 = vmatpush2.bf16.msra.mxu1 %v439_v38  ;;  %v577_v38 = vld [vmem:[%s4708_s7 + $0x70] sm:$0xff] }
 0x14b   :  { %486 = vmatprep.subr.bf16.mxu1 %v3343_v58 }
 0x14e   :  { %487 = vmatpush2.bf16.msra.mxu1 %v438_v10 }
 0x193   :  { %v3090_v33 = vpop.permute.xlu0 %3089 }
 0x194   :  { %v3092_v36 = vunpack.i.h.bf16 %v3090_v33  ;;  %v3091_v37 = vunpack.i.l.bf16 %v3090_v33 }
 0x196   :  { %v3662_v39 = vsel %vm317_vm1, %v308_v32, %v3092_v36  ;;  %v3665_v40 = vsel %vm317_vm1, %v307_v31, %v3091_v37 }
 0x197   :  { %v364_v41 = vrot.slane %v3662_v39, 6  ;;  %v321_v42 = vrot.slane %v3665_v40, 6  ;;  %v3128_v43 = vpack.i.bf16 %v3662_v39, %v3665_v40  ;;  %v680_v39 = vld [vmem:[%s4710_s9 + $0xc0] sm:$0xff]  ;;  %v683_v40 = vld [vmem:[%s4710_s9 + $0xd8] sm:$0xff] }
 0x199   :  { %v3673_v44 = vsel %vm323_vm2, 0.0, %v364_v41  ;;  %v367_v45 = vsel %vm323_vm2, %v364_v41, 0.0  ;;  %v324_v46 = vsel %vm323_vm2, 0.0, %v321_v42  ;;  %v325_v47 = vsel %vm323_vm2, %v321_v42, 0.0  ;;  %v578_v41 = vld [vmem:[%s4708_s7 + $0x78] sm:$0xff]  ;;  %v575_v42 = vld [vmem:[%s4708_s7 + $0x60] sm:$0xff] }
 0x19a   :  { %v343_v48 = vrot.slane %v324_v46, 3  ;;  %v344_v49 = vrot.slane %v325_v47, 3  ;;  %v382_v50 = vrot.slane %v3673_v44, 3  ;;  %v383_v51 = vrot.slane %v367_v45, 3 }
 0x19b   :  { %v336_v53 = vrot.slane %v324_v46, 2  ;;  %v337_v54 = vrot.slane %v325_v47, 2  ;;  %v376_v55 = vrot.slane %v3673_v44, 2  ;;  %v377_v56 = vrot.slane %v367_v45, 2 }
 0x19c   :  { %v345_v57 = vsel %vm342_vm3, %v343_v48, %v344_v49  ;;  %v384_v52 = vsel %vm342_vm3, %v382_v50, %v383_v51  ;;  %v350_v59 = vrot.slane %v324_v46, 4  ;;  %v351_v60 = vrot.slane %v325_v47, 4  ;;  %v574_v48 = vld [vmem:[%s4708_s7 + $0x58] sm:$0xff]  ;;  %v571_v50 = vld [vmem:[%s4708_s7 + $0x40] sm:$0xff]  ;;  %v572_v51 = vld [vmem:[%s4708_s7 + $0x48] sm:$0xff] }
 0x19d   :  { %v3098_v63 = vpack.i.bf16 %v384_v52, %v345_v57  ;;  %v338_v0 = vsel %vm335_vm4, %v336_v53, %v337_v54  ;;  %v378_v1 = vsel %vm335_vm4, %v376_v55, %v377_v56  ;;  %v388_v2 = vrot.slane %v3673_v44, 4  ;;  %v569_v54 = vld [vmem:[%s4708_s7 + $0x30] sm:$0xff]  ;;  %v570_v55 = vld [vmem:[%s4708_s7 + $0x38] sm:$0xff]  ;;  %v567_v57 = vld [vmem:[%s4708_s7 + $0x20] sm:$0xff] }
 0x19e   :  { %v3093_v3 = vpack.i.bf16 %v378_v1, %v338_v0  ;;  %v352_v4 = vsel %vm349_vm5, %v350_v59, %v351_v60  ;;  %v389_v5 = vrot.slane %v367_v45, 4  ;;  %v329_v6 = vrot.slane %v324_v46, 1  ;;  %v568_v52 = vld [vmem:[%s4708_s7 + $0x28] sm:$0xff]  ;;  %v565_v60 = vld [vmem:[%s4708_s7 + $0x10] sm:$0xff] }
 0x19f   :  { %3099 = vrot.lane.b32.xlu1 %v3098_v63, %s3344_s27  ;;  %v330_v7 = vrot.slane %v325_v47, 1  ;;  %v370_v8 = vrot.slane %v3673_v44, 1  ;;  %v371_v9 = vrot.slane %v367_v45, 1  ;;  %v576_v45 = vld [vmem:[%s4708_s7 + $0x68] sm:$0xff]  ;;  %v573_v47 = vld [vmem:[%s4708_s7 + $0x50] sm:$0xff]  ;;  %v589_v53 = vpack.c.bf16 %v572_v51, %v571_v50  ;;  %v563_v63 = vld [vmem:[%s4708_s7] sm:$0xff] }
 0x1a0   :  { %3094 = vrot.lane.b32.xlu0 %v3093_v3, %s3345_s5  ;;  %v390_v11 = vsel %vm349_vm5, %v388_v2, %v389_v5  ;;  %v590_v49 = vpack.c.bf16 %v574_v48, %v573_v47  ;;  %v588_v56 = vpack.c.bf16 %v570_v55, %v569_v54  ;;  %v587_v59 = vpack.c.bf16 %v568_v52, %v567_v57  ;;  %v564_v0 = vld [vmem:[%s4708_s7 + $0x8] sm:$0xff]  ;;  %v2736_v2 = vld [vmem:[%s4707_s6] ss:$0 sm:$0xff]  ;;  %v682_v54 = vld [vmem:[%s4710_s9 + $0xd0] sm:$0xff]  ;;  %s3351_s6 = smov [#allocation6]  }
 0x1a1   :  { %v331_v12 = vsel %vm328_vm6, %v329_v6, %v330_v7  ;;  %v372_v13 = vsel %vm328_vm6, %v370_v8, %v371_v9  ;;  %v3108_v14 = vpack.i.bf16 %v390_v11, %v352_v4  ;;  %v586_v62 = vpack.c.bf16 %v566_v61, %v565_v60  ;;  %v681_v47 = vld [vmem:[%s4710_s9 + $0xc8] sm:$0xff]  ;;  %v684_v48 = vld [vmem:[%s4710_s9 + $0xe0] sm:$0xff] }
 0x1a2   :  { %v3103_v15 = vpack.i.bf16 %v372_v13, %v331_v12  ;;  %v585_v1 = vpack.c.bf16 %v564_v0, %v563_v63  ;;  %v685_v55 = vld [vmem:[%s4710_s9 + $0xe8] sm:$0xff]  ;;  %v3348_v57 = vmov 0.0   ;;  %v676_v61 = vld [vmem:[%s4710_s9 + $0xa0] sm:$0xff] }
 0x1a3   :  { %2905 = vmatprep.subr.bf16.mxu1 %v3348_v57  ;;  %v701_v52 = vpack.c.bf16 %v685_v55, %v682_v54  ;;  %v877_v54 = vld [vmem:[%s4711_s10 + $0xc8] sm:$0xff]  ;;  %v880_v55 = vld [vmem:[%s4711_s10 + $0xe0] sm:$0xff] }
 0x1a4   :  { %3109 = vrot.lane.b32.xlu0 %v3108_v14, %s3346_s28  ;;  %3104 = vrot.lane.b32.xlu1 %v3103_v15, %s3347_s29  ;;  %v581_v14 = vld [vmem:[%s4708_s7 + $0x90] sm:$0xff]  ;;  %v582_v15 = vld [vmem:[%s4708_s7 + $0x98] sm:$0xff] }
 0x211   :  { %v3100_v16 = vpop.permute.xlu1 %3099 }
 0x212   :  { %v3095_v17 = vpop.permute.xlu0 %3094  ;;  %v3102_v18 = vunpack.i.h.bf16 %v3100_v16  ;;  %v3101_v19 = vunpack.i.l.bf16 %v3100_v16 }
 0x213   :  { %v3097_v20 = vunpack.i.h.bf16 %v3095_v17  ;;  %v3096_v21 = vunpack.i.l.bf16 %v3095_v17 }
 0x215   :  { %v360_v28 = vsel %vm359_vm7, %v3096_v21, %v3101_v19  ;;  %v396_v29 = vsel %vm359_vm7, %v3097_v20, %v3102_v18 }
 0x216   :  { %v3110_v22 = vpop.permute.xlu0 %3109  ;;  %v3105_v23 = vpop.permute.xlu1 %3104 }
 0x217   :  { %v3112_v24 = vunpack.i.h.bf16 %v3110_v22  ;;  %v3111_v25 = vunpack.i.l.bf16 %v3110_v22  ;;  %v3107_v26 = vunpack.i.h.bf16 %v3105_v23  ;;  %v3106_v27 = vunpack.i.l.bf16 %v3105_v23 }
 0x218   :  { %v594_v23 = vpack.c.bf16 %v582_v15, %v581_v14 }
 0x219   :  { %v394_v30 = vsel %vm117_vm0, %v3673_v44, %v3107_v26  ;;  %v356_v31 = vsel %vm117_vm0, %v324_v46, %v3106_v27  ;;  %v362_v32 = vsel %vm361_vm8, %v360_v28, %v3111_v25  ;;  %v397_v33 = vsel %vm361_vm8, %v396_v29, %v3112_v24  ;;  %v579_v27 = vld [vmem:[%s4708_s7 + $0x80] sm:$0xff]  ;;  %v580_v28 = vld [vmem:[%s4708_s7 + $0x88] sm:$0xff] }
 0x21a   :  { %v429_v34 = vpack.c.bf16 %v397_v33, %v362_v32  ;;  %v358_v35 = vsel %vm357_vm9, %v356_v31, %v3096_v21  ;;  %v395_v36 = vsel %vm357_vm9, %v394_v30, %v3097_v20  ;;  %v592_v44 = vpack.c.bf16 %v578_v41, %v577_v38 }
 0x21b   :  { %v428_v37 = vpack.c.bf16 %v395_v36, %v358_v35  ;;  %v591_v46 = vpack.c.bf16 %v576_v45, %v575_v42  ;;  %v593_v42 = vpack.c.bf16 %v580_v28, %v579_v27  ;;  %v671_v27 = vld [vmem:[%s4710_s9 + $0x78] sm:$0xff]  ;;  %v670_v28 = vld [vmem:[%s4710_s9 + $0x70] sm:$0xff] }
 0x21c   :  { %2737 = vmatprep.mubr.msk.bf16.mxu1 %vm452_vm10, %v429_v34  ;;  %606 = vmatpush1.bf16.msra.mxu0 %v592_v44 }
 0x21d   :  { %489 = vmatmul.mubr.bf16.vlgmr.msra.gmra.mxu1 %v428_v37  ;;  %607 = vmatprep.subr.bf16.mxu0 %v3343_v58 }
 0x21e   :  { %2906 = vmatpush3.bf16.msra.mxu1 %v701_v52  ;;  %2915 = vmatprep.mubr.msk.bf16.mxu1 %vm3349_vm11, %v3348_v57  ;;  %v2738_v52 = vld [vmem:[%s4709_s8] ss:$0 sm:$0xff] }
 0x21f   :  { %2907 = vmatprep.subr.bf16.mxu1 %v3348_v57 }
 0x220   :  { %608 = vmatpush1.bf16.msra.mxu0 %v591_v46 }
 0x221   :  { %609 = vmatprep.subr.bf16.mxu0 %v3343_v58 }
 0x224   :  { %610 = vmatpush1.bf16.msra.mxu0 %v590_v49 }
 0x225   :  { %611 = vmatprep.subr.bf16.mxu0 %v3343_v58 }
 0x228   :  { %612 = vmatpush1.bf16.msra.mxu0 %v589_v53 }
 0x229   :  { %613 = vmatprep.subr.bf16.mxu0 %v3343_v58 }
 0x22c   :  { %614 = vmatpush1.bf16.msra.mxu0 %v588_v56  ;;  %v700_v56 = vpack.c.bf16 %v684_v48, %v681_v47  ;;  %v656_v47 = vld [vmem:[%s4710_s9] sm:$0xff]  ;;  %v659_v48 = vld [vmem:[%s4710_s9 + $0x18] sm:$0xff] }
 0x22d   :  { %615 = vmatprep.subr.bf16.mxu0 %v3343_v58 }
 0x230   :  { %616 = vmatpush1.bf16.msra.mxu0 %v587_v59 }
 0x231   :  { %617 = vmatprep.subr.bf16.mxu0 %v3343_v58 }
 0x234   :  { %618 = vmatpush1.bf16.msra.mxu0 %v586_v62  ;;  %v679_v62 = vld [vmem:[%s4710_s9 + $0xb8] sm:$0xff] }
 0x235   :  { %619 = vmatprep.subr.bf16.mxu0 %v3343_v58  ;;  %v698_v0 = vpack.c.bf16 %v679_v62, %v676_v61 }
 0x237   :  { %2908 = vmatpush3.bf16.msra.mxu1 %v698_v0 }
 0x238   :  { %620 = vmatpush1.bf16.msra.mxu0 %v585_v1  ;;  %2909 = vmatprep.subr.bf16.mxu1 %v3348_v57 }
 0x239   :  { %633 = vmatprep.subr.bf16.mxu0 %v3343_v58 }
 0x23c   :  { %634 = vmatpush2.bf16.msra.mxu0 %v594_v23  ;;  %v672_v23 = vld [vmem:[%s4710_s9 + $0x80] sm:$0xff] }
 0x23d   :  { %635 = vmatprep.subr.bf16.mxu0 %v3343_v58 }
 0x240   :  { %636 = vmatpush2.bf16.msra.mxu0 %v593_v42 }
 0x241   :  { %729 = vmatprep.subr.bf16.mxu0 %v700_v56  ;;  %v3917_v56 = vpack.c.bf16 %v880_v55, %v877_v54 }
 0x2dd   :  { %v490_v3 = vpop.f32.mrf.mxu1 }
 0x2de   :  { %v491_v4 = vadd.f32 %v2736_v2, %v490_v3 }
 0x2df   :  { %v492_v5 = vpop.f32.mrf.mxu1 }
 0x2e0   :  { %v497_v6 = vmax.f32 %v491_v4, 0.0 }
 0x2e1   :  { %v493_v7 = vpop.f32.mrf.mxu1 }
 0x2e2   :  { %v500_v8 = vrot.slane %v497_v6, 6  ;;  %v494_v9 = vadd.f32 %v2736_v2, %v493_v7 }
 0x2e3   :  { %v495_v10 = vpop.f32.mrf.mxu1 }
 0x2e4   :  { %v3768_v11 = vsel %vm323_vm2, 0.0, %v500_v8  ;;  %v503_v12 = vsel %vm323_vm2, %v500_v8, 0.0  ;;  %v498_v13 = vmax.f32 %v494_v9, 0.0 }
 0x2e5   :  { %v524_v16 = vrot.slane %v3768_v11, 4  ;;  %v513_v17 = vrot.slane %v503_v12, 2  ;;  %v525_v18 = vrot.slane %v503_v12, 4  ;;  %v512_v20 = vrot.slane %v3768_v11, 2 }
 0x2e6   :  { %v532_v19 = vrot.slane %v498_v13, 6  ;;  %v507_v21 = vrot.slane %v503_v12, 1  ;;  %v506_v22 = vrot.slane %v3768_v11, 1  ;;  %v519_v24 = vrot.slane %v503_v12, 3  ;;  %v675_v12 = vld [vmem:[%s4710_s9 + $0x98] sm:$0xff]  ;;  %v678_v13 = vld [vmem:[%s4710_s9 + $0xb0] sm:$0xff] }
 0x2e7   :  { %v526_v32 = vsel %vm349_vm5, %v524_v16, %v525_v18  ;;  %v514_v34 = vsel %vm335_vm4, %v512_v20, %v513_v17  ;;  %v518_v53 = vrot.slane %v3768_v11, 3  ;;  %v699_v17 = vpack.c.bf16 %v683_v40, %v680_v39  ;;  %v674_v20 = vld [vmem:[%s4710_s9 + $0x90] sm:$0xff]  ;;  %v871_v39 = vld [vmem:[%s4711_s10 + $0x98] sm:$0xff] }
 0x2e8   :  { %v534_v25 = vsel %vm323_vm2, 0.0, %v532_v19  ;;  %v535_v26 = vsel %vm323_vm2, %v532_v19, 0.0  ;;  %v508_v38 = vsel %vm328_vm6, %v506_v22, %v507_v21  ;;  %v697_v19 = vpack.c.bf16 %v678_v13, %v675_v12  ;;  %v677_v21 = vld [vmem:[%s4710_s9 + $0xa8] sm:$0xff]  ;;  %v874_v40 = vld [vmem:[%s4711_s10 + $0xb0] sm:$0xff] }
 0x2e9   :  { %v539_v29 = vrot.slane %v535_v26, 1  ;;  %v545_v30 = vrot.slane %v535_v26, 2  ;;  %v556_v31 = vrot.slane %v534_v25, 4  ;;  %v557_v33 = vrot.slane %v535_v26, 4  ;;  %v669_v22 = vld [vmem:[%s4710_s9 + $0x68] sm:$0xff] }
 0x2ea   :  { %v544_v35 = vrot.slane %v534_v25, 2  ;;  %v538_v36 = vrot.slane %v534_v25, 1  ;;  %v551_v37 = vrot.slane %v535_v26, 3  ;;  %v550_v41 = vrot.slane %v534_v25, 3  ;;  %v668_v26 = vld [vmem:[%s4710_s9 + $0x60] sm:$0xff] }
 0x2eb   :  { %v558_v44 = vsel %vm349_vm5, %v556_v31, %v557_v33  ;;  %v520_v60 = vsel %vm342_vm3, %v518_v53, %v519_v24  ;;  %v696_v24 = vpack.c.bf16 %v677_v21, %v674_v20  ;;  %v666_v33 = vld [vmem:[%s4710_s9 + $0x50] sm:$0xff]  ;;  %v868_v20 = vld [vmem:[%s4711_s10 + $0x80] sm:$0xff] }
 0x2ec   :  { %v546_v45 = vsel %vm335_vm4, %v544_v35, %v545_v30  ;;  %v540_v46 = vsel %vm328_vm6, %v538_v36, %v539_v29  ;;  %v584_v49 = vpack.c.bf16 %v558_v44, %v526_v32  ;;  %v552_v59 = vsel %vm342_vm3, %v550_v41, %v551_v37  ;;  %v673_v30 = vld [vmem:[%s4710_s9 + $0x88] sm:$0xff]  ;;  %v663_v32 = vld [vmem:[%s4710_s9 + $0x38] sm:$0xff]  ;;  %v662_v35 = vld [vmem:[%s4710_s9 + $0x30] sm:$0xff] }
 0x2ed   :  { %v3118_v50 = vpack.i.bf16 %v546_v45, %v514_v34  ;;  %v3113_v51 = vpack.i.bf16 %v540_v46, %v508_v38  ;;  %v3123_v63 = vpack.i.bf16 %v552_v59, %v520_v60  ;;  %v693_v29 = vpack.c.bf16 %v671_v27, %v668_v26  ;;  %v665_v36 = vld [vmem:[%s4710_s9 + $0x48] sm:$0xff]  ;;  %v664_v37 = vld [vmem:[%s4710_s9 + $0x40] sm:$0xff]  ;;  %v667_v41 = vld [vmem:[%s4710_s9 + $0x58] sm:$0xff] }
 0x2ee   :  { %2739 = vmatprep.mubr.msk.bf16.mxu0 %vm317_vm1, %v584_v49  ;;  %v695_v31 = vpack.c.bf16 %v673_v30, %v670_v28  ;;  %v691_v34 = vpack.c.bf16 %v666_v33, %v663_v32  ;;  %v690_v38 = vpack.c.bf16 %v665_v36, %v662_v35  ;;  %v692_v42 = vpack.c.bf16 %v667_v41, %v664_v37  ;;  %v657_v44 = vld [vmem:[%s4710_s9 + $0x8] sm:$0xff]  ;;  %v660_v45 = vld [vmem:[%s4710_s9 + $0x20] sm:$0xff]  ;;  %v658_v49 = vld [vmem:[%s4710_s9 + $0x10] sm:$0xff] }
 0x2ef   :  { %3119 = vrot.lane.b32.xlu0 %v3118_v50, %s3346_s28  ;;  %3114 = vrot.lane.b32.xlu1 %v3113_v51, %s3342_s4  ;;  %v688_v46 = vpack.c.bf16 %v660_v45, %v657_v44  ;;  %v687_v50 = vpack.c.bf16 %v659_v48, %v656_v47  ;;  %v661_v51 = vld [vmem:[%s4710_s9 + $0x28] sm:$0xff]  ;;  %v866_v26 = vld [vmem:[%s4711_s10 + $0x70] sm:$0xff]  ;;  %s2715_s9 = sshll.u32 %s3351_s6, 4  ;;  %s2716_s9 = int_to_ptr.vmem [resolvable:$true] %s2715_s9 }
 0x2f0   :  { %2910 = vmatpush3.bf16.msra.mxu1 %v695_v31  ;;  %v689_v53 = vpack.c.bf16 %v661_v51, %v658_v49  ;;  %v869_v27 = vld [vmem:[%s4711_s10 + $0x88] sm:$0xff]  ;;  %v859_v28 = vld [vmem:[%s4711_s10 + $0x38] sm:$0xff]  ;;  %v858_v32 = vld [vmem:[%s4711_s10 + $0x30] sm:$0xff]  ;;  %v704_v51 = vlaneseq  ;;  %s3321_s22 = scalar_lea.vmem %s2716_s9, 32  ;;  %p3322_p8 = scmp.lt.s32.totalorder %s2716_s9, %s2716_s9 }
 0x2f1   :  { %2911 = vmatprep.subr.bf16.mxu1 %v3348_v57  ;;  %v4005_v31 = vpack.c.bf16 %v869_v27, %v866_v26  ;;  %v860_v35 = vld [vmem:[%s4711_s10 + $0x40] sm:$0xff]  ;;  %v863_v36 = vld [vmem:[%s4711_s10 + $0x58] sm:$0xff]  ;;  %v853_v37 = vld [vmem:[%s4711_s10 + $0x8] sm:$0xff] }
 0x2f2   :  { %v852_v44 = vld [vmem:[%s4711_s10] sm:$0xff]  ;;  %v854_v47 = vld [vmem:[%s4711_s10 + $0x10] sm:$0xff]  ;;  %v857_v48 = vld [vmem:[%s4711_s10 + $0x28] sm:$0xff] }
 0x2f3   :  { %3129 = vrot.lane.b32.xlu0 %v3128_v43, %s3342_s4  ;;  %3124 = vrot.lane.b32.xlu1 %v3123_v63, %s3345_s5 }
 0x2f4   :  { %2912 = vmatpush3.bf16.msra.mxu1 %v692_v42  ;;  %v4033_v42 = vpack.c.bf16 %v863_v36, %v860_v35 }
 0x2f5   :  { %2913 = vmatprep.subr.bf16.mxu1 %v3348_v57 }
 0x2f8   :  { %2914 = vmatpush3.bf16.msra.mxu1 %v689_v53  ;;  %v4089_v53 = vshrl.u32 %v704_v51, 7 }
 0x2f9   :  { %2919 = vmatprep.subr.bf16.mxu1 %v3348_v57 }
 0x2fa   :  { %v4092_v54 = vsub.s32 0, %v4089_v53  ;;  %v4095_v55 = vsub.s32 2, %v4089_v53  ;;  %vm2370_vm14 = vcmp.eq.s32.totalorder %v4089_v53, 0 }
 0x361   :  { %v3120_v1 = vpop.permute.xlu0 %3119  ;;  %v3115_v2 = vpop.permute.xlu1 %3114 }
 0x362   :  { %v3117_v3 = vunpack.i.h.bf16 %v3115_v2  ;;  %v3116_v4 = vunpack.i.l.bf16 %v3115_v2  ;;  %v3122_v5 = vunpack.i.h.bf16 %v3120_v1  ;;  %v3121_v6 = vunpack.i.l.bf16 %v3120_v1  ;;  %v876_v2 = vld [vmem:[%s4711_s10 + $0xc0] sm:$0xff] }
 0x364   :  { %v560_v7 = vsel %vm317_vm1, %v534_v25, %v3117_v3  ;;  %v528_v8 = vsel %vm317_vm1, %v3768_v11, %v3116_v4  ;;  %v694_v25 = vpack.c.bf16 %v672_v23, %v669_v22  ;;  %v879_v4 = vld [vmem:[%s4711_s10 + $0xd8] sm:$0xff]  ;;  %v864_v23 = vld [vmem:[%s4711_s10 + $0x60] sm:$0xff] }
 0x365   :  { %v3125_v9 = vpop.permute.xlu1 %3124  ;;  %v529_v11 = vsel %vm361_vm8, %v528_v8, %v3121_v6  ;;  %v561_v14 = vsel %vm361_vm8, %v560_v7, %v3122_v5  ;;  %v3130_v62 = vpop.permute.xlu0 %3129  ;;  %v878_v5 = vld [vmem:[%s4711_s10 + $0xd0] sm:$0xff]  ;;  %v881_v6 = vld [vmem:[%s4711_s10 + $0xe8] sm:$0xff]  ;;  %v3944_v12 = vpack.c.bf16 %v879_v4, %v876_v2 }
 0x366   :  { %v3127_v43 = vunpack.i.h.bf16 %v3125_v9  ;;  %v3126_v10 = vunpack.i.l.bf16 %v3125_v9  ;;  %v3132_v7 = vunpack.i.h.bf16 %v3130_v62  ;;  %v3131_v8 = vunpack.i.l.bf16 %v3130_v62 }
 0x367   :  { %v3946_v13 = vpack.c.bf16 %v881_v6, %v878_v5 }
 0x368   :  { %v530_v15 = vsel %vm357_vm9, %v529_v11, %v3126_v10  ;;  %v562_v16 = vsel %vm357_vm9, %v561_v14, %v3127_v43  ;;  %v870_v11 = vld [vmem:[%s4711_s10 + $0x90] sm:$0xff] }
 0x369   :  { %v583_v18 = vpack.c.bf16 %v562_v16, %v530_v15  ;;  %v3951_v15 = vpack.c.bf16 %v874_v40, %v871_v39  ;;  %v873_v16 = vld [vmem:[%s4711_s10 + $0xa8] sm:$0xff] }
 0x36a   :  { %v3972_v21 = vpack.c.bf16 %v873_v16, %v870_v11 }
 0x36b   :  { %638 = vmatmul.mubr.bf16.vlgmr.msra.gmra.mxu0 %v583_v18  ;;  %v875_v18 = vld [vmem:[%s4711_s10 + $0xb8] sm:$0xff] }
 0x36c   :  { %730 = vmatpush1.bf16.msra.mxu0 %v699_v17  ;;  %755 = vmatprep.mubr.bf16.mxu0 %v3343_v58  ;;  %v872_v17 = vld [vmem:[%s4711_s10 + $0xa0] sm:$0xff] }
 0x36d   :  { %731 = vmatprep.subr.bf16.mxu0 %v697_v19  ;;  %v865_v19 = vld [vmem:[%s4711_s10 + $0x68] sm:$0xff]  ;;  %v3974_v22 = vpack.c.bf16 %v875_v18, %v872_v17 }
 0x370   :  { %732 = vmatpush1.bf16.msra.mxu0 %v696_v24  ;;  %v3981_v24 = vpack.c.bf16 %v868_v20, %v865_v19 }
 0x371   :  { %733 = vmatprep.subr.bf16.mxu0 %v694_v25  ;;  %v867_v25 = vld [vmem:[%s4711_s10 + $0x78] sm:$0xff] }
 0x372   :  { %v4003_v30 = vpack.c.bf16 %v867_v25, %v864_v23 }
 0x374   :  { %734 = vmatpush1.bf16.msra.mxu0 %v693_v29  ;;  %v862_v29 = vld [vmem:[%s4711_s10 + $0x50] sm:$0xff] }
 0x375   :  { %735 = vmatprep.subr.bf16.mxu0 %v691_v34  ;;  %v4012_v33 = vpack.c.bf16 %v862_v29, %v859_v28  ;;  %v861_v34 = vld [vmem:[%s4711_s10 + $0x48] sm:$0xff] }
 0x376   :  { %v4031_v41 = vpack.c.bf16 %v861_v34, %v858_v32 }
 0x378   :  { %736 = vmatpush1.bf16.msra.mxu0 %v690_v38  ;;  %v856_v38 = vld [vmem:[%s4711_s10 + $0x20] sm:$0xff] }
 0x379   :  { %737 = vmatprep.subr.bf16.mxu0 %v688_v46  ;;  %v4040_v45 = vpack.c.bf16 %v856_v38, %v853_v37  ;;  %v855_v46 = vld [vmem:[%s4711_s10 + $0x18] sm:$0xff]  ;;  %s3317_s10 = scalar_lea.vmem %s2716_s9, 16 }
 0x37a   :  { %v4053_v49 = vpack.c.bf16 %v855_v46, %v852_v44  ;;  %p3318_p7 = scmp.ne.s32.totalorder %s2716_s9, %s3317_s10  ;;  %p3323_p9 = scmp.lt.s32.totalorder %s3321_s22, %s3317_s10 }
 0x37c   :  { %738 = vmatpush1.bf16.msra.mxu0 %v687_v50  ;;  %v4055_v50 = vpack.c.bf16 %v857_v48, %v854_v47  ;;  %p3324_p10 = por %p3323_p9, %p3322_p8 }
 0x37d   :  { %906 = vmatprep.subr.bf16.mxu0 %v3917_v56 }
 0x37e   :  { %p3325_p11 = pnand %p3324_p10, %p3318_p7 }
 0x42b   :  { %v639_v59 = vpop.f32.mrf.mxu0 }
 0x42c   :  { %v640_v60 = vadd.f32 %v2738_v52, %v639_v59  ;;  %v4101_v59 = vsub.s32 1, %v4089_v53 }
 0x42d   :  { %v641_v61 = vpop.f32.mrf.mxu0 }
 0x42e   :  { %v646_v0 = vmax.f32 %v640_v60, 0.0 }
 0x42f   :  { %v642_v63 = vpop.f32.mrf.mxu0 }
 0x430   :  { %v643_v1 = vadd.f32 %v2738_v52, %v642_v63  ;;  %v654_v43 = vsel %vm317_vm1, %v646_v0, %v3131_v8  ;;  %v702_v52 = vld [vmem:[%s4712_s11] sm:$0x7]  ;;  %s3350_s11 = smov 80  }
 0x431   :  { %v644_v3 = vpop.f32.mrf.mxu0  ;;  %v707_v60 = vrot.slane %v702_v52, %v4092_v54  ;;  %v715_v61 = vrot.slane %v702_v52, %v4095_v55  ;;  %v711_v62 = vrot.slane %v702_v52, %v4101_v59 }
 0x432   :  { %v647_v9 = vmax.f32 %v643_v1, 0.0 }
 0x434   :  { %v655_v10 = vsel %vm317_vm1, %v647_v9, %v3132_v7 }
 0x435   :  { %v686_v14 = vpack.c.bf16 %v655_v10, %v654_v43 }
 0x437   :  { %2740 = vmatmul.mubr.msk.bf16.vlgmr.msra.gmra.mxu0 %vm719_vm12, %v686_v14  ;;  %2916 = vmatmul.mubr.msk.bf16.vlgmr.msra.gmra.mxu1 %vm719_vm12, %v686_v14 }
 0x438   :  { %907 = vmatpush1.bf16.msra.mxu0 %v3944_v12  ;;  %2920 = vmatpush3.bf16.msra.mxu1 %v3946_v13 }
 0x439   :  { %908 = vmatprep.subr.bf16.mxu0 %v3951_v15  ;;  %2921 = vmatprep.subr.bf16.mxu1 %v3348_v57 }
 0x43a   :  { %932 = vmatprep.mubr.bf16.mxu0 %v3343_v58  ;;  %2929 = vmatprep.mubr.msk.bf16.mxu1 %vm3349_vm11, %v3348_v57 }
 0x43c   :  { %909 = vmatpush1.bf16.msra.mxu0 %v3972_v21  ;;  %2922 = vmatpush3.bf16.msra.mxu1 %v3974_v22 }
 0x43d   :  { %910 = vmatprep.subr.bf16.mxu0 %v3981_v24  ;;  %2923 = vmatprep.subr.bf16.mxu1 %v3348_v57 }
 0x440   :  { %911 = vmatpush1.bf16.msra.mxu0 %v4003_v30  ;;  %2924 = vmatpush3.bf16.msra.mxu1 %v4005_v31 }
 0x441   :  { %912 = vmatprep.subr.bf16.mxu0 %v4012_v33  ;;  %2925 = vmatprep.subr.bf16.mxu1 %v3348_v57 }
 0x444   :  { %913 = vmatpush1.bf16.msra.mxu0 %v4031_v41  ;;  %2926 = vmatpush3.bf16.msra.mxu1 %v4033_v42 }
 0x445   :  { %914 = vmatprep.subr.bf16.mxu0 %v4040_v45  ;;  %2927 = vmatprep.subr.bf16.mxu1 %v3348_v57 }
 0x448   :  { %915 = vmatpush1.bf16.msra.mxu0 %v4053_v49  ;;  %2928 = vmatpush3.bf16.msra.mxu1 %v4055_v50 }
 0x449   :  { %1087 = vmatprep.subr.bf16.mxu0 %v3917_v56  ;;  %2933 = vmatprep.subr.bf16.mxu1 %v3348_v57 }
 0x44b   :  { %933 = vmatmul.mubr.bf16.vlgmr.msra.gmra.mxu0 %v3343_v58  ;;  %2930 = vmatmul.mubr.bf16.vlgmr.msra.gmra.mxu1 %v3343_v58 }
 0x44c   :  { %1088 = vmatpush1.bf16.msra.mxu0 %v3944_v12  ;;  %2934 = vmatpush3.bf16.msra.mxu1 %v3946_v13 }
 0x44d   :  { %1089 = vmatprep.subr.bf16.mxu0 %v3951_v15  ;;  %2935 = vmatprep.subr.bf16.mxu1 %v3348_v57 }
 0x44e   :  { %1113 = vmatprep.mubr.bf16.mxu0 %v3343_v58  ;;  %2943 = vmatprep.mubr.msk.bf16.mxu1 %vm3349_vm11, %v3348_v57 }
 0x450   :  { %1090 = vmatpush1.bf16.msra.mxu0 %v3972_v21  ;;  %2936 = vmatpush3.bf16.msra.mxu1 %v3974_v22 }
 0x451   :  { %1091 = vmatprep.subr.bf16.mxu0 %v3981_v24  ;;  %2937 = vmatprep.subr.bf16.mxu1 %v3348_v57 }
 0x454   :  { %1092 = vmatpush1.bf16.msra.mxu0 %v4003_v30  ;;  %2938 = vmatpush3.bf16.msra.mxu1 %v4005_v31 }
 0x455   :  { %1093 = vmatprep.subr.bf16.mxu0 %v4012_v33  ;;  %2939 = vmatprep.subr.bf16.mxu1 %v3348_v57 }
 0x458   :  { %1094 = vmatpush1.bf16.msra.mxu0 %v4031_v41  ;;  %2940 = vmatpush3.bf16.msra.mxu1 %v4033_v42 }
 0x459   :  { %1095 = vmatprep.subr.bf16.mxu0 %v4040_v45  ;;  %2941 = vmatprep.subr.bf16.mxu1 %v3348_v57 }
 0x45c   :  { %1096 = vmatpush1.bf16.msra.mxu0 %v4053_v49  ;;  %2942 = vmatpush3.bf16.msra.mxu1 %v4055_v50 }
 0x45d   :  { %1267 = vmatprep.subr.bf16.mxu0 %v3917_v56  ;;  %2947 = vmatprep.subr.bf16.mxu1 %v3348_v57 }
 0x4f7   :  { %v757_v63 = vpop.f32.mrf.mxu0  ;;  %v800_v0 = vpop.f32.mrf.mxu1 }
 0x4f8   :  { %v758_v1 = vadd.f32 %v757_v63, %v707_v60  ;;  %v801_v2 = vadd.f32 %v800_v0, %v715_v61 }
 0x4f9   :  { %v759_v3 = vpop.f32.mrf.mxu0  ;;  %v2917_v4 = vpop.f32.mrf.mxu1 }
 0x4fa   :  { %807 = vst [vmem:[#allocation2] sm:$0xff] %v758_v1  ;;  %809 = vst.msk [vmem:[#allocation2 + $0x10] sm:$0xff] %vm361_vm8, %v801_v2  ;;  %v760_v5 = vadd.f32 %v759_v3, %v711_v62 }
 0x4fb   :  { %v761_v6 = vpop.f32.mrf.mxu0  ;;  %v803_v7 = vpop.f32.mrf.mxu1 }
 0x4fc   :  { %808 = vst [vmem:[#allocation2 + $0x8] sm:$0xff] %v760_v5  ;;  %v762_v8 = vadd.f32 %v761_v6, %v707_v60  ;;  %v804_v9 = vadd.f32 %v803_v7, %v715_v61 }
 0x4fd   :  { %v763_v39 = vpop.f32.mrf.mxu0  ;;  %v2918_v40 = vpop.f32.mrf.mxu1 }
 0x4fe   :  { %810 = vst [vmem:[#allocation2 + $0x18] sm:$0xff] %v762_v8  ;;  %812 = vst.msk [vmem:[#allocation2 + $0x28] sm:$0xff] %vm361_vm8, %v804_v9  ;;  %v764_v43 = vadd.f32 %v763_v39, %v711_v62 }
 0x500   :  { %811 = vst [vmem:[#allocation2 + $0x20] sm:$0xff] %v764_v43 }
 0x503   :  { %v813_v10 = vld [vmem:[#allocation2] ss:$8 sm:$0x7]  ;;  %v4108_v11 = vld [vmem:[#allocation2 + $0x1] ss:$8 sm:$0x7] }
 0x504   :  { %v4110_v14 = vld [vmem:[#allocation2 + $0x2] ss:$8 sm:$0x7]  ;;  %v820_v16 = vrot.slane %v813_v10, %v4092_v54  ;;  %v828_v18 = vrot.slane %v813_v10, %v4095_v55  ;;  %v824_v19 = vrot.slane %v813_v10, %v4101_v59  ;;  %v1037_v23 = vrot.slane %v4108_v11, %v4092_v54  ;;  %v4129_v34 = vld [vmem:[#allocation2 + $0x3] ss:$8 sm:$0x7] }
 0x505   :  { %v1045_v25 = vrot.slane %v4108_v11, %v4095_v55  ;;  %v1218_v32 = vrot.slane %v4110_v14, %v4092_v54  ;;  %v1226_v37 = vrot.slane %v4110_v14, %v4095_v55  ;;  %v4147_v60 = vld [vmem:[#allocation2 + $0x4] ss:$8 sm:$0x7]  ;;  %v1398_v3 = vrot.slane %v4129_v34, %v4092_v54 }
 0x506   :  { %v1406_v7 = vrot.slane %v4129_v34, %v4095_v55  ;;  %v1578_v40 = vrot.slane %v4147_v60, %v4092_v54 }
 0x507   :  { %v815_v17 = vld [vmem:[#allocation2 + $0x18] ss:$8 sm:$0x7]  ;;  %v4115_v20 = vld [vmem:[#allocation2 + $0x19] ss:$8 sm:$0x7] }
 0x508   :  { %v836_v26 = vrot.slane %v815_v17, %v4092_v54  ;;  %v844_v27 = vrot.slane %v815_v17, %v4095_v55  ;;  %v1053_v28 = vrot.slane %v4115_v20, %v4092_v54  ;;  %v4125_v29 = vld [vmem:[#allocation2 + $0x1a] ss:$8 sm:$0x7]  ;;  %v1061_v35 = vrot.slane %v4115_v20, %v4095_v55  ;;  %v4139_v44 = vld [vmem:[#allocation2 + $0x1b] ss:$8 sm:$0x7] }
 0x509   :  { %v1234_v36 = vrot.slane %v4125_v29, %v4092_v54  ;;  %v1242_v38 = vrot.slane %v4125_v29, %v4095_v55  ;;  %v840_v48 = vrot.slane %v815_v17, %v4101_v59  ;;  %v4149_v61 = vld [vmem:[#allocation2 + $0x1c] ss:$8 sm:$0x7]  ;;  %v1414_v6 = vrot.slane %v4139_v44, %v4092_v54 }
 0x50a   :  { %v849_v46 = vsel %vm848_vm13, %v820_v16, %v836_v26  ;;  %v851_v47 = vsel %vm848_vm13, %v828_v18, %v844_v27  ;;  %v4145_v52 = vsel %vm848_vm13, %v1037_v23, %v1053_v28  ;;  %v4152_v0 = vsel %vm848_vm13, %v1045_v25, %v1061_v35  ;;  %v4179_v18 = vld [vmem:[#allocation2 + $0x5] ss:$8 sm:$0x7] }
 0x50b   :  { %v934_v62 = vpop.f32.mrf.mxu0  ;;  %v975_v63 = vpop.f32.mrf.mxu1  ;;  %v4155_v1 = vsel %vm848_vm13, %v1218_v32, %v1234_v36  ;;  %v4158_v2 = vsel %vm848_vm13, %v1226_v37, %v1242_v38  ;;  %v1422_v39 = vrot.slane %v4139_v44, %v4095_v55  ;;  %v1594_v43 = vrot.slane %v4149_v61, %v4092_v54  ;;  %v4181_v23 = vld [vmem:[#allocation2 + $0x1d] ss:$8 sm:$0x7] }
 0x50c   :  { %v981_v4 = vadd.f32 %v934_v62, %v849_v46  ;;  %v4162_v5 = vadd.f32 %v975_v63, %v851_v47  ;;  %v1602_v10 = vrot.slane %v4149_v61, %v4095_v55  ;;  %v850_v16 = vsel %vm848_vm13, %v824_v19, %v840_v48  ;;  %v1931_v62 = vld [vmem:[#allocation2 + $0x6] ss:$8 sm:$0x7] }
 0x50d   :  { %v936_v8 = vpop.f32.mrf.mxu0  ;;  %v2931_v9 = vpop.f32.mrf.mxu1  ;;  %v1586_v17 = vrot.slane %v4147_v60, %v4095_v55  ;;  %v4184_v28 = vsel %vm848_vm13, %v1398_v3, %v1414_v6  ;;  %v4187_v32 = vsel %vm848_vm13, %v1406_v7, %v1422_v39  ;;  %v4190_v35 = vsel %vm848_vm13, %v1578_v40, %v1594_v43  ;;  %v1933_v63 = vld [vmem:[#allocation2 + $0x1e] ss:$8 sm:$0x7]  ;;  %v2111_v3 = vld [vmem:[#allocation2 + $0x7] ss:$8 sm:$0x7] }
 0x50e   :  { %v982_v25 = vadd.f32 %v936_v8, %v850_v16  ;;  %v1758_v38 = vrot.slane %v4179_v18, %v4092_v54  ;;  %v1774_v46 = vrot.slane %v4181_v23, %v4092_v54  ;;  %v1766_v47 = vrot.slane %v4179_v18, %v4095_v55  ;;  %v2113_v6 = vld [vmem:[#allocation2 + $0x1f] ss:$8 sm:$0x7] }
 0x50f   :  { %v938_v26 = vpop.f32.mrf.mxu0  ;;  %v978_v27 = vpop.f32.mrf.mxu1  ;;  %v4193_v19 = vsel %vm848_vm13, %v1586_v17, %v1602_v10  ;;  %v1782_v48 = vrot.slane %v4181_v23, %v4095_v55  ;;  %v1938_v9 = vrot.slane %v1931_v62, %v4092_v54  ;;  %v1954_v39 = vrot.slane %v1933_v63, %v4092_v54 }
 0x510   :  { %3133 = vtanh.f32 %v982_v25  ;;  %v4204_v7 = vsel %vm848_vm13, %v1758_v38, %v1774_v46  ;;  %v1946_v40 = vrot.slane %v1931_v62, %v4095_v55  ;;  %v1962_v43 = vrot.slane %v1933_v63, %v4095_v55 }
 0x511   :  { %v939_v36 = vpop.f32.mrf.mxu0  ;;  %v2932_v37 = vpop.f32.mrf.mxu1  ;;  %v4207_v8 = vsel %vm848_vm13, %v1766_v47, %v1782_v48  ;;  %v2118_v10 = vrot.slane %v2111_v3, %v4092_v54  ;;  %v2134_v16 = vrot.slane %v2113_v6, %v4092_v54  ;;  %v4216_v17 = vsel %vm848_vm13, %v1938_v9, %v1954_v39 }
 0x512   :  { %v4219_v26 = vsel %vm848_vm13, %v1946_v40, %v1962_v43  ;;  %v2126_v27 = vrot.slane %v2111_v3, %v4095_v55  ;;  %v2142_v36 = vrot.slane %v2113_v6, %v4095_v55  ;;  %v2742_v47 = vmul.f32 -1.442695, %v981_v4 }
 0x513   :  { %v4224_v37 = vsel %vm848_vm13, %v2118_v10, %v2134_v16  ;;  %v2743_v55 = vmul.f32 -1.442695, %v982_v25  ;;  %v2744_v25 = vmul.f32 -1.442695, %v4162_v5 }
 0x514   :  { %v4227_v38 = vsel %vm848_vm13, %v2126_v27, %v2142_v36  ;;  %3135 = vpow2.f32 %v2742_v47 }
 0x51d   :  { %v3134_v46 = vpop.eup %3133 }
 0x51e   :  { %1006 = vrot.lane.b32.xlu1 %v3134_v46, %s3345_s5 }
 0x521   :  { %v3136_v48 = vpop.eup %3135 }
 0x522   :  { %v987_v62 = vadd.f32 1.0, %v3136_v48 }
 0x524   :  { %3137 = vrcp.f32 %v987_v62 }
 0x525   :  { %3139 = vpow2.f32 %v2743_v55 }
 0x531   :  { %v3138_v63 = vpop.eup %3137 }
 0x532   :  { %v3140_v3 = vpop.eup %3139  ;;  %v1003_v10 = vmul.f32 0.0, %v3138_v63 }
 0x533   :  { %v993_v6 = vadd.f32 1.0, %v3140_v3 }
 0x535   :  { %3141 = vrcp.f32 %v993_v6 }
 0x542   :  { %v3142_v40 = vpop.eup %3141 }
 0x543   :  { %v1004_v43 = vmul.f32 0.0, %v3142_v40 }
 0x590   :  { %v1007_v9 = vpop.permute.xlu1 %1006 }
 0x591   :  { %v1009_v39 = vmul.f32 %v3138_v63, %v1007_v9 }
 0x593   :  { %1011 = vrot.lane.b32.xlu0 %v1009_v39, %s3350_s11 }
 0x605   :  { %v1012_v16 = vpop.permute.xlu0 %1011 }
 0x606   :  { %v4231_v4 = vadd.f32 %v1012_v16, %v1003_v10  ;;  %v4233_v27 = vadd.f32 %v1012_v16, %v1004_v43 }
 0x608   :  { %3143 = vtanh.f32 %v4231_v4 }
 0x609   :  { %3145 = vtanh.f32 %v4233_v27 }
 0x60a   :  { %3147 = vpow2.f32 %v2744_v25 }
 0x615   :  { %v3144_v36 = vpop.eup %3143 }
 0x616   :  { %v3146_v46 = vpop.eup %3145  ;;  %1020 = vrot.lane.b32.xlu1 %v3144_v36, %s3342_s4 }
 0x617   :  { %1022 = vrot.lane.b32.xlu0 %v3146_v46, %s3342_s4  ;;  %v3148_v47 = vpop.eup %3147 }
 0x618   :  { %v1000_v48 = vadd.f32 1.0, %v3148_v47 }
 0x61a   :  { %3149 = vrcp.f32 %v1000_v48  ;;  %v1041_v48 = vrot.slane %v4108_v11, %v4101_v59 }
 0x627   :  { %v3150_v39 = vpop.eup %3149 }
 0x688   :  { %v1021_v62 = vpop.permute.xlu1 %1020 }
 0x689   :  { %v1023_v63 = vpop.permute.xlu0 %1022  ;;  %v1027_v9 = vmul.f32 %v3142_v40, %v1021_v62  ;;  %v1057_v40 = vrot.slane %v4115_v20, %v4101_v59 }
 0x68a   :  { %v1024_v55 = vsel %vm317_vm1, %v1021_v62, %v1023_v63 }
 0x68b   :  { %v1028_v3 = vmul.f32 %v3150_v39, %v1024_v55  ;;  %v1068_v6 = vpack.c.bf16 %v1027_v9, %v1027_v9  ;;  %v1066_v9 = vsel %vm848_vm13, %v1041_v48, %v1057_v40 }
 0x68d   :  { %v1069_v43 = vpack.c.bf16 %v1028_v3, %v1028_v3  ;;  %1072 = vrot.lane.b32.xlu1 %v1068_v6, %s3344_s27 }
 0x68f   :  { %1074 = vrot.lane.b32.xlu0 %v1069_v43, %s3344_s27 }
 0x6ff   :  { %v1073_v10 = vpop.permute.xlu1 %1072 }
 0x701   :  { %v1075_v16 = vpop.permute.xlu0 %1074 }
 0x702   :  { %v1077_v5 = vsel %vm359_vm7, %v1073_v10, %v1075_v16 }
 0x703   :  { %2745 = vmatmul.mubr.msk.bf16.vlgmr.msra.gmra.mxu0 %vm719_vm12, %v1077_v5  ;;  %2944 = vmatmul.mubr.msk.bf16.vlgmr.msra.gmra.mxu1 %vm719_vm12, %v1077_v5 }
 0x704   :  { %1268 = vmatpush1.bf16.msra.mxu0 %v3944_v12  ;;  %2948 = vmatpush3.bf16.msra.mxu1 %v3946_v13 }
 0x705   :  { %1269 = vmatprep.subr.bf16.mxu0 %v3951_v15  ;;  %2949 = vmatprep.subr.bf16.mxu1 %v3348_v57 }
 0x706   :  { %1293 = vmatprep.mubr.bf16.mxu0 %v3343_v58  ;;  %2957 = vmatprep.mubr.msk.bf16.mxu1 %vm3349_vm11, %v3348_v57 }
 0x708   :  { %1270 = vmatpush1.bf16.msra.mxu0 %v3972_v21  ;;  %2950 = vmatpush3.bf16.msra.mxu1 %v3974_v22 }
 0x709   :  { %1271 = vmatprep.subr.bf16.mxu0 %v3981_v24  ;;  %2951 = vmatprep.subr.bf16.mxu1 %v3348_v57 }
 0x70c   :  { %1272 = vmatpush1.bf16.msra.mxu0 %v4003_v30  ;;  %2952 = vmatpush3.bf16.msra.mxu1 %v4005_v31 }
 0x70d   :  { %1273 = vmatprep.subr.bf16.mxu0 %v4012_v33  ;;  %2953 = vmatprep.subr.bf16.mxu1 %v3348_v57 }
 0x710   :  { %1274 = vmatpush1.bf16.msra.mxu0 %v4031_v41  ;;  %2954 = vmatpush3.bf16.msra.mxu1 %v4033_v42 }
 0x711   :  { %1275 = vmatprep.subr.bf16.mxu0 %v4040_v45  ;;  %2955 = vmatprep.subr.bf16.mxu1 %v3348_v57 }
 0x714   :  { %1276 = vmatpush1.bf16.msra.mxu0 %v4053_v49  ;;  %2956 = vmatpush3.bf16.msra.mxu1 %v4055_v50 }
 0x715   :  { %1447 = vmatprep.subr.bf16.mxu0 %v3917_v56  ;;  %2961 = vmatprep.subr.bf16.mxu1 %v3348_v57 }
 0x7c3   :  { %v1115_v36 = vpop.f32.mrf.mxu0  ;;  %v1156_v46 = vpop.f32.mrf.mxu1 }
 0x7c4   :  { %v1162_v25 = vadd.f32 %v1115_v36, %v4145_v52  ;;  %v1164_v47 = vadd.f32 %v1156_v46, %v4152_v0 }
 0x7c5   :  { %v1117_v62 = vpop.f32.mrf.mxu0  ;;  %v2945_v63 = vpop.f32.mrf.mxu1 }
 0x7c6   :  { %v1163_v39 = vadd.f32 %v1117_v62, %v1066_v9  ;;  %v2747_v10 = vmul.f32 -1.442695, %v1162_v25 }
 0x7c7   :  { %v1119_v55 = vpop.f32.mrf.mxu0  ;;  %v1159_v3 = vpop.f32.mrf.mxu1 }
 0x7c8   :  { %3151 = vtanh.f32 %v1163_v39  ;;  %v2748_v40 = vmul.f32 -1.442695, %v1163_v39 }
 0x7c9   :  { %v1120_v6 = vpop.f32.mrf.mxu0  ;;  %v2946_v43 = vpop.f32.mrf.mxu1  ;;  %3153 = vpow2.f32 %v2747_v10 }
 0x7ca   :  { %v2749_v6 = vmul.f32 -1.442695, %v1164_v47 }
 0x7d5   :  { %v3152_v20 = vpop.eup %3151 }
 0x7d6   :  { %1187 = vrot.lane.b32.xlu1 %v3152_v20, %s3345_s5  ;;  %v3154_v52 = vpop.eup %3153 }
 0x7d7   :  { %v1168_v0 = vadd.f32 1.0, %v3154_v52 }
 0x7d9   :  { %3155 = vrcp.f32 %v1168_v0 }
 0x7da   :  { %3157 = vpow2.f32 %v2748_v40 }
 0x7e6   :  { %v3156_v16 = vpop.eup %3155 }
 0x7e7   :  { %v3158_v36 = vpop.eup %3157  ;;  %v1184_v62 = vmul.f32 %v3156_v16, %v4231_v4 }
 0x7e8   :  { %v1174_v46 = vadd.f32 1.0, %v3158_v36 }
 0x7ea   :  { %3159 = vrcp.f32 %v1174_v46  ;;  %v1238_v46 = vrot.slane %v4125_v29, %v4101_v59 }
 0x7f7   :  { %v3160_v48 = vpop.eup %3159 }
 0x7f8   :  { %v1185_v63 = vmul.f32 %v3160_v48, %v4233_v27 }
 0x848   :  { %v1188_v11 = vpop.permute.xlu1 %1187 }
 0x849   :  { %v1190_v5 = vmul.f32 %v3156_v16, %v1188_v11 }
 0x84b   :  { %1192 = vrot.lane.b32.xlu0 %v1190_v5, %s3350_s11 }
 0x8bd   :  { %v1193_v25 = vpop.permute.xlu0 %1192 }
 0x8be   :  { %v4280_v9 = vadd.f32 %v1193_v25, %v1184_v62  ;;  %v4282_v55 = vadd.f32 %v1193_v25, %v1185_v63 }
 0x8c0   :  { %3161 = vtanh.f32 %v4280_v9 }
 0x8c1   :  { %3163 = vtanh.f32 %v4282_v55 }
 0x8c2   :  { %3165 = vpow2.f32 %v2749_v6 }
 0x8cd   :  { %v3162_v3 = vpop.eup %3161 }
 0x8ce   :  { %v3164_v39 = vpop.eup %3163  ;;  %1201 = vrot.lane.b32.xlu1 %v3162_v3, %s3342_s4  ;;  %v1222_v3 = vrot.slane %v4110_v14, %v4101_v59 }
 0x8cf   :  { %1203 = vrot.lane.b32.xlu0 %v3164_v39, %s3342_s4  ;;  %v3166_v4 = vpop.eup %3165 }
 0x8d0   :  { %v1181_v43 = vadd.f32 1.0, %v3166_v4  ;;  %v1247_v4 = vsel %vm848_vm13, %v1222_v3, %v1238_v46 }
 0x8d2   :  { %3167 = vrcp.f32 %v1181_v43 }
 0x8df   :  { %v3168_v52 = vpop.eup %3167 }
 0x940   :  { %v1202_v27 = vpop.permute.xlu1 %1201 }
 0x941   :  { %v1208_v20 = vmul.f32 %v3160_v48, %v1202_v27  ;;  %v1204_v10 = vpop.permute.xlu0 %1203 }
 0x942   :  { %v1205_v0 = vsel %vm317_vm1, %v1202_v27, %v1204_v10 }
 0x943   :  { %v1249_v16 = vpack.c.bf16 %v1208_v20, %v1208_v20  ;;  %v1209_v11 = vmul.f32 %v3168_v52, %v1205_v0 }
 0x945   :  { %v1250_v5 = vpack.c.bf16 %v1209_v11, %v1209_v11  ;;  %1253 = vrot.lane.b32.xlu1 %v1249_v16, %s3344_s27 }
 0x947   :  { %1255 = vrot.lane.b32.xlu0 %v1250_v5, %s3344_s27 }
 0x9b7   :  { %v1254_v40 = vpop.permute.xlu1 %1253 }
 0x9b9   :  { %v1256_v36 = vpop.permute.xlu0 %1255 }
 0x9ba   :  { %v1257_v47 = vsel %vm359_vm7, %v1254_v40, %v1256_v36 }
 0x9bb   :  { %2750 = vmatmul.mubr.msk.bf16.vlgmr.msra.gmra.mxu0 %vm719_vm12, %v1257_v47  ;;  %2958 = vmatmul.mubr.msk.bf16.vlgmr.msra.gmra.mxu1 %vm719_vm12, %v1257_v47 }
 0x9bc   :  { %1448 = vmatpush1.bf16.msra.mxu0 %v3944_v12  ;;  %2962 = vmatpush3.bf16.msra.mxu1 %v3946_v13 }
 0x9bd   :  { %1449 = vmatprep.subr.bf16.mxu0 %v3951_v15  ;;  %2963 = vmatprep.subr.bf16.mxu1 %v3348_v57 }
 0x9be   :  { %1473 = vmatprep.mubr.bf16.mxu0 %v3343_v58  ;;  %2971 = vmatprep.mubr.msk.bf16.mxu1 %vm3349_vm11, %v3348_v57 }
 0x9c0   :  { %1450 = vmatpush1.bf16.msra.mxu0 %v3972_v21  ;;  %2964 = vmatpush3.bf16.msra.mxu1 %v3974_v22 }
 0x9c1   :  { %1451 = vmatprep.subr.bf16.mxu0 %v3981_v24  ;;  %2965 = vmatprep.subr.bf16.mxu1 %v3348_v57 }
 0x9c4   :  { %1452 = vmatpush1.bf16.msra.mxu0 %v4003_v30  ;;  %2966 = vmatpush3.bf16.msra.mxu1 %v4005_v31 }
 0x9c5   :  { %1453 = vmatprep.subr.bf16.mxu0 %v4012_v33  ;;  %2967 = vmatprep.subr.bf16.mxu1 %v3348_v57 }
 0x9c8   :  { %1454 = vmatpush1.bf16.msra.mxu0 %v4031_v41  ;;  %2968 = vmatpush3.bf16.msra.mxu1 %v4033_v42 }
 0x9c9   :  { %1455 = vmatprep.subr.bf16.mxu0 %v4040_v45  ;;  %2969 = vmatprep.subr.bf16.mxu1 %v3348_v57 }
 0x9cc   :  { %1456 = vmatpush1.bf16.msra.mxu0 %v4053_v49  ;;  %2970 = vmatpush3.bf16.msra.mxu1 %v4055_v50 }
 0x9cd   :  { %1627 = vmatprep.subr.bf16.mxu0 %v3917_v56  ;;  %2975 = vmatprep.subr.bf16.mxu1 %v3348_v57 }
 0xa7b   :  { %v1295_v48 = vpop.f32.mrf.mxu0  ;;  %v1336_v62 = vpop.f32.mrf.mxu1 }
 0xa7c   :  { %v1342_v63 = vadd.f32 %v1295_v48, %v4155_v1  ;;  %v1344_v25 = vadd.f32 %v1336_v62, %v4158_v2 }
 0xa7d   :  { %v1297_v39 = vpop.f32.mrf.mxu0  ;;  %v2959_v6 = vpop.f32.mrf.mxu1 }
 0xa7e   :  { %v1343_v43 = vadd.f32 %v1297_v39, %v1247_v4  ;;  %v2752_v0 = vmul.f32 -1.442695, %v1342_v63  ;;  %v2754_v4 = vmul.f32 -1.442695, %v1344_v25 }
 0xa7f   :  { %v1299_v27 = vpop.f32.mrf.mxu0  ;;  %v1339_v20 = vpop.f32.mrf.mxu1 }
 0xa80   :  { %3169 = vtanh.f32 %v1343_v43  ;;  %v2753_v5 = vmul.f32 -1.442695, %v1343_v43 }
 0xa81   :  { %v1300_v10 = vpop.f32.mrf.mxu0  ;;  %v2960_v52 = vpop.f32.mrf.mxu1  ;;  %3171 = vpow2.f32 %v2752_v0 }
 0xa8d   :  { %v3170_v29 = vpop.eup %3169 }
 0xa8e   :  { %1367 = vrot.lane.b32.xlu1 %v3170_v29, %s3345_s5  ;;  %v3172_v1 = vpop.eup %3171 }
 0xa8f   :  { %v1348_v2 = vadd.f32 1.0, %v3172_v1 }
 0xa91   :  { %3173 = vrcp.f32 %v1348_v2 }
 0xa92   :  { %3175 = vpow2.f32 %v2753_v5 }
 0xa9e   :  { %v3174_v16 = vpop.eup %3173 }
 0xa9f   :  { %v3176_v40 = vpop.eup %3175  ;;  %v1364_v46 = vmul.f32 %v3174_v16, %v4280_v9 }
 0xaa0   :  { %v1354_v36 = vadd.f32 1.0, %v3176_v40 }
 0xaa2   :  { %3177 = vrcp.f32 %v1354_v36 }
 0xaaf   :  { %v3178_v47 = vpop.eup %3177 }
 0xab0   :  { %v1365_v48 = vmul.f32 %v3178_v47, %v4282_v55 }
 0xb00   :  { %v1368_v14 = vpop.permute.xlu1 %1367 }
 0xb01   :  { %v1370_v11 = vmul.f32 %v3174_v16, %v1368_v14  ;;  %v1418_v14 = vrot.slane %v4139_v44, %v4101_v59 }
 0xb03   :  { %1372 = vrot.lane.b32.xlu0 %v1370_v11, %s3350_s11 }
 0xb75   :  { %v1373_v62 = vpop.permute.xlu0 %1372 }
 0xb76   :  { %v4328_v63 = vadd.f32 %v1373_v62, %v1364_v46  ;;  %v4330_v3 = vadd.f32 %v1373_v62, %v1365_v48 }
 0xb78   :  { %3179 = vtanh.f32 %v4328_v63 }
 0xb79   :  { %3181 = vtanh.f32 %v4330_v3 }
 0xb7a   :  { %3183 = vpow2.f32 %v2754_v4 }
 0xb85   :  { %v3180_v39 = vpop.eup %3179 }
 0xb86   :  { %v3182_v6 = vpop.eup %3181  ;;  %1381 = vrot.lane.b32.xlu1 %v3180_v39, %s3342_s4 }
 0xb87   :  { %1383 = vrot.lane.b32.xlu0 %v3182_v6, %s3342_s4  ;;  %v3184_v9 = vpop.eup %3183 }
 0xb88   :  { %v1361_v43 = vadd.f32 1.0, %v3184_v9 }
 0xb8a   :  { %3185 = vrcp.f32 %v1361_v43 }
 0xb97   :  { %v3186_v10 = vpop.eup %3185 }
 0xbf8   :  { %v1382_v55 = vpop.permute.xlu1 %1381 }
 0xbf9   :  { %v1388_v27 = vmul.f32 %v3178_v47, %v1382_v55  ;;  %v1384_v20 = vpop.permute.xlu0 %1383  ;;  %v1402_v47 = vrot.slane %v4129_v34, %v4101_v59 }
 0xbfa   :  { %v1385_v52 = vsel %vm317_vm1, %v1382_v55, %v1384_v20 }
 0xbfb   :  { %v1429_v29 = vpack.c.bf16 %v1388_v27, %v1388_v27  ;;  %v1389_v0 = vmul.f32 %v3186_v10, %v1385_v52  ;;  %v1427_v62 = vsel %vm848_vm13, %v1402_v47, %v1418_v14 }
 0xbfd   :  { %v1430_v1 = vpack.c.bf16 %v1389_v0, %v1389_v0  ;;  %1433 = vrot.lane.b32.xlu1 %v1429_v29, %s3344_s27 }
 0xbff   :  { %1435 = vrot.lane.b32.xlu0 %v1430_v1, %s3344_s27 }
 0xc6f   :  { %v1434_v2 = vpop.permute.xlu1 %1433 }
 0xc71   :  { %v1436_v16 = vpop.permute.xlu0 %1435 }
 0xc72   :  { %v1437_v25 = vsel %vm359_vm7, %v1434_v2, %v1436_v16 }
 0xc73   :  { %2755 = vmatmul.mubr.msk.bf16.vlgmr.msra.gmra.mxu0 %vm719_vm12, %v1437_v25  ;;  %2972 = vmatmul.mubr.msk.bf16.vlgmr.msra.gmra.mxu1 %vm719_vm12, %v1437_v25 }
 0xc74   :  { %1628 = vmatpush1.bf16.msra.mxu0 %v3944_v12  ;;  %2976 = vmatpush3.bf16.msra.mxu1 %v3946_v13 }
 0xc75   :  { %1629 = vmatprep.subr.bf16.mxu0 %v3951_v15  ;;  %2977 = vmatprep.subr.bf16.mxu1 %v3348_v57 }
 0xc76   :  { %1653 = vmatprep.mubr.bf16.mxu0 %v3343_v58  ;;  %2985 = vmatprep.mubr.msk.bf16.mxu1 %vm3349_vm11, %v3348_v57 }
 0xc78   :  { %1630 = vmatpush1.bf16.msra.mxu0 %v3972_v21  ;;  %2978 = vmatpush3.bf16.msra.mxu1 %v3974_v22 }
 0xc79   :  { %1631 = vmatprep.subr.bf16.mxu0 %v3981_v24  ;;  %2979 = vmatprep.subr.bf16.mxu1 %v3348_v57 }
 0xc7c   :  { %1632 = vmatpush1.bf16.msra.mxu0 %v4003_v30  ;;  %2980 = vmatpush3.bf16.msra.mxu1 %v4005_v31 }
 0xc7d   :  { %1633 = vmatprep.subr.bf16.mxu0 %v4012_v33  ;;  %2981 = vmatprep.subr.bf16.mxu1 %v3348_v57 }
 0xc80   :  { %1634 = vmatpush1.bf16.msra.mxu0 %v4031_v41  ;;  %2982 = vmatpush3.bf16.msra.mxu1 %v4033_v42 }
 0xc81   :  { %1635 = vmatprep.subr.bf16.mxu0 %v4040_v45  ;;  %2983 = vmatprep.subr.bf16.mxu1 %v3348_v57 }
 0xc84   :  { %1636 = vmatpush1.bf16.msra.mxu0 %v4053_v49  ;;  %2984 = vmatpush3.bf16.msra.mxu1 %v4055_v50 }
 0xc85   :  { %1807 = vmatprep.subr.bf16.mxu0 %v3917_v56  ;;  %2989 = vmatprep.subr.bf16.mxu1 %v3348_v57 }
 0xd33   :  { %v1475_v11 = vpop.f32.mrf.mxu0  ;;  %v1516_v5 = vpop.f32.mrf.mxu1 }
 0xd34   :  { %v1522_v40 = vadd.f32 %v1475_v11, %v4184_v28  ;;  %v1524_v36 = vadd.f32 %v1516_v5, %v4187_v32 }
 0xd35   :  { %v1477_v46 = vpop.f32.mrf.mxu0  ;;  %v2973_v48 = vpop.f32.mrf.mxu1 }
 0xd36   :  { %v1523_v39 = vadd.f32 %v1477_v46, %v1427_v62  ;;  %v2757_v55 = vmul.f32 -1.442695, %v1522_v40  ;;  %v2759_v40 = vmul.f32 -1.442695, %v1524_v36 }
 0xd37   :  { %v1479_v6 = vpop.f32.mrf.mxu0  ;;  %v1519_v4 = vpop.f32.mrf.mxu1 }
 0xd38   :  { %3187 = vtanh.f32 %v1523_v39  ;;  %v2758_v10 = vmul.f32 -1.442695, %v1523_v39 }
 0xd39   :  { %v1480_v9 = vpop.f32.mrf.mxu0  ;;  %v2974_v43 = vpop.f32.mrf.mxu1  ;;  %3189 = vpow2.f32 %v2757_v55  ;;  %v1598_v55 = vrot.slane %v4149_v61, %v4101_v59 }
 0xd45   :  { %v3188_v44 = vpop.eup %3187 }
 0xd46   :  { %1547 = vrot.lane.b32.xlu1 %v3188_v44, %s3345_s5  ;;  %v3190_v28 = vpop.eup %3189 }
 0xd47   :  { %v1528_v32 = vadd.f32 1.0, %v3190_v28 }
 0xd49   :  { %3191 = vrcp.f32 %v1528_v32 }
 0xd4a   :  { %3193 = vpow2.f32 %v2758_v10 }
 0xd56   :  { %v3192_v27 = vpop.eup %3191 }
 0xd57   :  { %v3194_v52 = vpop.eup %3193  ;;  %v1544_v1 = vmul.f32 %v3192_v27, %v4328_v63 }
 0xd58   :  { %v1534_v29 = vadd.f32 1.0, %v3194_v52 }
 0xd5a   :  { %3195 = vrcp.f32 %v1534_v29 }
 0xd67   :  { %v3196_v0 = vpop.eup %3195 }
 0xd68   :  { %v1545_v2 = vmul.f32 %v3196_v0, %v4330_v3 }
 0xdb8   :  { %v1548_v34 = vpop.permute.xlu1 %1547 }
 0xdb9   :  { %v1550_v20 = vmul.f32 %v3192_v27, %v1548_v34 }
 0xdbb   :  { %1552 = vrot.lane.b32.xlu0 %v1550_v20, %s3350_s11  ;;  %v1582_v20 = vrot.slane %v4147_v60, %v4101_v59 }
 0xdbd   :  { %v1607_v29 = vsel %vm848_vm13, %v1582_v20, %v1598_v55 }
 0xe2d   :  { %v1553_v16 = vpop.permute.xlu0 %1552 }
 0xe2e   :  { %v4376_v25 = vadd.f32 %v1553_v16, %v1544_v1  ;;  %v4378_v14 = vadd.f32 %v1553_v16, %v1545_v2 }
 0xe30   :  { %3197 = vtanh.f32 %v4376_v25 }
 0xe31   :  { %3199 = vtanh.f32 %v4378_v14 }
 0xe32   :  { %3201 = vpow2.f32 %v2759_v40 }
 0xe3d   :  { %v3198_v11 = vpop.eup %3197 }
 0xe3e   :  { %v3200_v5 = vpop.eup %3199  ;;  %1561 = vrot.lane.b32.xlu1 %v3198_v11, %s3342_s4 }
 0xe3f   :  { %1563 = vrot.lane.b32.xlu0 %v3200_v5, %s3342_s4  ;;  %v3202_v63 = vpop.eup %3201 }
 0xe40   :  { %v1541_v47 = vadd.f32 1.0, %v3202_v63 }
 0xe42   :  { %3203 = vrcp.f32 %v1541_v47 }
 0xe4f   :  { %v3204_v62 = vpop.eup %3203 }
 0xeb0   :  { %v1562_v3 = vpop.permute.xlu1 %1561 }
 0xeb1   :  { %v1568_v46 = vmul.f32 %v3196_v0, %v1562_v3  ;;  %v1564_v48 = vpop.permute.xlu0 %1563 }
 0xeb2   :  { %v1565_v39 = vsel %vm317_vm1, %v1562_v3, %v1564_v48 }
 0xeb3   :  { %v1609_v6 = vpack.c.bf16 %v1568_v46, %v1568_v46  ;;  %v1569_v4 = vmul.f32 %v3204_v62, %v1565_v39 }
 0xeb5   :  { %v1610_v9 = vpack.c.bf16 %v1569_v4, %v1569_v4  ;;  %1613 = vrot.lane.b32.xlu1 %v1609_v6, %s3344_s27 }
 0xeb7   :  { %1615 = vrot.lane.b32.xlu0 %v1610_v9, %s3344_s27 }
 0xf27   :  { %v1614_v43 = vpop.permute.xlu1 %1613 }
 0xf29   :  { %v1616_v44 = vpop.permute.xlu0 %1615 }
 0xf2a   :  { %v1617_v36 = vsel %vm359_vm7, %v1614_v43, %v1616_v44 }
 0xf2b   :  { %2760 = vmatmul.mubr.msk.bf16.vlgmr.msra.gmra.mxu0 %vm719_vm12, %v1617_v36  ;;  %2986 = vmatmul.mubr.msk.bf16.vlgmr.msra.gmra.mxu1 %vm719_vm12, %v1617_v36 }
 0xf2c   :  { %1808 = vmatpush1.bf16.msra.mxu0 %v3944_v12  ;;  %2990 = vmatpush3.bf16.msra.mxu1 %v3946_v13 }
 0xf2d   :  { %1809 = vmatprep.subr.bf16.mxu0 %v3951_v15  ;;  %2991 = vmatprep.subr.bf16.mxu1 %v3348_v57 }
 0xf2e   :  { %1833 = vmatprep.mubr.bf16.mxu0 %v3343_v58  ;;  %2999 = vmatprep.mubr.msk.bf16.mxu1 %vm3349_vm11, %v3348_v57 }
 0xf30   :  { %1810 = vmatpush1.bf16.msra.mxu0 %v3972_v21  ;;  %2992 = vmatpush3.bf16.msra.mxu1 %v3974_v22 }
 0xf31   :  { %1811 = vmatprep.subr.bf16.mxu0 %v3981_v24  ;;  %2993 = vmatprep.subr.bf16.mxu1 %v3348_v57 }
 0xf34   :  { %1812 = vmatpush1.bf16.msra.mxu0 %v4003_v30  ;;  %2994 = vmatpush3.bf16.msra.mxu1 %v4005_v31 }
 0xf35   :  { %1813 = vmatprep.subr.bf16.mxu0 %v4012_v33  ;;  %2995 = vmatprep.subr.bf16.mxu1 %v3348_v57 }
 0xf38   :  { %1814 = vmatpush1.bf16.msra.mxu0 %v4031_v41  ;;  %2996 = vmatpush3.bf16.msra.mxu1 %v4033_v42 }
 0xf39   :  { %1815 = vmatprep.subr.bf16.mxu0 %v4040_v45  ;;  %2997 = vmatprep.subr.bf16.mxu1 %v3348_v57 }
 0xf3c   :  { %1816 = vmatpush1.bf16.msra.mxu0 %v4053_v49  ;;  %2998 = vmatpush3.bf16.msra.mxu1 %v4055_v50 }
 0xf3d   :  { %1987 = vmatprep.subr.bf16.mxu0 %v3917_v56  ;;  %3003 = vmatprep.subr.bf16.mxu1 %v3348_v57 }
 0xfeb   :  { %v1655_v28 = vpop.f32.mrf.mxu0  ;;  %v1696_v32 = vpop.f32.mrf.mxu1 }
 0xfec   :  { %v1702_v27 = vadd.f32 %v1655_v28, %v4190_v35  ;;  %v1704_v34 = vadd.f32 %v1696_v32, %v4193_v19 }
 0xfed   :  { %v1657_v10 = vpop.f32.mrf.mxu0  ;;  %v2987_v52 = vpop.f32.mrf.mxu1 }
 0xfee   :  { %v1703_v0 = vadd.f32 %v1657_v10, %v1607_v29  ;;  %v2762_v5 = vmul.f32 -1.442695, %v1702_v27  ;;  %v2764_v36 = vmul.f32 -1.442695, %v1704_v34 }
 0xfef   :  { %v1659_v1 = vpop.f32.mrf.mxu0  ;;  %v1699_v2 = vpop.f32.mrf.mxu1 }
 0xff0   :  { %3205 = vtanh.f32 %v1703_v0  ;;  %v2763_v47 = vmul.f32 -1.442695, %v1703_v0  ;;  %v1778_v2 = vrot.slane %v4181_v23, %v4101_v59 }
 0xff1   :  { %v1660_v16 = vpop.f32.mrf.mxu0  ;;  %v2988_v11 = vpop.f32.mrf.mxu1  ;;  %3207 = vpow2.f32 %v2762_v5 }
 0xffd   :  { %v3206_v61 = vpop.eup %3205 }
 0xffe   :  { %1727 = vrot.lane.b32.xlu1 %v3206_v61, %s3345_s5  ;;  %v3208_v35 = vpop.eup %3207 }
 0xfff   :  { %v1708_v19 = vadd.f32 1.0, %v3208_v35  ;;  %v1762_v35 = vrot.slane %v4179_v18, %v4101_v59 }
0x1001   :  { %3209 = vrcp.f32 %v1708_v19 }
0x1002   :  { %3211 = vpow2.f32 %v2763_v47 }
0x100e   :  { %v3210_v40 = vpop.eup %3209 }
0x100f   :  { %v3212_v3 = vpop.eup %3211  ;;  %v1724_v62 = vmul.f32 %v3210_v40, %v4376_v25 }
0x1010   :  { %v1714_v46 = vadd.f32 1.0, %v3212_v3 }
0x1012   :  { %3213 = vrcp.f32 %v1714_v46 }
0x101f   :  { %v3214_v48 = vpop.eup %3213 }
0x1020   :  { %v1725_v39 = vmul.f32 %v3214_v48, %v4378_v14 }
0x1070   :  { %v1728_v60 = vpop.permute.xlu1 %1727 }
0x1071   :  { %v1730_v63 = vmul.f32 %v3210_v40, %v1728_v60  ;;  %v1787_v60 = vsel %vm848_vm13, %v1762_v35, %v1778_v2 }
0x1073   :  { %1732 = vrot.lane.b32.xlu0 %v1730_v63, %s3350_s11 }
0x10e5   :  { %v1733_v6 = vpop.permute.xlu0 %1732 }
0x10e6   :  { %v4424_v4 = vadd.f32 %v1733_v6, %v1724_v62  ;;  %v4426_v9 = vadd.f32 %v1733_v6, %v1725_v39 }
0x10e8   :  { %3215 = vtanh.f32 %v4424_v4 }
0x10e9   :  { %3217 = vtanh.f32 %v4426_v9 }
0x10ea   :  { %3219 = vpow2.f32 %v2764_v36 }
0x10f5   :  { %v3216_v43 = vpop.eup %3215 }
0x10f6   :  { %v3218_v44 = vpop.eup %3217  ;;  %1741 = vrot.lane.b32.xlu1 %v3216_v43, %s3342_s4 }
0x10f7   :  { %1743 = vrot.lane.b32.xlu0 %v3218_v44, %s3342_s4  ;;  %v3220_v25 = vpop.eup %3219 }
0x10f8   :  { %v1721_v55 = vadd.f32 1.0, %v3220_v25 }
0x10fa   :  { %3221 = vrcp.f32 %v1721_v55 }
0x1107   :  { %v3222_v27 = vpop.eup %3221 }
0x1168   :  { %v1742_v14 = vpop.permute.xlu1 %1741 }
0x1169   :  { %v1748_v28 = vmul.f32 %v3214_v48, %v1742_v14  ;;  %v1744_v32 = vpop.permute.xlu0 %1743 }
0x116a   :  { %v1745_v20 = vsel %vm317_vm1, %v1742_v14, %v1744_v32 }
0x116b   :  { %v1789_v10 = vpack.c.bf16 %v1748_v28, %v1748_v28  ;;  %v1749_v52 = vmul.f32 %v3222_v27, %v1745_v20 }
0x116d   :  { %v1790_v29 = vpack.c.bf16 %v1749_v52, %v1749_v52  ;;  %1793 = vrot.lane.b32.xlu1 %v1789_v10, %s3344_s27 }
0x116f   :  { %1795 = vrot.lane.b32.xlu0 %v1790_v29, %s3344_s27 }
0x11df   :  { %v1794_v0 = vpop.permute.xlu1 %1793 }
0x11e1   :  { %v1796_v1 = vpop.permute.xlu0 %1795 }
0x11e2   :  { %v1797_v34 = vsel %vm359_vm7, %v1794_v0, %v1796_v1 }
0x11e3   :  { %2765 = vmatmul.mubr.msk.bf16.vlgmr.msra.gmra.mxu0 %vm719_vm12, %v1797_v34  ;;  %3000 = vmatmul.mubr.msk.bf16.vlgmr.msra.gmra.mxu1 %vm719_vm12, %v1797_v34 }
0x11e4   :  { %1988 = vmatpush1.bf16.msra.mxu0 %v3944_v12  ;;  %3004 = vmatpush3.bf16.msra.mxu1 %v3946_v13 }
0x11e5   :  { %1989 = vmatprep.subr.bf16.mxu0 %v3951_v15  ;;  %3005 = vmatprep.subr.bf16.mxu1 %v3348_v57 }
0x11e6   :  { %2013 = vmatprep.mubr.bf16.mxu0 %v3343_v58  ;;  %3013 = vmatprep.mubr.msk.bf16.mxu1 %vm3349_vm11, %v3348_v57 }
0x11e8   :  { %1990 = vmatpush1.bf16.msra.mxu0 %v3972_v21  ;;  %3006 = vmatpush3.bf16.msra.mxu1 %v3974_v22 }
0x11e9   :  { %1991 = vmatprep.subr.bf16.mxu0 %v3981_v24  ;;  %3007 = vmatprep.subr.bf16.mxu1 %v3348_v57 }
0x11ec   :  { %1992 = vmatpush1.bf16.msra.mxu0 %v4003_v30  ;;  %3008 = vmatpush3.bf16.msra.mxu1 %v4005_v31 }
0x11ed   :  { %1993 = vmatprep.subr.bf16.mxu0 %v4012_v33  ;;  %3009 = vmatprep.subr.bf16.mxu1 %v3348_v57 }
0x11f0   :  { %1994 = vmatpush1.bf16.msra.mxu0 %v4031_v41  ;;  %3010 = vmatpush3.bf16.msra.mxu1 %v4033_v42 }
0x11f1   :  { %1995 = vmatprep.subr.bf16.mxu0 %v4040_v45  ;;  %3011 = vmatprep.subr.bf16.mxu1 %v3348_v57 }
0x11f4   :  { %1996 = vmatpush1.bf16.msra.mxu0 %v4053_v49  ;;  %3012 = vmatpush3.bf16.msra.mxu1 %v4055_v50 }
0x11f5   :  { %2167 = vmatprep.subr.bf16.mxu0 %v3917_v56  ;;  %3017 = vmatprep.subr.bf16.mxu1 %v3348_v57 }
0x12a3   :  { %v1835_v16 = vpop.f32.mrf.mxu0  ;;  %v1876_v11 = vpop.f32.mrf.mxu1 }
0x12a4   :  { %v1882_v61 = vadd.f32 %v1835_v16, %v4204_v7  ;;  %v1884_v5 = vadd.f32 %v1876_v11, %v4207_v8 }
0x12a5   :  { %v1837_v19 = vpop.f32.mrf.mxu0  ;;  %v3001_v40 = vpop.f32.mrf.mxu1 }
0x12a6   :  { %v1883_v63 = vadd.f32 %v1837_v19, %v1787_v60  ;;  %v2767_v48 = vmul.f32 -1.442695, %v1882_v61  ;;  %v2769_v10 = vmul.f32 -1.442695, %v1884_v5 }
0x12a7   :  { %v1839_v56 = vpop.f32.mrf.mxu0  ;;  %v1879_v47 = vpop.f32.mrf.mxu1 }
0x12a8   :  { %3223 = vtanh.f32 %v1883_v63  ;;  %v2768_v6 = vmul.f32 -1.442695, %v1883_v63 }
0x12a9   :  { %v1840_v3 = vpop.f32.mrf.mxu0  ;;  %v3002_v46 = vpop.f32.mrf.mxu1  ;;  %3225 = vpow2.f32 %v2767_v48 }
0x12b5   :  { %v3224_v23 = vpop.eup %3223 }
0x12b6   :  { %1907 = vrot.lane.b32.xlu1 %v3224_v23, %s3345_s5  ;;  %v3226_v7 = vpop.eup %3225 }
0x12b7   :  { %v1888_v8 = vadd.f32 1.0, %v3226_v7 }
0x12b9   :  { %3227 = vrcp.f32 %v1888_v8 }
0x12ba   :  { %3229 = vpow2.f32 %v2768_v6 }
0x12c6   :  { %v3228_v62 = vpop.eup %3227 }
0x12c7   :  { %v3230_v43 = vpop.eup %3229  ;;  %v1904_v25 = vmul.f32 %v3228_v62, %v4424_v4 }
0x12c8   :  { %v1894_v44 = vadd.f32 1.0, %v3230_v43 }
0x12ca   :  { %3231 = vrcp.f32 %v1894_v44 }
0x12d7   :  { %v3232_v36 = vpop.eup %3231 }
0x12d8   :  { %v1905_v55 = vmul.f32 %v3232_v36, %v4426_v9 }
0x1328   :  { %v1908_v18 = vpop.permute.xlu1 %1907 }
0x1329   :  { %v1910_v39 = vmul.f32 %v3228_v62, %v1908_v18 }
0x132b   :  { %1912 = vrot.lane.b32.xlu0 %v1910_v39, %s3350_s11 }
0x139d   :  { %v1913_v14 = vpop.permute.xlu0 %1912 }
0x139e   :  { %v4472_v28 = vadd.f32 %v1913_v14, %v1904_v25  ;;  %v4474_v32 = vadd.f32 %v1913_v14, %v1905_v55 }
0x13a0   :  { %3233 = vtanh.f32 %v4472_v28 }
0x13a1   :  { %3235 = vtanh.f32 %v4474_v32 }
0x13a2   :  { %3237 = vpow2.f32 %v2769_v10 }
0x13ad   :  { %v3234_v27 = vpop.eup %3233 }
0x13ae   :  { %v3236_v20 = vpop.eup %3235  ;;  %1921 = vrot.lane.b32.xlu1 %v3234_v27, %s3342_s4 }
0x13af   :  { %1923 = vrot.lane.b32.xlu0 %v3236_v20, %s3342_s4  ;;  %v3238_v4 = vpop.eup %3237 }
0x13b0   :  { %v1901_v52 = vadd.f32 1.0, %v3238_v4 }
0x13b2   :  { %3239 = vrcp.f32 %v1901_v52 }
0x13bf   :  { %v3240_v1 = vpop.eup %3239 }
0x1420   :  { %v1922_v9 = vpop.permute.xlu1 %1921 }
0x1421   :  { %v1928_v29 = vmul.f32 %v3232_v36, %v1922_v9  ;;  %v1924_v0 = vpop.permute.xlu0 %1923 }
0x1422   :  { %v1925_v34 = vsel %vm317_vm1, %v1922_v9, %v1924_v0 }
0x1423   :  { %v1969_v2 = vpack.c.bf16 %v1928_v29, %v1928_v29  ;;  %v1929_v16 = vmul.f32 %v3240_v1, %v1925_v34  ;;  %v3303_v1 = vld [vmem:[#allocation2 + $0x1f] ss:$8 sm:$0x7] }
0x1424   :  { %v2138_v34 = vrot.slane %v3303_v1, %v4101_v59 }
0x1425   :  { %v1970_v11 = vpack.c.bf16 %v1929_v16, %v1929_v16  ;;  %1973 = vrot.lane.b32.xlu1 %v1969_v2, %s3344_s27 }
0x1427   :  { %1975 = vrot.lane.b32.xlu0 %v1970_v11, %s3344_s27 }
0x1497   :  { %v1974_v61 = vpop.permute.xlu1 %1973 }
0x1499   :  { %v1976_v35 = vpop.permute.xlu0 %1975 }
0x149a   :  { %v1977_v5 = vsel %vm359_vm7, %v1974_v61, %v1976_v35  ;;  %v3304_v35 = vld [vmem:[#allocation2 + $0x7] ss:$8 sm:$0x7] }
0x149b   :  { %2770 = vmatmul.mubr.msk.bf16.vlgmr.msra.gmra.mxu0 %vm719_vm12, %v1977_v5  ;;  %3014 = vmatmul.mubr.msk.bf16.vlgmr.msra.gmra.mxu1 %vm719_vm12, %v1977_v5  ;;  %v2122_v5 = vrot.slane %v3304_v35, %v4101_v59 }
0x149c   :  { %2168 = vmatpush1.bf16.msra.mxu0 %v3944_v12  ;;  %3018 = vmatpush3.bf16.msra.mxu1 %v3946_v13  ;;  %v3301_v12 = vld [vmem:[#allocation2 + $0x1e] ss:$8 sm:$0x7] }
0x149d   :  { %2169 = vmatprep.subr.bf16.mxu0 %v3951_v15  ;;  %3019 = vmatprep.subr.bf16.mxu1 %v3348_v57  ;;  %v1958_v13 = vrot.slane %v3301_v12, %v4101_v59 }
0x149e   :  { %2193 = vmatprep.mubr.bf16.mxu0 %v3343_v58  ;;  %3027 = vmatprep.mubr.msk.bf16.mxu1 %vm3349_vm11, %v3348_v57 }
0x14a0   :  { %2170 = vmatpush1.bf16.msra.mxu0 %v3972_v21  ;;  %3020 = vmatpush3.bf16.msra.mxu1 %v3974_v22 }
0x14a1   :  { %2171 = vmatprep.subr.bf16.mxu0 %v3981_v24  ;;  %3021 = vmatprep.subr.bf16.mxu1 %v3348_v57 }
0x14a4   :  { %2172 = vmatpush1.bf16.msra.mxu0 %v4003_v30  ;;  %3022 = vmatpush3.bf16.msra.mxu1 %v4005_v31  ;;  %v3302_v30 = vld [vmem:[#allocation2 + $0x6] ss:$8 sm:$0x7] }
0x14a5   :  { %2173 = vmatprep.subr.bf16.mxu0 %v4012_v33  ;;  %3023 = vmatprep.subr.bf16.mxu1 %v3348_v57  ;;  %v1942_v31 = vrot.slane %v3302_v30, %v4101_v59 }
0x14a8   :  { %2174 = vmatpush1.bf16.msra.mxu0 %v4031_v41  ;;  %3024 = vmatpush3.bf16.msra.mxu1 %v4033_v42  ;;  %v1967_v42 = vsel %vm848_vm13, %v1942_v31, %v1958_v13 }
0x14a9   :  { %2175 = vmatprep.subr.bf16.mxu0 %v4040_v45  ;;  %3025 = vmatprep.subr.bf16.mxu1 %v3348_v57 }
0x14ac   :  { %2176 = vmatpush1.bf16.msra.mxu0 %v4053_v49  ;;  %3026 = vmatpush3.bf16.msra.mxu1 %v4055_v50 }
0x14ad   :  { %3031 = vmatprep.subr.bf16.mxu0 %v3348_v57  ;;  %3045 = vmatprep.subr.bf16.mxu1 %v3348_v57 }
0x155b   :  { %v2015_v15 = vpop.f32.mrf.mxu0  ;;  %v2056_v21 = vpop.f32.mrf.mxu1 }
0x155c   :  { %v2062_v22 = vadd.f32 %v2015_v15, %v4216_v17  ;;  %v2064_v24 = vadd.f32 %v2056_v21, %v4219_v26  ;;  %v2147_v15 = vsel %vm848_vm13, %v2122_v5, %v2138_v34 }
0x155d   :  { %v2017_v33 = vpop.f32.mrf.mxu0  ;;  %v3015_v41 = vpop.f32.mrf.mxu1 }
0x155e   :  { %v2063_v45 = vadd.f32 %v2017_v33, %v1967_v42  ;;  %v2772_v63 = vmul.f32 -1.442695, %v2062_v22  ;;  %v2774_v36 = vmul.f32 -1.442695, %v2064_v24 }
0x155f   :  { %v2019_v49 = vpop.f32.mrf.mxu0  ;;  %v2059_v50 = vpop.f32.mrf.mxu1 }
0x1560   :  { %3241 = vtanh.f32 %v2063_v45  ;;  %v2773_v46 = vmul.f32 -1.442695, %v2063_v45 }
0x1561   :  { %v2020_v19 = vpop.f32.mrf.mxu0  ;;  %v3016_v40 = vpop.f32.mrf.mxu1  ;;  %3243 = vpow2.f32 %v2772_v63 }
0x156d   :  { %v3242_v60 = vpop.eup %3241 }
0x156e   :  { %2087 = vrot.lane.b32.xlu1 %v3242_v60, %s3345_s5  ;;  %v3244_v17 = vpop.eup %3243 }
0x156f   :  { %v2068_v26 = vadd.f32 1.0, %v3244_v17 }
0x1571   :  { %3245 = vrcp.f32 %v2068_v26 }
0x1572   :  { %3247 = vpow2.f32 %v2773_v46  ;;  %v2296_v46 = vld [vmem:[%s4730_s23 + $0x30] sm:$0xff] }
0x157e   :  { %v3246_v56 = vpop.eup %3245 }
0x157f   :  { %v3248_v23 = vpop.eup %3247  ;;  %v2084_v8 = vmul.f32 %v3246_v56, %v4472_v28 }
0x1580   :  { %v2074_v48 = vadd.f32 1.0, %v3248_v23 }
0x1582   :  { %3249 = vrcp.f32 %v2074_v48  ;;  %v2297_v48 = vld [vmem:[%s4730_s23 + $0x38] sm:$0xff] }
0x158f   :  { %v3250_v7 = vpop.eup %3249 }
0x1590   :  { %v2085_v62 = vmul.f32 %v3250_v7, %v4474_v32 }
0x15e0   :  { %v2088_v47 = vpop.permute.xlu1 %2087 }
0x15e1   :  { %v2090_v3 = vmul.f32 %v3246_v56, %v2088_v47  ;;  %v2298_v47 = vld [vmem:[%s4730_s23 + $0x40] sm:$0xff] }
0x15e3   :  { %2092 = vrot.lane.b32.xlu0 %v2090_v3, %s3350_s11  ;;  %v2299_v3 = vld [vmem:[%s4730_s23 + $0x48] sm:$0xff] }
0x15e4   :  { %v2306_v23 = vpack.c.bf16 %v2299_v3, %v2298_v47 }
0x1655   :  { %v2093_v18 = vpop.permute.xlu0 %2092 }
0x1656   :  { %v4518_v39 = vadd.f32 %v2093_v18, %v2084_v8  ;;  %v4520_v6 = vadd.f32 %v2093_v18, %v2085_v62  ;;  %v2294_v8 = vld [vmem:[%s4730_s23 + $0x20] sm:$0xff]  ;;  %v2295_v62 = vld [vmem:[%s4730_s23 + $0x28] sm:$0xff] }
0x1658   :  { %3251 = vtanh.f32 %v4518_v39 }
0x1659   :  { %3253 = vtanh.f32 %v4520_v6 }
0x165a   :  { %3255 = vpow2.f32 %v2774_v36 }
0x1665   :  { %v3252_v43 = vpop.eup %3251 }
0x1666   :  { %v3254_v44 = vpop.eup %3253  ;;  %2101 = vrot.lane.b32.xlu1 %v3252_v43, %s3342_s4  ;;  %v2292_v43 = vld [vmem:[%s4730_s23 + $0x10] sm:$0xff] }
0x1667   :  { %2103 = vrot.lane.b32.xlu0 %v3254_v44, %s3342_s4  ;;  %v3256_v25 = vpop.eup %3255  ;;  %v2293_v44 = vld [vmem:[%s4730_s23 + $0x18] sm:$0xff] }
0x1668   :  { %v2081_v55 = vadd.f32 1.0, %v3256_v25  ;;  %v2303_v36 = vpack.c.bf16 %v2293_v44, %v2292_v43  ;;  %v2290_v25 = vld [vmem:[%s4730_s23] sm:$0xff]  ;;  %v2456_v44 = vld [vmem:[%s4717_s16 + $0x8] sm:$0xff] }
0x166a   :  { %3257 = vrcp.f32 %v2081_v55  ;;  %v2291_v55 = vld [vmem:[%s4730_s23 + $0x8] sm:$0xff] }
0x1677   :  { %v3258_v27 = vpop.eup %3257 }
0x16d8   :  { %v2102_v14 = vpop.permute.xlu1 %2101 }
0x16d9   :  { %v2108_v28 = vmul.f32 %v3250_v7, %v2102_v14  ;;  %v2104_v32 = vpop.permute.xlu0 %2103  ;;  %v2305_v7 = vpack.c.bf16 %v2297_v48, %v2296_v46 }
0x16da   :  { %v2105_v20 = vsel %vm317_vm1, %v2102_v14, %v2104_v32  ;;  %v2302_v14 = vpack.c.bf16 %v2291_v55, %v2290_v25 }
0x16db   :  { %v2149_v10 = vpack.c.bf16 %v2108_v28, %v2108_v28  ;;  %v2109_v4 = vmul.f32 %v3258_v27, %v2105_v20  ;;  %v2384_v20 = vld [vmem:[%s4715_s14 + $0x10] sm:$0xff] }
0x16dd   :  { %v2150_v52 = vpack.c.bf16 %v2109_v4, %v2109_v4  ;;  %2153 = vrot.lane.b32.xlu1 %v2149_v10, %s3344_s27  ;;  %v2385_v10 = vld [vmem:[%s4715_s14 + $0x18] sm:$0xff] }
0x16de   :  { %v4591_v4 = vpack.c.bf16 %v2385_v10, %v2384_v20 }
0x16df   :  { %2155 = vrot.lane.b32.xlu0 %v2150_v52, %s3344_s27  ;;  %v2382_v52 = vld [vmem:[%s4715_s14] sm:$0xff] }
0x174f   :  { %v2154_v9 = vpop.permute.xlu1 %2153 }
0x1751   :  { %v2156_v29 = vpop.permute.xlu0 %2155 }
0x1752   :  { %v2157_v0 = vsel %vm359_vm7, %v2154_v9, %v2156_v29  ;;  %v2383_v9 = vld [vmem:[%s4715_s14 + $0x8] sm:$0xff] }
0x1753   :  { %2775 = vmatmul.mubr.msk.bf16.vlgmr.msra.gmra.mxu0 %vm719_vm12, %v2157_v0  ;;  %3028 = vmatmul.mubr.msk.bf16.vlgmr.msra.gmra.mxu1 %vm719_vm12, %v2157_v0  ;;  %v4601_v29 = vpack.c.bf16 %v2383_v9, %v2382_v52 }
0x1754   :  { %3041 = vmatprep.mubr.msk.bf16.mxu0 %vm3349_vm11, %v3348_v57  ;;  %3049 = vmatprep.mubr.msk.bf16.mxu1 %vm3349_vm11, %v3348_v57 }
0x1755   :  { %3032 = vmatpush3.bf16.msra.mxu0 %v2306_v23  ;;  %3046 = vmatpush3.bf16.msra.mxu1 %v4591_v4 }
0x1756   :  { %3033 = vmatprep.subr.bf16.mxu0 %v3348_v57  ;;  %3047 = vmatprep.subr.bf16.mxu1 %v3348_v57 }
0x1759   :  { %3034 = vmatpush3.bf16.msra.mxu0 %v2305_v7  ;;  %3048 = vmatpush3.bf16.msra.mxu1 %v4601_v29 }
0x175a   :  { %3035 = vmatprep.subr.bf16.mxu0 %v3348_v57  ;;  %3053 = vmatprep.subr.bf16.mxu1 %v3348_v57 }
0x175c   :  { %3050 = vmatmul.mubr.bf16.vlgmr.msra.gmra.mxu1 %v3343_v58 }
0x175d   :  { %3057 = vmatprep.mubr.msk.bf16.mxu1 %vm3349_vm11, %v3348_v57 }
0x1813   :  { %v2195_v2 = vpop.f32.mrf.mxu0  ;;  %v2236_v16 = vpop.f32.mrf.mxu1 }
0x1814   :  { %v2242_v11 = vadd.f32 %v2195_v2, %v4224_v37  ;;  %v4539_v61 = vadd.f32 %v2236_v16, %v4227_v38 }
0x1815   :  { %v2197_v12 = vpop.f32.mrf.mxu0  ;;  %v3029_v13 = vpop.f32.mrf.mxu1 }
0x1816   :  { %v2243_v21 = vadd.f32 %v2197_v12, %v2147_v15  ;;  %v2777_v37 = vmul.f32 -1.442695, %v2242_v11  ;;  %v2779_v28 = vmul.f32 -1.442695, %v4539_v61 }
0x1817   :  { %v2199_v22 = vpop.f32.mrf.mxu0  ;;  %v2239_v24 = vpop.f32.mrf.mxu1 }
0x1818   :  { %3259 = vtanh.f32 %v2243_v21  ;;  %v2778_v49 = vmul.f32 -1.442695, %v2243_v21  ;;  %v4619_v24 = vld [vmem:[%s4714_s13] sm:$0xff] }
0x1819   :  { %v2200_v30 = vpop.f32.mrf.mxu0  ;;  %v3030_v31 = vpop.f32.mrf.mxu1  ;;  %3261 = vpow2.f32 %v2777_v37 }
0x181a   :  { %v2374_v30 = vsel %vm2370_vm14, %v4619_v24, 0.0 }
0x181b   :  { %v2375_v31 = vrot.slane %v2374_v30, 4 }
0x181c   :  { %v2424_v58 = vpop.f32.mrf.mxu1 }
0x181e   :  { %v3051_v15 = vpop.f32.mrf.mxu1 }
0x1820   :  { %v2427_v21 = vpop.f32.mrf.mxu1 }
0x1822   :  { %v3052_v22 = vpop.f32.mrf.mxu1 }
0x1825   :  { %v3260_v33 = vpop.eup %3259 }
0x1826   :  { %2267 = vrot.lane.b32.xlu1 %v3260_v33, %s3345_s5  ;;  %v3262_v38 = vpop.eup %3261  ;;  %v2376_v33 = vadd.f32 %v2375_v31, %v2374_v30 }
0x1827   :  { %v2248_v41 = vadd.f32 1.0, %v3262_v38  ;;  %v2780_v38 = vld [vmem:[%s4716_s15] ss:$0 sm:$0xff] }
0x1828   :  { %v2377_v37 = vrot.slane %v2376_v33, 2 }
0x1829   :  { %3263 = vrcp.f32 %v2248_v41 }
0x182a   :  { %3265 = vpow2.f32 %v2778_v49  ;;  %v2378_v41 = vadd.f32 %v2377_v37, %v2376_v33 }
0x182c   :  { %v2379_v49 = vrot.slane %v2378_v41, 1 }
0x1836   :  { %v3264_v42 = vpop.eup %3263 }
0x1837   :  { %v3266_v50 = vpop.eup %3265  ;;  %v2264_v60 = vmul.f32 %v3264_v42, %v4518_v39 }
0x1838   :  { %v2254_v19 = vadd.f32 1.0, %v3266_v50 }
0x183a   :  { %3267 = vrcp.f32 %v2254_v19 }
0x1847   :  { %v3268_v40 = vpop.eup %3267 }
0x1848   :  { %v2265_v63 = vmul.f32 %v3268_v40, %v4520_v6  ;;  %v2304_v6 = vpack.c.bf16 %v2295_v62, %v2294_v8 }
0x184a   :  { %3036 = vmatpush3.bf16.msra.mxu0 %v2304_v6  ;;  %v2455_v6 = vld [vmem:[%s4717_s16] sm:$0xff] }
0x184b   :  { %3037 = vmatprep.subr.bf16.mxu0 %v3348_v57 }
0x184e   :  { %3038 = vmatpush3.bf16.msra.mxu0 %v2303_v36  ;;  %v2460_v36 = vpack.c.bf16 %v2456_v44, %v2455_v6 }
0x184f   :  { %3039 = vmatprep.subr.bf16.mxu0 %v3348_v57 }
0x1852   :  { %3040 = vmatpush3.bf16.msra.mxu0 %v2302_v14 }
0x1853   :  { %3069 = vmatprep.subr.bf16.mxu0 %v3348_v57 }
0x1898   :  { %v2268_v59 = vpop.permute.xlu1 %2267 }
0x1899   :  { %v2270_v45 = vmul.f32 %v3264_v42, %v2268_v59 }
0x189b   :  { %2272 = vrot.lane.b32.xlu0 %v2270_v45, %s3350_s11 }
0x190d   :  { %v2273_v17 = vpop.permute.xlu0 %2272 }
0x190e   :  { %v2275_v26 = vadd.f32 %v2273_v17, %v2264_v60  ;;  %v2276_v56 = vadd.f32 %v2273_v17, %v2265_v63 }
0x1910   :  { %3269 = vtanh.f32 %v2275_v26 }
0x1911   :  { %3271 = vtanh.f32 %v2276_v56 }
0x1912   :  { %3273 = vpow2.f32 %v2779_v28 }
0x191d   :  { %v3270_v18 = vpop.eup %3269 }
0x191e   :  { %v3272_v39 = vpop.eup %3271  ;;  %2281 = vrot.lane.b32.xlu1 %v3270_v18, %s3342_s4  ;;  %v2457_v18 = vld [vmem:[%s4717_s16 + $0x10] sm:$0xff] }
0x191f   :  { %2283 = vrot.lane.b32.xlu0 %v3272_v39, %s3342_s4  ;;  %v3274_v32 = vpop.eup %3273  ;;  %v2458_v39 = vld [vmem:[%s4717_s16 + $0x18] sm:$0xff] }
0x1920   :  { %v2261_v27 = vadd.f32 1.0, %v3274_v32  ;;  %v2461_v43 = vpack.c.bf16 %v2458_v39, %v2457_v18 }
0x1922   :  { %3275 = vrcp.f32 %v2261_v27  ;;  %3054 = vmatpush3.bf16.msra.mxu1 %v2461_v43  ;;  %v4657_v27 = vld [vmem:[%s4718_s17] sm:$0x1]  ;;  %s4685_s17 = sld [smem:[#allocation5 + $0x1]] }
0x1923   :  { %3055 = vmatprep.subr.bf16.mxu1 %v3348_v57 }
0x1926   :  { %3056 = vmatpush3.bf16.msra.mxu1 %v2460_v36 }
0x1927   :  { %3061 = vmatprep.subr.bf16.mxu1 %v3348_v57 }
0x1928   :  { %p2701_p6 = scmp.eq.s32.totalorder %s4685_s17, 0 }
0x192a   :  { %s2702_s21 = scalar_select %p2701_p6, 1, 0 }
0x192f   :  { %v3276_v2 = vpop.eup %3275 }
0x1990   :  { %v2282_v0 = vpop.permute.xlu1 %2281 }
0x1991   :  { %v2288_v1 = vmul.f32 %v3268_v40, %v2282_v0  ;;  %v2284_v34 = vpop.permute.xlu0 %2283  ;;  %v2380_v40 = vadd.f32 %v2379_v49, %v2378_v41 }
0x1992   :  { %v2285_v16 = vsel %vm317_vm1, %v2282_v0, %v2284_v34 }
0x1993   :  { %v2300_v11 = vpack.c.bf16 %v2288_v1, %v2288_v1  ;;  %v2289_v61 = vmul.f32 %v3276_v2, %v2285_v16  ;;  %v4667_v16 = vand.u32 127, %v704_v51 }
0x1995   :  { %v2301_v35 = vpack.c.bf16 %v2289_v61, %v2289_v61  ;;  %2316 = vrot.lane.b32.xlu1 %v2300_v11, %s3344_s27 }
0x1997   :  { %2318 = vrot.lane.b32.xlu0 %v2301_v35, %s3344_s27 }
0x1a07   :  { %v2317_v5 = vpop.permute.xlu1 %2316 }
0x1a09   :  { %v2319_v12 = vpop.permute.xlu0 %2318 }
0x1a0a   :  { %v2320_v13 = vsel %vm359_vm7, %v2317_v5, %v2319_v12  ;;  %vm2707_vm7 = vcmask 0  }
0x1a0b   :  { %3042 = vmatmul.mubr.msk.bf16.vlgmr.msra.gmra.mxu0 %vm719_vm12, %v2320_v13 }
0x1a0c   :  { %3073 = vmatprep.mubr.msk.bf16.mxu0 %vm3349_vm11, %v3348_v57  ;;  %3070 = vmatpush3.bf16.msra.mxu0 %v2461_v43  ;;  %v2694_v43 = vstv %s4685_s17 }
0x1a0d   :  { %3071 = vmatprep.subr.bf16.mxu0 %v3348_v57  ;;  %vm2695_vm4 = vcmp.eq.s32.totalorder %v4667_v16, %v2694_v43 }
0x1a10   :  { %3072 = vmatpush3.bf16.msra.mxu0 %v2460_v36 }
0x1acb   :  { %v2358_v42 = vpop.f32.mrf.mxu0 }
0x1acc   :  { %v2359_v59 = vadd.f32 %v2780_v38, %v2358_v42 }
0x1acd   :  { %v3043_v45 = vpop.f32.mrf.mxu0 }
0x1ace   :  { %2364 = vst [vmem:[#allocation3] sm:$0x3] %v2359_v59 }
0x1acf   :  { %v2361_v50 = vpop.f32.mrf.mxu0 }
0x1ad1   :  { %v3044_v19 = vpop.f32.mrf.mxu0 }
0x1ad5   :  { %v2369_v60 = vld [vmem:[#allocation3] sm:$0x1]  ;;  %v2553_v50 = vld [vmem:[#allocation3 + $0x1] sm:$0x1] }
0x1ad6   :  { %v2381_v63 = vadd.f32 %v2380_v40, %v2369_v60 }
0x1ad8   :  { %v2430_v17 = vadd.f32 %v2424_v58, %v2381_v63 }
0x1ada   :  { %3277 = vtanh.f32 %v2430_v17  ;;  %v2782_v56 = vmul.f32 -1.442695, %v2430_v17 }
0x1adc   :  { %3279 = vpow2.f32 %v2782_v56 }
0x1ae7   :  { %v3278_v26 = vpop.eup %3277 }
0x1ae8   :  { %2440 = vrot.lane.b32.xlu1 %v3278_v26, %s3346_s28 }
0x1ae9   :  { %v3280_v47 = vpop.eup %3279 }
0x1aea   :  { %v2434_v3 = vadd.f32 1.0, %v3280_v47 }
0x1aec   :  { %3281 = vrcp.f32 %v2434_v3 }
0x1af9   :  { %v3282_v46 = vpop.eup %3281 }
0x1afa   :  { %v2438_v7 = vmul.f32 0.0, %v3282_v46 }
0x1b5a   :  { %v2441_v23 = vpop.permute.xlu1 %2440 }
0x1b5b   :  { %v2443_v48 = vmul.f32 %v3282_v46, %v2441_v23 }
0x1b5d   :  { %2445 = vrot.lane.b32.xlu0 %v2443_v48, %s3342_s4 }
0x1bcf   :  { %v2446_v8 = vpop.permute.xlu0 %2445 }
0x1bd0   :  { %v4627_v62 = vadd.f32 %v2446_v8, %v2438_v7 }
0x1bd2   :  { %3283 = vtanh.f32 %v4627_v62 }
0x1bdf   :  { %v3284_v25 = vpop.eup %3283 }
0x1be0   :  { %2451 = vrot.lane.b32.xlu1 %v3284_v25, %s3346_s28 }
0x1c52   :  { %v2452_v55 = vpop.permute.xlu1 %2451 }
0x1c53   :  { %v2454_v14 = vmul.f32 %v3282_v46, %v2452_v55 }
0x1c55   :  { %v2459_v28 = vpack.c.bf16 %v2454_v14, %v2454_v14 }
0x1c57   :  { %2464 = vrot.lane.b32.xlu0 %v2459_v28, %s3342_s4 }
0x1cc9   :  { %v2465_v32 = vpop.permute.xlu0 %2464 }
0x1cca   :  { %3058 = vmatmul.mubr.msk.bf16.vlgmr.msra.gmra.mxu1 %vm317_vm1, %v2465_v32 }
0x1ccb   :  { %3062 = vmatpush3.bf16.msra.mxu1 %v4591_v4  ;;  %3065 = vmatprep.mubr.msk.bf16.mxu1 %vm3349_vm11, %v3348_v57 }
0x1ccc   :  { %3063 = vmatprep.subr.bf16.mxu1 %v3348_v57 }
0x1ccf   :  { %3064 = vmatpush3.bf16.msra.mxu1 %v4601_v29 }
0x1cd2   :  { %3066 = vmatmul.mubr.msk.bf16.vlgmr.msra.gmra.mxu1 %vm317_vm1, %v2465_v32 }
0x1d8a   :  { %v2503_v20 = vpop.f32.mrf.mxu1 }
0x1d8b   :  { %v4660_v10 = vadd.f32 %v2503_v20, %v4657_v27 }
0x1d8c   :  { %v3059_v4 = vpop.f32.mrf.mxu1 }
0x1d8d   :  { %v2510_v52 = vsel %vm2509_vm15, %v4660_v10, -inf }
0x1d8e   :  { %2511 = vmax.xlane.f32.xlu1 %v2510_v52  ;;  %v2506_v57 = vpop.f32.mrf.mxu1 }
0x1d90   :  { %v3060_v9 = vpop.f32.mrf.mxu1 }
0x1d92   :  { %v2603_v29 = vpop.f32.mrf.mxu1 }
0x1d94   :  { %v3067_v0 = vpop.f32.mrf.mxu1 }
0x1d96   :  { %v2606_v1 = vpop.f32.mrf.mxu1 }
0x1d98   :  { %v3068_v34 = vpop.f32.mrf.mxu1 }
0x1e17   :  { %v4664_v2 = vpop.xlane.xlu1 %2511 }
0x1e18   :  { %vm2513_vm0 = vcmp.eq.f32.partialorder %v4660_v10, %v4664_v2  ;;  %v2530_v8 = vsub.f32 %v4660_v10, %v4664_v2 }
0x1e19   :  { %v2514_v11 = vsel %vm2513_vm0, %v4667_v16, 8 }
0x1e1a   :  { %v2515_v61 = vsel %vm2509_vm15, %v2514_v11, 2147483647  ;;  %v2531_v18 = vmul.f32 1.442695, %v2530_v8 }
0x1e1b   :  { %v2517_v35 = vshra.s32 %v2515_v61, 16  ;;  %v2516_v12 = vand.u32 65535, %v2515_v61 }
0x1e1d   :  { %v2519_v5 = vcvt.s32.f32 %v2517_v35  ;;  %v2518_v58 = vcvt.s32.f32 %v2516_v12 }
0x1e1f   :  { %2520 = vmin.xlane.f32.xlu0 %v2519_v5 }
0x1ea8   :  { %v2521_v13 = vpop.xlane.xlu0 %2520 }
0x1ea9   :  { %vm2522_vm2 = vcmp.eq.f32.partialorder %v2519_v5, %v2521_v13  ;;  %v2527_v21 = vcvt.f32.s32 %v2521_v13 }
0x1eaa   :  { %v2523_v15 = vsel %vm2522_vm2, %v2518_v58, inf }
0x1eab   :  { %2524 = vmin.xlane.f32.xlu0 %v2523_v15  ;;  %v2528_v51 = vshll.u32 %v2527_v21, 16 }
0x1f34   :  { %v2525_v22 = vpop.xlane.xlu0 %2524 }
0x1f35   :  { %v2526_v30 = vcvt.f32.s32 %v2525_v22 }
0x1f37   :  { %v2529_v31 = vadd.s32 %v2528_v51, %v2526_v30 }
0x1f39   :  { %v2557_v33 = vrot.slane %v2529_v31, %v4092_v54 }
0x1f3b   :  { %vm2558_vm3 = vcmp.eq.s32.totalorder %v4089_v53, %v2557_v33 }
0x1f3c   :  { %v2561_v37 = vsel %vm2558_vm3, %v4619_v24, 0.0 }
0x1f3d   :  { %v2562_v38 = vrot.slane %v2561_v37, 4 }
0x1f3f   :  { %v2563_v41 = vadd.f32 %v2562_v38, %v2561_v37 }
0x1f41   :  { %v2564_v42 = vrot.slane %v2563_v41, 2 }
0x1f43   :  { %v2565_v59 = vadd.f32 %v2564_v42, %v2563_v41 }
0x1f45   :  { %v2566_v45 = vrot.slane %v2565_v59, 1 }
0x1f47   :  { %v2567_v49 = vadd.f32 %v2566_v45, %v2565_v59 }
0x1f49   :  { %v2568_v19 = vadd.f32 %v2567_v49, %v2553_v50 }
0x1f4b   :  { %v2609_v40 = vadd.f32 %v2603_v29, %v2568_v19 }
0x1f4d   :  { %3285 = vtanh.f32 %v2609_v40  ;;  %v2785_v63 = vmul.f32 -1.442695, %v2609_v40 }
0x1f4f   :  { %3287 = vpow2.f32 %v2785_v63 }
0x1f5a   :  { %v3286_v60 = vpop.eup %3285 }
0x1f5b   :  { %2619 = vrot.lane.b32.xlu1 %v3286_v60, %s3346_s28 }
0x1f5c   :  { %v3288_v54 = vpop.eup %3287 }
0x1f5d   :  { %v2613_v17 = vadd.f32 1.0, %v3288_v54 }
0x1f5f   :  { %3289 = vrcp.f32 %v2613_v17 }
0x1f6c   :  { %v3290_v53 = vpop.eup %3289 }
0x1f6d   :  { %v2617_v56 = vmul.f32 %v3290_v53, %v4627_v62 }
0x1fcd   :  { %v2620_v24 = vpop.permute.xlu1 %2619 }
0x1fce   :  { %v2622_v26 = vmul.f32 %v3290_v53, %v2620_v24 }
0x1fd0   :  { %2624 = vrot.lane.b32.xlu0 %v2622_v26, %s3342_s4 }
0x2042   :  { %v2625_v47 = vpop.permute.xlu0 %2624 }
0x2043   :  { %v2627_v3 = vadd.f32 %v2625_v47, %v2617_v56 }
0x2045   :  { %3291 = vtanh.f32 %v2627_v3 }
0x2046   :  { %3293 = vpow2.f32 %v2531_v18 }
0x2052   :  { %v3292_v46 = vpop.eup %3291 }
0x2053   :  { %2630 = vrot.lane.b32.xlu1 %v3292_v46, %s3346_s28  ;;  %v3294_v39 = vpop.eup %3293 }
0x2054   :  { %v2533_v6 = vsel %vm2509_vm15, %v3294_v39, 0.0 }
0x20c5   :  { %v2631_v23 = vpop.permute.xlu1 %2630 }
0x20c6   :  { %v2633_v48 = vmul.f32 %v3290_v53, %v2631_v23 }
0x20c8   :  { %v2634_v7 = vpack.c.bf16 %v2633_v48, %v2633_v48 }
0x20ca   :  { %2636 = vrot.lane.b32.xlu1 %v2634_v7, %s3342_s4  ;;  %s2539_s4 = sld [smem:[#allocation5]] }
0x20d0   :  { %v2540_v9 = vstv %s2539_s4  ;;  %p2547_p5 = scmp.eq.s32.totalorder %s2539_s4, 0 }
0x20d2   :  { %s2548_s28 = scalar_select %p2547_p5, 1, 0 }
0x20d4   :  { %v2549_v58 = vstv %s2548_s28 }
0x20d5   :  { %vm2550_vm5 = vcmp.eq.s32.totalorder %v2549_v58, 1 }
0x20ee   :  { %2534 = vadd.xlane.f32.xlu1 %v2533_v6 }
0x213c   :  { %v2637_v62 = vpop.permute.xlu1 %2636 }
0x213d   :  { %3074 = vmatmul.mubr.msk.bf16.vlgmr.msra.gmra.mxu0 %vm317_vm1, %v2637_v62  ;;  %vm2541_vm1 = vcmp.eq.s32.totalorder %v4667_v16, %v2540_v9 }
0x213e   :  { %v2542_v0 = vsel %vm2541_vm1, %v4660_v10, 0.0  ;;  %v2703_v10 = vstv %s2702_s21 }
0x213f   :  { %v2543_v1 = vsel %vm2509_vm15, %v2542_v0, 0.0  ;;  %vm2704_vm6 = vcmp.eq.s32.totalorder %v2703_v10, 1 }
0x2177   :  { %v2535_v34 = vpop.xlane.xlu1 %2534 }
0x21fd   :  { %v2675_v44 = vpop.f32.mrf.mxu0 }
0x21fe   :  { %v2676_v36 = vadd.f32 %v2675_v44, %v4657_v27 }
0x21ff   :  { %v3075_v25 = vpop.f32.mrf.mxu0 }
0x2200   :  { %v2681_v55 = vsel %vm2509_vm15, %v2676_v36, -inf  ;;  %v2696_v14 = vsel %vm2695_vm4, %v2676_v36, 0.0 }
0x2201   :  { %2682 = vmax.xlane.f32.xlu0 %v2681_v55  ;;  %v2678_v28 = vpop.f32.mrf.mxu0  ;;  %v2697_v32 = vsel %vm2509_vm15, %v2696_v14, 0.0 }
0x2202   :  { %2698 = vadd.xlane.f32.xlu1 %v2697_v32 }
0x2203   :  { %v3076_v20 = vpop.f32.mrf.mxu0 }
0x228a   :  { %v2683_v4 = vpop.xlane.xlu0 %2682 }
0x228b   :  { %v2684_v52 = vsub.f32 %v2676_v36, %v2683_v4  ;;  %v2699_v22 = vpop.xlane.xlu1 %2698 }
0x228d   :  { %v2685_v57 = vmul.f32 1.442695, %v2684_v52 }
0x228f   :  { %3295 = vpow2.f32 %v2685_v57 }
0x2290   :  { %3297 = vlog2.f32 %v2535_v34 }
0x229c   :  { %v3296_v27 = vpop.eup %3295 }
0x229d   :  { %v2687_v29 = vsel %vm2509_vm15, %v3296_v27, 0.0  ;;  %v3298_v61 = vpop.eup %3297 }
0x229e   :  { %2688 = vadd.xlane.f32.xlu0 %v2687_v29  ;;  %v2537_v35 = vmul.f32 0.6931472, %v3298_v61 }
0x22a0   :  { %v2538_v13 = vadd.f32 %v2537_v35, %v4664_v2 }
0x22a2   :  { %2544 = vadd.xlane.f32.xlu0 %v2543_v1 }
0x2327   :  { %v2689_v11 = vpop.xlane.xlu0 %2688 }
0x2328   :  { %3299 = vlog2.f32 %v2689_v11 }
0x232b   :  { %v2545_v5 = vpop.xlane.xlu0 %2544 }
0x232c   :  { %v2546_v21 = vsub.f32 %v2538_v13, %v2545_v5 }
0x232e   :  { %v2551_v31 = vsel %vm2550_vm5, 0.0, %v2546_v21 }
0x2335   :  { %v3300_v16 = vpop.eup %3299 }
0x2336   :  { %v2691_v12 = vmul.f32 0.6931472, %v3300_v16 }
0x2338   :  { %v2692_v15 = vadd.f32 %v2691_v12, %v2683_v4 }
0x233a   :  { %v2700_v51 = vsub.f32 %v2692_v15, %v2699_v22 }
0x233c   :  { %v2705_v30 = vsel %vm2704_vm6, 0.0, %v2700_v51 }
0x233d   :  { %v2706_v33 = vadd.f32 %v2705_v30, %v2551_v31 }
0x233f   :  { %2708 = vst.msk [vmem:[#allocation6] sm:$0x1] %vm2707_vm7, %v2706_v33 }
0x2340   :  { %3328 = shalt.err (!%p3325_p11)
}
0x2341   :  { %2718 = dma.vmem_to_hbm [thread:$0]  %s2716_s9, 16, %s4719_s18, [#allocation7]  }
0x2342   :  { %3339 = dma.done.wait [#allocation7], 16  }
0x2343   :  { %3340 = vsyncadd [#allocation7], 4294967280 }
0x2344   :  { %2722 = vsyncpa [#allocation7], 1 }

</bundles_post_ra>
